<compile_context>
chip_gen: v5e
topology: v5e:2x2
jax: 0.10.0
libtpu: 0.0.40
codegen_flags: <defaults>
</compile_context>

<pallas_src>
import jax
import jax.numpy as jnp
from jax.experimental import pallas as pl
from jax.experimental.pallas import tpu as pltpu

BASE_BLOCKS = 16          # original time steps packed per sublane row
KMAX, NMAX = 256, 128     # padded slab sizes for the per-layer block weights

# (kind, R_in = time-blocks per row at layer input, C_in, C_out)
_LAYERS = [
    ("enc", 16, 1, 16),
    ("enc", 8, 16, 32),
    ("enc", 4, 32, 64),
    ("enc", 2, 64, 128),
    ("dec", 1, 128, 64),
    ("dec", 2, 64, 32),
    ("dec", 4, 32, 16),
    ("dec", 8, 16, 1),
]


# ----------------------------------------------------------------------------- kernel
def conv_autoencoder_kernel(x_ref, w_ref, b_ref, out_ref):
    a = x_ref[0]                                    # [ROWS, 16] blocked input (C=1)
    rows = a.shape[0]

    # Sub/super-diagonal shift matrices (built once, reused by all 8 layers).
    ii = jax.lax.broadcasted_iota(jnp.int32, (rows, rows), 0)
    jj = jax.lax.broadcasted_iota(jnp.int32, (rows, rows), 1)
    prev_mat = (jj == ii - 1).astype(jnp.float32)   # (prev_mat @ v)[i] = v[i-1], row 0 -> 0
    next_mat = (jj == ii + 1).astype(jnp.float32)   # (next_mat @ v)[i] = v[i+1], last -> 0

    for li, (kind, r_in, c_in, c_out) in enumerate(_LAYERS):
        if kind == "enc":
            k, n = (r_in + 1) * c_in, (r_in // 2) * c_out
            # boundary block: x[r_in*m - 1] = last channel-block of the previous row
            edge = jnp.dot(prev_mat, a[:, (r_in - 1) * c_in:r_in * c_in],
                           preferred_element_type=jnp.float32)
            a_ext = jnp.concatenate([edge, a], axis=1)          # [rows, k]
        else:
            k, n = (r_in + 1) * c_in, (2 * r_in) * c_out
            # boundary block: x[r_in*(m+1)] = first channel-block of the next row
            edge = jnp.dot(next_mat, a[:, :c_in],
                           preferred_element_type=jnp.float32)
            a_ext = jnp.concatenate([a, edge], axis=1)          # [rows, k]

        y = jnp.dot(a_ext, w_ref[li, :k, :n],
                    preferred_element_type=jnp.float32) + b_ref[li, :, :n]
        if li != len(_LAYERS) - 1:                              # no ReLU after last deconv
            y = jnp.maximum(y, 0.0)
        a = y

    out_ref[0] = a                                              # [ROWS, 16] blocked output


# --------------------------------------------------------------- host-side weight packing
def _build_enc_block_weight(w, b, r_in):
    """Conv1d(k=3, s=2, p=1) as a blocked matmul weight.  w: [C_out, C_in, 3]."""
    c_out, c_in, _ = w.shape
    s_out = r_in // 2
    wj = [w[:, :, j].T for j in range(3)]                       # each [C_in, C_out]
    big = jnp.zeros(((r_in + 1) * c_in, s_out * c_out), jnp.float32)
    for s in range(s_out):
        cs = slice(s * c_out, (s + 1) * c_out)
        big = big.at[(2 * s) * c_in:(2 * s + 1) * c_in, cs].set(wj[0])      # x[2t-1]
        big = big.at[(2 * s + 1) * c_in:(2 * s + 2) * c_in, cs].set(wj[1])  # x[2t]
        big = big.at[(2 * s + 2) * c_in:(2 * s + 3) * c_in, cs].set(wj[2])  # x[2t+1]
    return big, jnp.tile(b, s_out)


def _build_dec_block_weight(w, b, r_in):
    """ConvTranspose1d(k=3, s=2, p=1, op=1) as a blocked matmul weight.  w: [C_in, C_out, 3]."""
    c_in, c_out, _ = w.shape
    vj = [w[:, :, j] for j in range(3)]                         # each [C_in, C_out]
    big = jnp.zeros(((r_in + 1) * c_in, 2 * r_in * c_out), jnp.float32)
    for r in range(r_in):
        ce = slice((2 * r) * c_out, (2 * r + 1) * c_out)        # even output  y[2s]
        co = slice((2 * r + 1) * c_out, (2 * r + 2) * c_out)    # odd  output  y[2s+1]
        big = big.at[r * c_in:(r + 1) * c_in, ce].set(vj[1])
        big = big.at[r * c_in:(r + 1) * c_in, co].set(vj[2])
        big = big.at[(r + 1) * c_in:(r + 2) * c_in, co].set(vj[0])
    return big, jnp.tile(b, 2 * r_in)


def pack_params(params):
    enc_ws, enc_bs, dec_ws, dec_bs = params
    mats, biases = [], []
    r = BASE_BLOCKS
    for w, b in zip(enc_ws, enc_bs):
        big, bias = _build_enc_block_weight(w, b, r)
        mats.append(jnp.pad(big, ((0, KMAX - big.shape[0]), (0, NMAX - big.shape[1]))))
        biases.append(jnp.pad(bias, (0, NMAX - bias.shape[0])))
        r //= 2
    r = 1
    for w, b in zip(dec_ws, dec_bs):
        big, bias = _build_dec_block_weight(w, b, r)
        mats.append(jnp.pad(big, ((0, KMAX - big.shape[0]), (0, NMAX - big.shape[1]))))
        biases.append(jnp.pad(bias, (0, NMAX - bias.shape[0])))
        r *= 2
    return jnp.stack(mats), jnp.stack(biases)[:, None, :]       # [8,256,128], [8,1,128]


# ------------------------------------------------------------------------------ wrapper
def conv_autoencoder_forward(x, params):
    B, L = x.shape
    assert L % BASE_BLOCKS == 0, "input length must be divisible by 16"
    rows = L // BASE_BLOCKS
    w_slab, b_slab = pack_params(params)
    xb = x.reshape(B, rows, BASE_BLOCKS).astype(jnp.float32)    # row-major, free

    out = pl.pallas_call(
        conv_autoencoder_kernel,
        out_shape=jax.ShapeDtypeStruct((B, rows, BASE_BLOCKS), jnp.float32),
        grid=(B,),
        in_specs=[
            pl.BlockSpec((1, rows, BASE_BLOCKS), lambda b: (b, 0, 0)),
            pl.BlockSpec(w_slab.shape, lambda b: (0, 0, 0)),
            pl.BlockSpec(b_slab.shape, lambda b: (0, 0, 0)),
        ],
        out_specs=pl.BlockSpec((1, rows, BASE_BLOCKS), lambda b: (b, 0, 0)),
        compiler_params=pltpu.CompilerParams(dimension_semantics=("parallel",)),
    )(xb, w_slab, b_slab)
    return out.reshape(B, L)


# ------------------------------------------------------------------- pure-JAX reference
def _conv1d_s2(x, w, b):
    y = jax.lax.conv_general_dilated(
        x, w, window_strides=(2,), padding=((1, 1),),
        dimension_numbers=("NCH", "OIH", "NCH"),
        precision=jax.lax.Precision.HIGHEST)
    return y + b[None, :, None]


def _convT1d_s2(x, w, b):
    # ConvTranspose1d(k=3, s=2, p=1, output_padding=1) == lhs-dilated conv with flipped kernel.
    w_f = jnp.flip(w, axis=2).transpose(1, 0, 2)
    y = jax.lax.conv_general_dilated(
        x, w_f, window_strides=(1,), padding=((1, 2),), lhs_dilation=(2,),
        dimension_numbers=("NCH", "OIH", "NCH"),
        precision=jax.lax.Precision.HIGHEST)
    return y + b[None, :, None]


def reference_forward(x, params):
    enc_ws, enc_bs, dec_ws, dec_bs = params
    h = x[:, None, :]
    for w, b in zip(enc_ws, enc_bs):
        h = jax.nn.relu(_conv1d_s2(h, w, b))
    for i, (w, b) in enumerate(zip(dec_ws, dec_bs)):
        h = _convT1d_s2(h, w, b)
        if i != len(dec_ws) - 1:
            h = jax.nn.relu(h)
    return h[:, 0, :]


# -------------------------------------------------------------------------------- params
def init_params(key):
    enc_shapes = [(16, 1, 3), (32, 16, 3), (64, 32, 3), (128, 64, 3)]     # Conv1d  [Cout,Cin,k]
    dec_shapes = [(128, 64, 3), (64, 32, 3), (32, 16, 3), (16, 1, 3)]     # ConvT1d [Cin,Cout,k]
    keys = jax.random.split(key, 16)
    enc_ws, enc_bs, dec_ws, dec_bs = [], [], [], []
    ki = 0
    for co, ci, k in enc_shapes:
        enc_ws.append(((ci * k) ** -0.5) * jax.random.normal(keys[ki], (co, ci, k), jnp.float32)); ki += 1
        enc_bs.append(0.1 * jax.random.normal(keys[ki], (co,), jnp.float32)); ki += 1
    for ci, co, k in dec_shapes:
        dec_ws.append(((ci * k) ** -0.5) * jax.random.normal(keys[ki], (ci, co, k), jnp.float32)); ki += 1
        dec_bs.append(0.1 * jax.random.normal(keys[ki], (co,), jnp.float32)); ki += 1
    return enc_ws, enc_bs, dec_ws, dec_bs


if __name__ == "__main__":
    key = jax.random.PRNGKey(0)
    k_x, k_p = jax.random.split(key)
    B, L = 2, 2000          # 2000 -> 1000 -> 500 -> 250 -> 125 (matches encoded_space_dim=128*125)
    x = jax.random.normal(k_x, (B, L), dtype=jnp.float32)
    params = init_params(k_p)

    out = jax.block_until_ready(jax.jit(conv_autoencoder_forward)(x, params))
    ref = jax.block_until_ready(reference_forward(x, params))

    assert out.shape == (B, L), out.shape
    max_err = float(jnp.max(jnp.abs(out - ref)))
    assert jnp.allclose(out, ref, atol=1e-2, rtol=1e-2), max_err
    print("KERNEL_OK")
</pallas_src>

<mosaic_0001>
module attributes {stable_mosaic.version = 11 : i64} {
  func.func @conv_autoencoder_kernel(%arg0: i32, %arg1: memref<1x125x16xf32, #tpu.memory_space<vmem>>, %arg2: memref<8x256x128xf32, #tpu.memory_space<vmem>>, %arg3: memref<8x1x128xf32, #tpu.memory_space<vmem>>, %arg4: memref<1x125x16xf32, #tpu.memory_space<vmem>>) attributes {dimension_semantics = [#tpu.dimension_semantics<parallel>], iteration_bounds = array<i64: 2>, scalar_prefetch = 0 : i64, scratch_operands = 0 : i64, tpu.core_type = #tpu.core_type<tc>, window_params = [{transform_indices = @transform_0, window_bounds = array<i64: 1, 125, 16>}, {pipeline_mode = #tpu.pipeline_mode<synchronous>, transform_indices = @transform_1, window_bounds = array<i64: 8, 256, 128>}, {pipeline_mode = #tpu.pipeline_mode<synchronous>, transform_indices = @transform_2, window_bounds = array<i64: 8, 1, 128>}, {transform_indices = @transform_3, window_bounds = array<i64: 1, 125, 16>}]} {
    %c0 = arith.constant 0 : index
    %c0_0 = arith.constant 0 : index
    %c0_1 = arith.constant 0 : index
    %0 = vector.load %arg1[%c0, %c0_0, %c0_1] : memref<1x125x16xf32, #tpu.memory_space<vmem>>, vector<1x125x16xf32>
    %1 = vector.shape_cast %0 : vector<1x125x16xf32> to vector<125x16xf32>
    %2 = tpu.iota {dimensions = array<i32: 0>} : vector<125x125xi32>
    %3 = tpu.iota {dimensions = array<i32: 1>} : vector<125x125xi32>
    %c1_i32 = arith.constant 1 : i32
    %4 = vector.broadcast %c1_i32 : i32 to vector<125x125xi32>
    %5 = arith.subi %2, %4 : vector<125x125xi32>
    %6 = arith.cmpi eq, %3, %5 : vector<125x125xi32>
    %7 = arith.extui %6 : vector<125x125xi1> to vector<125x125xi32>
    %8 = arith.sitofp %7 : vector<125x125xi32> to vector<125x125xf32>
    %c1_i32_2 = arith.constant 1 : i32
    %9 = vector.broadcast %c1_i32_2 : i32 to vector<125x125xi32>
    %10 = arith.addi %2, %9 : vector<125x125xi32>
    %11 = arith.cmpi eq, %3, %10 : vector<125x125xi32>
    %12 = arith.extui %11 : vector<125x125xi1> to vector<125x125xi32>
    %13 = arith.sitofp %12 : vector<125x125xi32> to vector<125x125xf32>
    %14 = vector.extract_strided_slice %1 {offsets = [0, 15], sizes = [125, 1], strides = [1, 1]} : vector<125x16xf32> to vector<125x1xf32>
    %cst = arith.constant dense<0.000000e+00> : vector<125x1xf32>
    %15 = tpu.matmul %8, %14, %cst {dimension_numbers = #tpu.dot_dimension_numbers<[1], [0], [0], [1], [0, 0, 1, 1], [], []>} : vector<125x125xf32>, vector<125x1xf32>, vector<125x1xf32> -> vector<125x1xf32>
    %16 = tpu.concatenate %15, %1 in 1 : vector<125x1xf32>, vector<125x16xf32> -> vector<125x17xf32>
    %c0_3 = arith.constant 0 : index
    %c0_4 = arith.constant 0 : index
    %c0_5 = arith.constant 0 : index
    %17 = vector.load %arg2[%c0_3, %c0_4, %c0_5] : memref<8x256x128xf32, #tpu.memory_space<vmem>>, vector<1x17x128xf32>
    %18 = vector.shape_cast %17 : vector<1x17x128xf32> to vector<17x128xf32>
    %cst_6 = arith.constant dense<0.000000e+00> : vector<125x128xf32>
    %19 = tpu.matmul %16, %18, %cst_6 {dimension_numbers = #tpu.dot_dimension_numbers<[1], [0], [0], [1], [0, 0, 1, 1], [], []>} : vector<125x17xf32>, vector<17x128xf32>, vector<125x128xf32> -> vector<125x128xf32>
    %c0_7 = arith.constant 0 : index
    %c0_8 = arith.constant 0 : index
    %c0_9 = arith.constant 0 : index
    %20 = vector.load %arg3[%c0_7, %c0_8, %c0_9] : memref<8x1x128xf32, #tpu.memory_space<vmem>>, vector<1x1x128xf32>
    %21 = vector.shape_cast %20 : vector<1x1x128xf32> to vector<1x128xf32>
    %22 = vector.broadcast %21 : vector<1x128xf32> to vector<125x128xf32>
    %23 = arith.addf %19, %22 : vector<125x128xf32>
    %cst_10 = arith.constant 0.000000e+00 : f32
    %24 = vector.broadcast %cst_10 : f32 to vector<125x128xf32>
    %25 = arith.maximumf %23, %24 : vector<125x128xf32>
    %26 = vector.extract_strided_slice %25 {offsets = [0, 112], sizes = [125, 16], strides = [1, 1]} : vector<125x128xf32> to vector<125x16xf32>
    %cst_11 = arith.constant dense<0.000000e+00> : vector<125x16xf32>
    %27 = tpu.matmul %8, %26, %cst_11 {dimension_numbers = #tpu.dot_dimension_numbers<[1], [0], [0], [1], [0, 0, 1, 1], [], []>} : vector<125x125xf32>, vector<125x16xf32>, vector<125x16xf32> -> vector<125x16xf32>
    %28 = tpu.concatenate %27, %25 in 1 : vector<125x16xf32>, vector<125x128xf32> -> vector<125x144xf32>
    %c1 = arith.constant 1 : index
    %c0_12 = arith.constant 0 : index
    %c0_13 = arith.constant 0 : index
    %29 = vector.load %arg2[%c1, %c0_12, %c0_13] : memref<8x256x128xf32, #tpu.memory_space<vmem>>, vector<1x144x128xf32>
    %30 = vector.shape_cast %29 : vector<1x144x128xf32> to vector<144x128xf32>
    %cst_14 = arith.constant dense<0.000000e+00> : vector<125x128xf32>
    %31 = tpu.matmul %28, %30, %cst_14 {dimension_numbers = #tpu.dot_dimension_numbers<[1], [0], [0], [1], [0, 0, 1, 1], [], []>} : vector<125x144xf32>, vector<144x128xf32>, vector<125x128xf32> -> vector<125x128xf32>
    %c1_15 = arith.constant 1 : index
    %c0_16 = arith.constant 0 : index
    %c0_17 = arith.constant 0 : index
    %32 = vector.load %arg3[%c1_15, %c0_16, %c0_17] : memref<8x1x128xf32, #tpu.memory_space<vmem>>, vector<1x1x128xf32>
    %33 = vector.shape_cast %32 : vector<1x1x128xf32> to vector<1x128xf32>
    %34 = vector.broadcast %33 : vector<1x128xf32> to vector<125x128xf32>
    %35 = arith.addf %31, %34 : vector<125x128xf32>
    %cst_18 = arith.constant 0.000000e+00 : f32
    %36 = vector.broadcast %cst_18 : f32 to vector<125x128xf32>
    %37 = arith.maximumf %35, %36 : vector<125x128xf32>
    %38 = vector.extract_strided_slice %37 {offsets = [0, 96], sizes = [125, 32], strides = [1, 1]} : vector<125x128xf32> to vector<125x32xf32>
    %cst_19 = arith.constant dense<0.000000e+00> : vector<125x32xf32>
    %39 = tpu.matmul %8, %38, %cst_19 {dimension_numbers = #tpu.dot_dimension_numbers<[1], [0], [0], [1], [0, 0, 1, 1], [], []>} : vector<125x125xf32>, vector<125x32xf32>, vector<125x32xf32> -> vector<125x32xf32>
    %40 = tpu.concatenate %39, %37 in 1 : vector<125x32xf32>, vector<125x128xf32> -> vector<125x160xf32>
    %c2 = arith.constant 2 : index
    %c0_20 = arith.constant 0 : index
    %c0_21 = arith.constant 0 : index
    %41 = vector.load %arg2[%c2, %c0_20, %c0_21] : memref<8x256x128xf32, #tpu.memory_space<vmem>>, vector<1x160x128xf32>
    %42 = vector.shape_cast %41 : vector<1x160x128xf32> to vector<160x128xf32>
    %cst_22 = arith.constant dense<0.000000e+00> : vector<125x128xf32>
    %43 = tpu.matmul %40, %42, %cst_22 {dimension_numbers = #tpu.dot_dimension_numbers<[1], [0], [0], [1], [0, 0, 1, 1], [], []>} : vector<125x160xf32>, vector<160x128xf32>, vector<125x128xf32> -> vector<125x128xf32>
    %c2_23 = arith.constant 2 : index
    %c0_24 = arith.constant 0 : index
    %c0_25 = arith.constant 0 : index
    %44 = vector.load %arg3[%c2_23, %c0_24, %c0_25] : memref<8x1x128xf32, #tpu.memory_space<vmem>>, vector<1x1x128xf32>
    %45 = vector.shape_cast %44 : vector<1x1x128xf32> to vector<1x128xf32>
    %46 = vector.broadcast %45 : vector<1x128xf32> to vector<125x128xf32>
    %47 = arith.addf %43, %46 : vector<125x128xf32>
    %cst_26 = arith.constant 0.000000e+00 : f32
    %48 = vector.broadcast %cst_26 : f32 to vector<125x128xf32>
    %49 = arith.maximumf %47, %48 : vector<125x128xf32>
    %50 = vector.extract_strided_slice %49 {offsets = [0, 64], sizes = [125, 64], strides = [1, 1]} : vector<125x128xf32> to vector<125x64xf32>
    %cst_27 = arith.constant dense<0.000000e+00> : vector<125x64xf32>
    %51 = tpu.matmul %8, %50, %cst_27 {dimension_numbers = #tpu.dot_dimension_numbers<[1], [0], [0], [1], [0, 0, 1, 1], [], []>} : vector<125x125xf32>, vector<125x64xf32>, vector<125x64xf32> -> vector<125x64xf32>
    %52 = tpu.concatenate %51, %49 in 1 : vector<125x64xf32>, vector<125x128xf32> -> vector<125x192xf32>
    %c3 = arith.constant 3 : index
    %c0_28 = arith.constant 0 : index
    %c0_29 = arith.constant 0 : index
    %53 = vector.load %arg2[%c3, %c0_28, %c0_29] : memref<8x256x128xf32, #tpu.memory_space<vmem>>, vector<1x192x128xf32>
    %54 = vector.shape_cast %53 : vector<1x192x128xf32> to vector<192x128xf32>
    %cst_30 = arith.constant dense<0.000000e+00> : vector<125x128xf32>
    %55 = tpu.matmul %52, %54, %cst_30 {dimension_numbers = #tpu.dot_dimension_numbers<[1], [0], [0], [1], [0, 0, 1, 1], [], []>} : vector<125x192xf32>, vector<192x128xf32>, vector<125x128xf32> -> vector<125x128xf32>
    %c3_31 = arith.constant 3 : index
    %c0_32 = arith.constant 0 : index
    %c0_33 = arith.constant 0 : index
    %56 = vector.load %arg3[%c3_31, %c0_32, %c0_33] : memref<8x1x128xf32, #tpu.memory_space<vmem>>, vector<1x1x128xf32>
    %57 = vector.shape_cast %56 : vector<1x1x128xf32> to vector<1x128xf32>
    %58 = vector.broadcast %57 : vector<1x128xf32> to vector<125x128xf32>
    %59 = arith.addf %55, %58 : vector<125x128xf32>
    %cst_34 = arith.constant 0.000000e+00 : f32
    %60 = vector.broadcast %cst_34 : f32 to vector<125x128xf32>
    %61 = arith.maximumf %59, %60 : vector<125x128xf32>
    %cst_35 = arith.constant dense<0.000000e+00> : vector<125x128xf32>
    %62 = tpu.matmul %13, %61, %cst_35 {dimension_numbers = #tpu.dot_dimension_numbers<[1], [0], [0], [1], [0, 0, 1, 1], [], []>} : vector<125x125xf32>, vector<125x128xf32>, vector<125x128xf32> -> vector<125x128xf32>
    %63 = tpu.concatenate %61, %62 in 1 : vector<125x128xf32>, vector<125x128xf32> -> vector<125x256xf32>
    %c4 = arith.constant 4 : index
    %c0_36 = arith.constant 0 : index
    %c0_37 = arith.constant 0 : index
    %64 = vector.load %arg2[%c4, %c0_36, %c0_37] : memref<8x256x128xf32, #tpu.memory_space<vmem>>, vector<1x256x128xf32>
    %65 = vector.shape_cast %64 : vector<1x256x128xf32> to vector<256x128xf32>
    %cst_38 = arith.constant dense<0.000000e+00> : vector<125x128xf32>
    %66 = tpu.matmul %63, %65, %cst_38 {dimension_numbers = #tpu.dot_dimension_numbers<[1], [0], [0], [1], [0, 0, 1, 1], [], []>} : vector<125x256xf32>, vector<256x128xf32>, vector<125x128xf32> -> vector<125x128xf32>
    %c4_39 = arith.constant 4 : index
    %c0_40 = arith.constant 0 : index
    %c0_41 = arith.constant 0 : index
    %67 = vector.load %arg3[%c4_39, %c0_40, %c0_41] : memref<8x1x128xf32, #tpu.memory_space<vmem>>, vector<1x1x128xf32>
    %68 = vector.shape_cast %67 : vector<1x1x128xf32> to vector<1x128xf32>
    %69 = vector.broadcast %68 : vector<1x128xf32> to vector<125x128xf32>
    %70 = arith.addf %66, %69 : vector<125x128xf32>
    %cst_42 = arith.constant 0.000000e+00 : f32
    %71 = vector.broadcast %cst_42 : f32 to vector<125x128xf32>
    %72 = arith.maximumf %70, %71 : vector<125x128xf32>
    %73 = vector.extract_strided_slice %72 {offsets = [0, 0], sizes = [125, 64], strides = [1, 1]} : vector<125x128xf32> to vector<125x64xf32>
    %cst_43 = arith.constant dense<0.000000e+00> : vector<125x64xf32>
    %74 = tpu.matmul %13, %73, %cst_43 {dimension_numbers = #tpu.dot_dimension_numbers<[1], [0], [0], [1], [0, 0, 1, 1], [], []>} : vector<125x125xf32>, vector<125x64xf32>, vector<125x64xf32> -> vector<125x64xf32>
    %75 = tpu.concatenate %72, %74 in 1 : vector<125x128xf32>, vector<125x64xf32> -> vector<125x192xf32>
    %c5 = arith.constant 5 : index
    %c0_44 = arith.constant 0 : index
    %c0_45 = arith.constant 0 : index
    %76 = vector.load %arg2[%c5, %c0_44, %c0_45] : memref<8x256x128xf32, #tpu.memory_space<vmem>>, vector<1x192x128xf32>
    %77 = vector.shape_cast %76 : vector<1x192x128xf32> to vector<192x128xf32>
    %cst_46 = arith.constant dense<0.000000e+00> : vector<125x128xf32>
    %78 = tpu.matmul %75, %77, %cst_46 {dimension_numbers = #tpu.dot_dimension_numbers<[1], [0], [0], [1], [0, 0, 1, 1], [], []>} : vector<125x192xf32>, vector<192x128xf32>, vector<125x128xf32> -> vector<125x128xf32>
    %c5_47 = arith.constant 5 : index
    %c0_48 = arith.constant 0 : index
    %c0_49 = arith.constant 0 : index
    %79 = vector.load %arg3[%c5_47, %c0_48, %c0_49] : memref<8x1x128xf32, #tpu.memory_space<vmem>>, vector<1x1x128xf32>
    %80 = vector.shape_cast %79 : vector<1x1x128xf32> to vector<1x128xf32>
    %81 = vector.broadcast %80 : vector<1x128xf32> to vector<125x128xf32>
    %82 = arith.addf %78, %81 : vector<125x128xf32>
    %cst_50 = arith.constant 0.000000e+00 : f32
    %83 = vector.broadcast %cst_50 : f32 to vector<125x128xf32>
    %84 = arith.maximumf %82, %83 : vector<125x128xf32>
    %85 = vector.extract_strided_slice %84 {offsets = [0, 0], sizes = [125, 32], strides = [1, 1]} : vector<125x128xf32> to vector<125x32xf32>
    %cst_51 = arith.constant dense<0.000000e+00> : vector<125x32xf32>
    %86 = tpu.matmul %13, %85, %cst_51 {dimension_numbers = #tpu.dot_dimension_numbers<[1], [0], [0], [1], [0, 0, 1, 1], [], []>} : vector<125x125xf32>, vector<125x32xf32>, vector<125x32xf32> -> vector<125x32xf32>
    %87 = tpu.concatenate %84, %86 in 1 : vector<125x128xf32>, vector<125x32xf32> -> vector<125x160xf32>
    %c6 = arith.constant 6 : index
    %c0_52 = arith.constant 0 : index
    %c0_53 = arith.constant 0 : index
    %88 = vector.load %arg2[%c6, %c0_52, %c0_53] : memref<8x256x128xf32, #tpu.memory_space<vmem>>, vector<1x160x128xf32>
    %89 = vector.shape_cast %88 : vector<1x160x128xf32> to vector<160x128xf32>
    %cst_54 = arith.constant dense<0.000000e+00> : vector<125x128xf32>
    %90 = tpu.matmul %87, %89, %cst_54 {dimension_numbers = #tpu.dot_dimension_numbers<[1], [0], [0], [1], [0, 0, 1, 1], [], []>} : vector<125x160xf32>, vector<160x128xf32>, vector<125x128xf32> -> vector<125x128xf32>
    %c6_55 = arith.constant 6 : index
    %c0_56 = arith.constant 0 : index
    %c0_57 = arith.constant 0 : index
    %91 = vector.load %arg3[%c6_55, %c0_56, %c0_57] : memref<8x1x128xf32, #tpu.memory_space<vmem>>, vector<1x1x128xf32>
    %92 = vector.shape_cast %91 : vector<1x1x128xf32> to vector<1x128xf32>
    %93 = vector.broadcast %92 : vector<1x128xf32> to vector<125x128xf32>
    %94 = arith.addf %90, %93 : vector<125x128xf32>
    %cst_58 = arith.constant 0.000000e+00 : f32
    %95 = vector.broadcast %cst_58 : f32 to vector<125x128xf32>
    %96 = arith.maximumf %94, %95 : vector<125x128xf32>
    %97 = vector.extract_strided_slice %96 {offsets = [0, 0], sizes = [125, 16], strides = [1, 1]} : vector<125x128xf32> to vector<125x16xf32>
    %cst_59 = arith.constant dense<0.000000e+00> : vector<125x16xf32>
    %98 = tpu.matmul %13, %97, %cst_59 {dimension_numbers = #tpu.dot_dimension_numbers<[1], [0], [0], [1], [0, 0, 1, 1], [], []>} : vector<125x125xf32>, vector<125x16xf32>, vector<125x16xf32> -> vector<125x16xf32>
    %99 = tpu.concatenate %96, %98 in 1 : vector<125x128xf32>, vector<125x16xf32> -> vector<125x144xf32>
    %c7 = arith.constant 7 : index
    %c0_60 = arith.constant 0 : index
    %c0_61 = arith.constant 0 : index
    %100 = vector.load %arg2[%c7, %c0_60, %c0_61] : memref<8x256x128xf32, #tpu.memory_space<vmem>>, vector<1x144x16xf32>
    %101 = vector.shape_cast %100 : vector<1x144x16xf32> to vector<144x16xf32>
    %cst_62 = arith.constant dense<0.000000e+00> : vector<125x16xf32>
    %102 = tpu.matmul %99, %101, %cst_62 {dimension_numbers = #tpu.dot_dimension_numbers<[1], [0], [0], [1], [0, 0, 1, 1], [], []>} : vector<125x144xf32>, vector<144x16xf32>, vector<125x16xf32> -> vector<125x16xf32>
    %c7_63 = arith.constant 7 : index
    %c0_64 = arith.constant 0 : index
    %c0_65 = arith.constant 0 : index
    %103 = vector.load %arg3[%c7_63, %c0_64, %c0_65] : memref<8x1x128xf32, #tpu.memory_space<vmem>>, vector<1x1x16xf32>
    %104 = vector.shape_cast %103 : vector<1x1x16xf32> to vector<1x16xf32>
    %105 = vector.broadcast %104 : vector<1x16xf32> to vector<125x16xf32>
    %106 = arith.addf %102, %105 : vector<125x16xf32>
    %c0_66 = arith.constant 0 : index
    %c0_67 = arith.constant 0 : index
    %c0_68 = arith.constant 0 : index
    %107 = vector.load %arg4[%c0_66, %c0_67, %c0_68] : memref<1x125x16xf32, #tpu.memory_space<vmem>>, vector<1x125x16xf32>
    %108 = vector.shape_cast %107 : vector<1x125x16xf32> to vector<125x16xf32>
    %109 = vector.shape_cast %106 : vector<125x16xf32> to vector<1x125x16xf32>
    tpu.vector_store %arg4[%c0_66, %c0_67, %c0_68], %109 {strides = array<i32>} : memref<1x125x16xf32, #tpu.memory_space<vmem>>, vector<1x125x16xf32>,
    return
  }
  func.func @transform_0(%arg0: i32) -> (i32, i32, i32) {
    %c0_i32 = arith.constant 0 : i32
    %c0_i32_0 = arith.constant 0 : i32
    %c0_i32_1 = arith.constant 0 : i32
    return %arg0, %c0_i32, %c0_i32_0 : i32, i32, i32
  }
  func.func @transform_1(%arg0: i32) -> (i32, i32, i32) {
    %c0_i32 = arith.constant 0 : i32
    %c0_i32_0 = arith.constant 0 : i32
    %c0_i32_1 = arith.constant 0 : i32
    %c0_i32_2 = arith.constant 0 : i32
    return %c0_i32, %c0_i32_0, %c0_i32_1 : i32, i32, i32
  }
  func.func @transform_2(%arg0: i32) -> (i32, i32, i32) {
    %c0_i32 = arith.constant 0 : i32
    %c0_i32_0 = arith.constant 0 : i32
    %c0_i32_1 = arith.constant 0 : i32
    %c0_i32_2 = arith.constant 0 : i32
    return %c0_i32, %c0_i32_0, %c0_i32_1 : i32, i32, i32
  }
  func.func @transform_3(%arg0: i32) -> (i32, i32, i32) {
    %c0_i32 = arith.constant 0 : i32
    %c0_i32_0 = arith.constant 0 : i32
    %c0_i32_1 = arith.constant 0 : i32
    return %arg0, %c0_i32, %c0_i32_0 : i32, i32, i32
  }
}

</mosaic_0001>

<bundles_post_ra>
// kernel: tile.38
= control target key start
LH: loop header
LB: loop body
LE: loop exit
PB: predicated region body
PF: predicated region fallthrough
CT: control target
= control target key end

     0   :  { %s22_s0 = inlined_call_operand.vmem [shape: f32[16], index: 0, kind: input, shape index: {}]   ;;  %s23_s1 = inlined_call_operand.vmem [shape: f32[8,16], index: 1, kind: output, shape index: {}]  }
   0x1   :  { %v4_v0 = vld [vmem:[%s22_s0] ss:$0 sm:$0xff] }
   0x2   :  { %5 = vst [vmem:[%s23_s1] sm:$0xff] %v4_v0 }

// kernel: tile.43
= control target key start
LH: loop header
LB: loop body
LE: loop exit
PB: predicated region body
PF: predicated region fallthrough
CT: control target
= control target key end

     0   :  { %s22_s0 = inlined_call_operand.vmem [shape: f32[32], index: 0, kind: input, shape index: {}]   ;;  %s23_s1 = inlined_call_operand.vmem [shape: f32[4,32], index: 1, kind: output, shape index: {}]  }
   0x1   :  { %v4_v0 = vld [vmem:[%s22_s0] ss:$0 sm:$0xff] }
   0x2   :  { %5 = vst [vmem:[%s23_s1] sm:$0xf] %v4_v0 }

// kernel: tile.48
= control target key start
LH: loop header
LB: loop body
LE: loop exit
PB: predicated region body
PF: predicated region fallthrough
CT: control target
= control target key end

     0   :  { %s22_s0 = inlined_call_operand.vmem [shape: f32[64], index: 0, kind: input, shape index: {}]   ;;  %s23_s1 = inlined_call_operand.vmem [shape: f32[2,64], index: 1, kind: output, shape index: {}]  }
   0x1   :  { %v4_v0 = vld [vmem:[%s22_s0] ss:$0 sm:$0xff] }
   0x2   :  { %5 = vst [vmem:[%s23_s1] sm:$0x3] %v4_v0 }

// kernel: conv_autoencoder_forward.1
= control target key start
LH: loop header
LB: loop body
LE: loop exit
PB: predicated region body
PF: predicated region fallthrough
CT: control target
= control target key end

     0   :  { %s3596_s12 = smov 0   ;;  %s5508_s0 = inlined_call_operand.vmem [shape: f32[2,125,16], index: 0, kind: input, shape index: {}]   ;;  %s5509_s1 = inlined_call_operand.vmem [shape: f32[8,256,128], index: 1, kind: input, shape index: {}]   ;;  %s5510_s2 = inlined_call_operand.vmem [shape: f32[8,1,128], index: 2, kind: input, shape index: {}]   ;;  %s5511_s3 = inlined_call_operand.vmem [shape: f32[2,125,16], index: 3, kind: output, shape index: {}]  }
   0x1 LB: > { %s3000_s13 = sadd.s32 4294967295, %s3568_s12   ;;  %p3004_p0 = scmp.ge.s32.totalorder %s3568_s12, 1  ;;  %s3568_s12 = sphi %s3596_s12, %s13_s12  }
   0x2   : > { %p137_p1 = scmp.lt.s32.totalorder %s3568_s12, 3 }
   0x4   : > { %p138_p2 = pnand %p3004_p0, %p137_p1 }
   0x6   : > { %141 = sbr.rel (%p138_p2) target bundleno = 3781 (0xec5), region = 32 }
   0xb   : > { %p161_p3 = scmp.lt.s32.totalorder %s3000_s13, 1  ;;  %s3570_s18 = smov 113   ;;  %vm446_vm0 = vcmask 1044480   ;;  %v187_v36 = vlaneseq  ;;  %v5512_v54 = vmov 0.0   ;;  %vm397_vm3 = vcmask 1022976  }
   0xc   : > { %s3571_s19 = smov 1   ;;  %vm635_vm14 = vcmask 1040384   ;;  %s3573_s28 = smov 16  }
   0xd   : > { %s5531_s13 = smov (!%p161_p3, %s3000_s13), 1  ;;  %v3641_v40 = vshrl.u32 %v187_v36, 7  ;;  %v3646_v45 = vand.u32 127, %v187_v36  ;;  %s3575_s11 = smov 64  }
   0xe   : > { %s3471_s14 = sshll.u32 %s5531_s13, 7 }
   0xf   : > { %s3612_s17 = scalar_lea.vmem %s5508_s0, %s3471_s14  ;;  %v3644_v44 = vadd.s32 32, %v3641_v40  ;;  %v3009_v46 = vadd.s32 4294967295, %v3641_v40  ;;  %v3652_v50 = vadd.s32 8, %v3641_v40  ;;  %v3656_v51 = vadd.s32 40, %v3641_v40  ;;  %s5457_s23 = scalar_lea.vmem %s5511_s3, %s3471_s14 }
  0x10   : > { %v186_v0 = vld [vmem:[%s3612_s17 + $0x78] sm:$0x1f]  ;;  %v183_v2 = vld [vmem:[%s3612_s17 + $0x60] sm:$0xff]  ;;  %v184_v3 = vld [vmem:[%s3612_s17 + $0x68] sm:$0xff]  ;;  %v3672_v59 = vadd.s32 16, %v3641_v40  ;;  %v3676_v60 = vadd.s32 48, %v3641_v40 }
  0x11   : > { %380 = vrot.lane.b32.xlu0 %v186_v0, %s3570_s18  ;;  %v182_v1 = vld [vmem:[%s3612_s17 + $0x58] sm:$0xff]  ;;  %v185_v4 = vld [vmem:[%s3612_s17 + $0x70] sm:$0xff]  ;;  %v179_v7 = vld [vmem:[%s3612_s17 + $0x40] sm:$0xff]  ;;  %v3013_v47 = vadd.s32 4294967295, %v3644_v44  ;;  %vm222_vm1 = vcmp.eq.s32.totalorder %v3646_v45, %v3009_v46  ;;  %v3010_v57 = vadd.s32 4294967295, %v3652_v50  ;;  %v3014_v58 = vadd.s32 4294967295, %v3656_v51 }
  0x12   : > { %v3524_v5 = vpack.i.bf16 %v182_v1, %v183_v2  ;;  %v178_v6 = vld [vmem:[%s3612_s17 + $0x38] sm:$0xff]  ;;  %v3519_v8 = vpack.i.bf16 %v184_v3, %v185_v4  ;;  %v180_v9 = vld [vmem:[%s3612_s17 + $0x48] sm:$0xff]  ;;  %v181_v10 = vld [vmem:[%s3612_s17 + $0x50] sm:$0xff]  ;;  %v3659_v55 = vsel %vm222_vm1, 1.0, %v5512_v54  ;;  %v3011_v63 = vadd.s32 4294967295, %v3672_v59 }
  0x13   : > { %v3534_v11 = vpack.i.bf16 %v178_v6, %v179_v7  ;;  %v3529_v12 = vpack.i.bf16 %v180_v9, %v181_v10  ;;  %v176_v13 = vld [vmem:[%s3612_s17 + $0x28] sm:$0xff]  ;;  %v177_v14 = vld [vmem:[%s3612_s17 + $0x30] sm:$0xff]  ;;  %v174_v15 = vld [vmem:[%s3612_s17 + $0x18] sm:$0xff]  ;;  %vm226_vm2 = vcmp.eq.s32.totalorder %v3646_v45, %v3013_v47  ;;  %vm223_vm4 = vcmp.eq.s32.totalorder %v3646_v45, %v3010_v57 }
  0x14   : > { %3525 = vrot.lane.b32.xlu1 %v3524_v5, %s3570_s18  ;;  %v175_v16 = vld [vmem:[%s3612_s17 + $0x20] sm:$0xff]  ;;  %v3539_v17 = vpack.i.bf16 %v176_v13, %v177_v14  ;;  %v172_v19 = vld [vmem:[%s3612_s17 + $0x8] sm:$0xff]  ;;  %v173_v20 = vld [vmem:[%s3612_s17 + $0x10] sm:$0xff]  ;;  %v3662_v56 = vsel %vm226_vm2, 1.0, %v5512_v54  ;;  %vm227_vm5 = vcmp.eq.s32.totalorder %v3646_v45, %v3014_v58  ;;  %v3679_v61 = vsel %vm223_vm4, 1.0, %v5512_v54 }
  0x15   : > { %3535 = vrot.lane.b32.xlu2 %v3534_v11, %s3570_s18  ;;  %v3544_v18 = vpack.i.bf16 %v174_v15, %v175_v16  ;;  %v3549_v21 = vpack.i.bf16 %v172_v19, %v173_v20  ;;  %v171_v22 = vld [vmem:[%s3612_s17] sm:$0xff]  ;;  %v3682_v62 = vsel %vm227_vm5, 1.0, %v5512_v54  ;;  %vm224_vm6 = vcmp.eq.s32.totalorder %v3646_v45, %v3011_v63 }
  0x16   : > { %v3728_v11 = vadd.s32 72, %v3641_v40  ;;  %vm562_vm5 = vcmask 7168  }
  0x19   : > { %3520 = vrot.lane.b32.xlu0 %v3519_v8, %s3570_s18 }
  0x1c   : > { %3530 = vrot.lane.b32.xlu1 %v3529_v12, %s3570_s18 }
  0x1d   : > { %3540 = vrot.lane.b32.xlu2 %v3539_v17, %s3570_s18  ;;  %v3748_v17 = vadd.s32 88, %v3641_v40 }
  0x1f   : > { %5519 = vst [vmem:[#allocation2_spill] sm:$0xff] %v3748_v17 }
  0x21   : > { %3545 = vrot.lane.b32.xlu0 %v3544_v18, %s3570_s18 }
  0x24   : > { %3550 = vrot.lane.b32.xlu1 %v3549_v21, %s3570_s18 }
  0x25   : > { %350 = vrot.lane.b32.xlu2 %v171_v22, %s3570_s18 }
  0x29   : > { %514 = vrot.lane.b32.xlu0 %v171_v22, %s3571_s19 }
  0x2c   : > { %516 = vrot.lane.b32.xlu1 %v172_v19, %s3571_s19  ;;  %v3020_v19 = vadd.s32 4294967295, %v3748_v17 }
  0x2d   : > { %518 = vrot.lane.b32.xlu2 %v173_v20, %s3571_s19  ;;  %v3758_v20 = vadd.s32 96, %v3641_v40 }
  0x2e   : > { %vm233_vm13 = vcmp.eq.s32.totalorder %v3646_v45, %v3020_v19 }
  0x2f   : > { %5520 = vst [vmem:[#allocation3_spill] sm:$0xff] %v3758_v20  ;;  %v3761_v21 = vsel %vm233_vm13, 1.0, %v5512_v54  ;;  %v3021_v22 = vadd.s32 4294967295, %v3758_v20 }
  0x31   : > { %520 = vrot.lane.b32.xlu0 %v174_v15, %s3571_s19  ;;  %vm234_vm15 = vcmp.eq.s32.totalorder %v3646_v45, %v3021_v22 }
  0x34   : > { %522 = vrot.lane.b32.xlu1 %v175_v16, %s3571_s19 }
  0x35   : > { %524 = vrot.lane.b32.xlu2 %v176_v13, %s3571_s19  ;;  %v3018_v13 = vadd.s32 4294967295, %v3728_v11 }
  0x37   : > { %vm231_vm11 = vcmp.eq.s32.totalorder %v3646_v45, %v3018_v13 }
  0x38   : > { %v3741_v15 = vsel %vm231_vm11, 1.0, %v5512_v54 }
  0x39   : > { %526 = vrot.lane.b32.xlu0 %v177_v14, %s3571_s19  ;;  %v3738_v14 = vadd.s32 80, %v3641_v40 }
  0x3b   : > { %v3019_v16 = vadd.s32 4294967295, %v3738_v14 }
  0x3c   : > { %528 = vrot.lane.b32.xlu1 %v178_v6, %s3571_s19 }
  0x3d   : > { %530 = vrot.lane.b32.xlu2 %v179_v7, %s3571_s19  ;;  %v3713_v7 = vadd.s32 64, %v3641_v40  ;;  %vm232_vm12 = vcmp.eq.s32.totalorder %v3646_v45, %v3019_v16 }
  0x3e   : > { %v3751_v18 = vsel %vm232_vm12, 1.0, %v5512_v54 }
  0x41   : > { %532 = vrot.lane.b32.xlu0 %v180_v9, %s3571_s19 }
  0x44   : > { %534 = vrot.lane.b32.xlu1 %v181_v10, %s3571_s19  ;;  %v3017_v10 = vadd.s32 4294967295, %v3713_v7 }
  0x45   : > { %536 = vrot.lane.b32.xlu2 %v182_v1, %s3571_s19  ;;  %v3692_v1 = vadd.s32 24, %v3641_v40 }
  0x46   : > { %vm230_vm10 = vcmp.eq.s32.totalorder %v3646_v45, %v3017_v10 }
  0x47   : > { %v3012_v5 = vadd.s32 4294967295, %v3692_v1  ;;  %v3731_v12 = vsel %vm230_vm10, 1.0, %v5512_v54 }
  0x49   : > { %538 = vrot.lane.b32.xlu0 %v183_v2, %s3571_s19  ;;  %v3696_v2 = vadd.s32 56, %v3641_v40  ;;  %vm225_vm8 = vcmp.eq.s32.totalorder %v3646_v45, %v3012_v5 }
  0x4a   : > { %v3716_v8 = vsel %vm225_vm8, 1.0, %v5512_v54  ;;  %vm1201_vm8 = vcmask 261120  }
  0x4b   : > { %v3016_v6 = vadd.s32 4294967295, %v3696_v2 }
  0x4c   : > { %540 = vrot.lane.b32.xlu1 %v184_v3, %s3571_s19  ;;  %v3699_v3 = vsel %vm224_vm6, 1.0, %v5512_v54  ;;  %vm586_vm6 = vcmask 138240  }
  0x4d   : > { %542 = vrot.lane.b32.xlu2 %v185_v4, %s3571_s19  ;;  %vm229_vm9 = vcmp.eq.s32.totalorder %v3646_v45, %v3016_v6 }
  0x4e   : > { %v3719_v9 = vsel %vm229_vm9, 1.0, %v5512_v54  ;;  %vm1553_vm9 = vcmask 523264  }
  0x51   : > { %544 = vrot.lane.b32.xlu0 %v186_v0, %s3571_s19  ;;  %v3015_v0 = vadd.s32 4294967295, %v3676_v60  ;;  %s3574_s19 = smov 32  }
  0x53   : > { %vm228_vm7 = vcmp.eq.s32.totalorder %v3646_v45, %v3015_v0 }
  0x54   : > { %v3702_v4 = vsel %vm228_vm7, 1.0, %v5512_v54  ;;  %vm851_vm7 = vcmask 130048  }
  0x6f   : > { %v3536_v27 = vpop.permute.xlu2 %3535 }
  0x70   : > { %v3537_v35 = vunpack.i.l.bf16 %v3536_v27  ;;  %v3538_v37 = vunpack.i.h.bf16 %v3536_v27 }
  0x77   : > { %v3541_v34 = vpop.permute.xlu2 %3540 }
  0x78   : > { %v3542_v38 = vunpack.i.l.bf16 %v3541_v34  ;;  %v3543_v41 = vunpack.i.h.bf16 %v3541_v34 }
  0x7f   : > { %v351_v53 = vpop.permute.xlu2 %350 }
  0x83   : > { %v381_v23 = vpop.permute.xlu0 %380 }
  0x84   : > { %3057 = vmatpush.msk.msra.mxu0 %vm446_vm0, %v381_v23  ;;  %3473 = vmatpush.msk.msra.mxu3 %vm446_vm0, %v381_v23  ;;  %v581_v23 = vld [vmem:[%s5509_s1 + $0x10] sm:$0x1] }
  0x85   : > { %3074 = vmatpush.msk.msra.mxu1 %vm635_vm14, %v581_v23 }
  0x86   : > { %v3526_v24 = vpop.permute.xlu1 %3525 }
  0x87   : > { %v3527_v30 = vunpack.i.l.bf16 %v3526_v24  ;;  %v3528_v31 = vunpack.i.h.bf16 %v3526_v24  ;;  %v580_v24 = vld [vmem:[%s5509_s1 + $0x8] sm:$0xff]  ;;  %v519_v46 = vpop.permute.xlu2 %518 }
  0x88   : > { %653 = vmatpush.msra.mxu1 %v580_v24 }
  0x8b   : > { %v3521_v25 = vpop.permute.xlu0 %3520 }
  0x8c   : > { %v3522_v26 = vunpack.i.l.bf16 %v3521_v25  ;;  %v3523_v28 = vunpack.i.h.bf16 %v3521_v25  ;;  %v3774_v25 = vadd.s32 104, %v3641_v40 }
  0x8e   : > { %450 = vmatpush.msra.mxu0 %v3522_v26  ;;  %3474 = vmatpush.msra.mxu3 %v3522_v26  ;;  %v3531_v29 = vpop.permute.xlu1 %3530  ;;  %5521 = vst [vmem:[#allocation4_spill] sm:$0xff] %v3774_v25  ;;  %v3777_v26 = vsel %vm234_vm15, 1.0, %v5512_v54  ;;  %v3022_v27 = vadd.s32 4294967295, %v3774_v25 }
  0x8f   : > { %v3532_v32 = vunpack.i.l.bf16 %v3531_v29  ;;  %v3533_v33 = vunpack.i.h.bf16 %v3531_v29  ;;  %v525_v5 = vpop.permute.xlu2 %524 }
  0x90   : > { %451 = vmatpush.msra.mxu0 %v3523_v28  ;;  %3475 = vmatpush.msra.mxu3 %v3523_v28  ;;  %vm235_vm1 = vcmp.eq.s32.totalorder %v3646_v45, %v3022_v27  ;;  %v3784_v28 = vadd.s32 112, %v3641_v40 }
  0x91   : > { %v3787_v29 = vsel %vm235_vm1, 1.0, %v5512_v54 }
  0x92   : > { %452 = vmatpush.msra.mxu0 %v3527_v30  ;;  %3476 = vmatpush.msra.mxu3 %v3527_v30  ;;  %5522 = vst [vmem:[#allocation5_spill] sm:$0xff] %v3784_v28  ;;  %v3023_v30 = vadd.s32 4294967295, %v3784_v28 }
  0x93   : > { %v3546_v39 = vpop.permute.xlu0 %3545 }
  0x94   : > { %453 = vmatpush.msra.mxu0 %v3528_v31  ;;  %3477 = vmatpush.msra.mxu3 %v3528_v31  ;;  %v3547_v42 = vunpack.i.l.bf16 %v3546_v39  ;;  %v3548_v48 = vunpack.i.h.bf16 %v3546_v39  ;;  %vm236_vm2 = vcmp.eq.s32.totalorder %v3646_v45, %v3023_v30  ;;  %v3794_v31 = vadd.s32 120, %v3641_v40 }
  0x96   : > { %454 = vmatpush.msra.mxu0 %v3532_v32  ;;  %3478 = vmatpush.msra.mxu3 %v3532_v32  ;;  %v3551_v43 = vpop.permute.xlu1 %3550  ;;  %5523 = vst [vmem:[#allocation6_spill] sm:$0xff] %v3794_v31  ;;  %v3797_v32 = vsel %vm236_vm2, 1.0, %v5512_v54 }
  0x97   : > { %v3552_v49 = vunpack.i.l.bf16 %v3551_v43  ;;  %v3553_v52 = vunpack.i.h.bf16 %v3551_v43  ;;  %v531_v27 = vpop.permute.xlu2 %530 }
  0x98   : > { %455 = vmatpush.msra.mxu0 %v3533_v33  ;;  %3479 = vmatpush.msra.mxu3 %v3533_v33  ;;  %v3024_v33 = vadd.s32 4294967295, %v3794_v31 }
  0x9a   : > { %456 = vmatpush.msra.mxu0 %v3537_v35  ;;  %3480 = vmatpush.msra.mxu3 %v3537_v35  ;;  %vm237_vm4 = vcmp.eq.s32.totalorder %v3646_v45, %v3024_v33  ;;  %v579_v35 = vld [vmem:[%s5509_s1] sm:$0xff] }
  0x9b   : > { %v3804_v34 = vsel %vm237_vm4, 1.0, %v5512_v54  ;;  %654 = vmatpush.msra.mxu1 %v579_v35  ;;  %v515_v36 = vpop.permute.xlu0 %514 }
  0x9c   : > { %457 = vmatpush.msra.mxu0 %v3538_v37  ;;  %3481 = vmatpush.msra.mxu3 %v3538_v37 }
  0x9e   : > { %458 = vmatpush.msra.mxu0 %v3542_v38  ;;  %3482 = vmatpush.msra.mxu3 %v3542_v38  ;;  %v517_v39 = vpop.permute.xlu1 %516 }
  0xa0   : > { %459 = vmatpush.msra.mxu0 %v3543_v41  ;;  %3483 = vmatpush.msra.mxu3 %v3543_v41 }
  0xa2   : > { %460 = vmatpush.msra.mxu0 %v3547_v42  ;;  %3484 = vmatpush.msra.mxu3 %v3547_v42 }
  0xa4   : > { %461 = vmatpush.msra.mxu0 %v3548_v48  ;;  %3485 = vmatpush.msra.mxu3 %v3548_v48 }
  0xa6   : > { %462 = vmatpush.msra.mxu0 %v3552_v49  ;;  %3486 = vmatpush.msra.mxu3 %v3552_v49  ;;  %v523_v63 = vpop.permute.xlu1 %522 }
  0xa8   : > { %463 = vmatpush.msra.mxu0 %v3553_v52  ;;  %3487 = vmatpush.msra.mxu3 %v3553_v52  ;;  %v521_v52 = vpop.permute.xlu0 %520 }
  0xaa   : > { %464 = vmatpush.msra.mxu0 %v351_v53  ;;  %3488 = vmatpush.msra.mxu3 %v351_v53 }
  0xab   : > { %3058 = vmatmul.msk.f32.vlgmr.msra.gmra.mxu0 %vm397_vm3, %v3659_v55  ;;  %3062 = vmatmul.msk.f32.vlgmr.msra.gmra.mxu3 %vm397_vm3, %v3662_v56 }
  0xae   : > { %v529_v22 = vpop.permute.xlu1 %528 }
  0xb0   : > { %v527_v13 = vpop.permute.xlu0 %526 }
  0xb3   : > { %3059 = vmatmul.msk.f32.gmra.mxu0 %vm397_vm3, %v3679_v61  ;;  %3063 = vmatmul.msk.f32.gmra.mxu3 %vm397_vm3, %v3682_v62 }
  0xb8   : > { %v533_v35 = vpop.permute.xlu0 %532 }
  0xbb   : > { %3060 = vmatmul.msk.f32.gmra.mxu0 %vm397_vm3, %v3699_v3  ;;  %3064 = vmatmul.msk.f32.gmra.mxu3 %vm397_vm3, %v3702_v4 }
  0xc3   : > { %3061 = vmatmul.msk.f32.gmra.mxu0 %vm397_vm3, %v3716_v8  ;;  %3065 = vmatmul.msk.f32.gmra.mxu3 %vm397_vm3, %v3719_v9 }
  0xcb   : > { %3066 = vmatmul.msk.f32.gmra.mxu3 %vm397_vm3, %v3731_v12 }
  0xd3   : > { %3067 = vmatmul.msk.f32.gmra.mxu3 %vm397_vm3, %v3741_v15 }
  0xdb   : > { %3068 = vmatmul.msk.f32.gmra.mxu3 %vm397_vm3, %v3751_v18 }
  0xe3   : > { %3069 = vmatmul.msk.f32.gmra.mxu3 %vm397_vm3, %v3761_v21 }
  0xeb   : > { %3070 = vmatmul.msk.f32.gmra.mxu3 %vm397_vm3, %v3777_v26 }
  0xf3   : > { %3071 = vmatmul.msk.f32.gmra.mxu3 %vm397_vm3, %v3787_v29 }
  0xfb   : > { %3072 = vmatmul.msk.f32.gmra.mxu3 %vm397_vm3, %v3797_v32 }
 0x103   : > { %3073 = vmatmul.msk.f32.gmra.mxu3 %vm397_vm3, %v3804_v34 }
 0x128   : > { %v466_v37 = vpop.f32.mrf.mxu0 }
 0x129   : > { %v563_v38 = vsel %vm562_vm5, %v466_v37, %v515_v36  ;;  %v535_v37 = vpop.permute.xlu1 %534 }
 0x12a   : > { %3075 = vmatmul.msk.f32.vlgmr.msra.gmra.mxu1 %vm586_vm6, %v563_v38 }
 0x12e   : > { %v478_v41 = vpop.f32.mrf.mxu3 }
 0x12f   : > { %v567_v0 = vsel %vm562_vm5, %v478_v41, %v523_v63  ;;  %v537_v41 = vpop.permute.xlu2 %536 }
 0x130   : > { %v469_v42 = vpop.f32.mrf.mxu0 }
 0x131   : > { %v564_v43 = vsel %vm562_vm5, %v469_v42, %v517_v39 }
 0x132   : > { %3076 = vmatmul.msk.f32.gmra.mxu1 %vm586_vm6, %v564_v43 }
 0x136   : > { %v481_v48 = vpop.f32.mrf.mxu3 }
 0x137   : > { %v568_v10 = vsel %vm562_vm5, %v481_v48, %v525_v5 }
 0x138   : > { %v472_v47 = vpop.f32.mrf.mxu0 }
 0x139   : > { %v565_v49 = vsel %vm562_vm5, %v472_v47, %v519_v46  ;;  %v539_v46 = vpop.permute.xlu0 %538 }
 0x13a   : > { %3077 = vmatmul.msk.f32.gmra.mxu1 %vm586_vm6, %v565_v49  ;;  %v541_v49 = vpop.permute.xlu1 %540 }
 0x13e   : > { %v484_v58 = vpop.f32.mrf.mxu3 }
 0x13f   : > { %v569_v19 = vsel %vm562_vm5, %v484_v58, %v527_v13 }
 0x140   : > { %v475_v53 = vpop.f32.mrf.mxu0 }
 0x141   : > { %v566_v57 = vsel %vm562_vm5, %v475_v53, %v521_v52  ;;  %v545_v63 = vpop.permute.xlu0 %544 }
 0x142   : > { %3078 = vmatmul.msk.f32.gmra.mxu1 %vm586_vm6, %v566_v57  ;;  %v543_v57 = vpop.permute.xlu2 %542 }
 0x146   : > { %v487_v6 = vpop.f32.mrf.mxu3 }
 0x147   : > { %v570_v23 = vsel %vm562_vm5, %v487_v6, %v529_v22 }
 0x14a   : > { %3079 = vmatmul.msk.f32.gmra.mxu1 %vm586_vm6, %v567_v0 }
 0x14e   : > { %v490_v16 = vpop.f32.mrf.mxu3 }
 0x14f   : > { %v571_v30 = vsel %vm562_vm5, %v490_v16, %v531_v27 }
 0x152   : > { %3080 = vmatmul.msk.f32.gmra.mxu1 %vm586_vm6, %v568_v10 }
 0x156   : > { %v493_v24 = vpop.f32.mrf.mxu3 }
 0x157   : > { %v572_v36 = vsel %vm562_vm5, %v493_v24, %v533_v35 }
 0x15a   : > { %3081 = vmatmul.msk.f32.gmra.mxu1 %vm586_vm6, %v569_v19 }
 0x15e   : > { %v496_v33 = vpop.f32.mrf.mxu3 }
 0x15f   : > { %v573_v39 = vsel %vm562_vm5, %v496_v33, %v535_v37  ;;  %v3554_v33 = vld [vmem:[%s5510_s2] ss:$0 sm:$0xff] }
 0x162   : > { %3082 = vmatmul.msk.f32.gmra.mxu1 %vm586_vm6, %v570_v23 }
 0x166   : > { %v499_v38 = vpop.f32.mrf.mxu3 }
 0x167   : > { %v574_v43 = vsel %vm562_vm5, %v499_v38, %v537_v41 }
 0x16a   : > { %3083 = vmatmul.msk.f32.gmra.mxu1 %vm586_vm6, %v571_v30 }
 0x16e   : > { %v502_v42 = vpop.f32.mrf.mxu3 }
 0x16f   : > { %v575_v47 = vsel %vm562_vm5, %v502_v42, %v539_v46 }
 0x172   : > { %3084 = vmatmul.msk.f32.gmra.mxu1 %vm586_vm6, %v572_v36 }
 0x176   : > { %v505_v48 = vpop.f32.mrf.mxu3 }
 0x177   : > { %v576_v52 = vsel %vm562_vm5, %v505_v48, %v541_v49 }
 0x17a   : > { %3085 = vmatmul.msk.f32.gmra.mxu1 %vm586_vm6, %v573_v39 }
 0x17e   : > { %v508_v53 = vpop.f32.mrf.mxu3 }
 0x17f   : > { %v577_v58 = vsel %vm562_vm5, %v508_v53, %v543_v57 }
 0x182   : > { %3086 = vmatmul.msk.f32.gmra.mxu1 %vm586_vm6, %v574_v43 }
 0x186   : > { %v511_v0 = vpop.f32.mrf.mxu3 }
 0x187   : > { %v578_v5 = vsel %vm562_vm5, %v511_v0, %v545_v63 }
 0x18a   : > { %3087 = vmatmul.msk.f32.gmra.mxu1 %vm586_vm6, %v575_v47 }
 0x192   : > { %3088 = vmatmul.msk.f32.gmra.mxu1 %vm586_vm6, %v576_v52 }
 0x19a   : > { %3089 = vmatmul.msk.f32.gmra.mxu1 %vm586_vm6, %v577_v58 }
 0x1a2   : > { %3090 = vmatmul.msk.f32.gmra.mxu1 %vm586_vm6, %v578_v5 }
 0x1a7   : > { %v3843_v6 = vpop.f32.mrf.mxu1 }
 0x1af   : > { %v659_v10 = vpop.f32.mrf.mxu1 }
 0x1b7   : > { %v662_v13 = vpop.f32.mrf.mxu1 }
 0x1bf   : > { %v665_v16 = vpop.f32.mrf.mxu1 }
 0x1c7   : > { %v668_v19 = vpop.f32.mrf.mxu1 }
 0x1c8   : > { %v669_v0 = vadd.f32 %v3554_v33, %v668_v19 }
 0x1cf   : > { %v671_v22 = vpop.f32.mrf.mxu1 }
 0x1d7   : > { %v674_v23 = vpop.f32.mrf.mxu1 }
 0x1d8   : > { %v675_v19 = vadd.f32 %v3554_v33, %v674_v23 }
 0x1df   : > { %v677_v24 = vpop.f32.mrf.mxu1 }
 0x1e0   : > { %v678_v52 = vadd.f32 %v3554_v33, %v677_v24  ;;  %v660_v24 = vadd.f32 %v3554_v33, %v659_v10  ;;  %v666_v10 = vadd.f32 %v3554_v33, %v665_v16  ;;  %v3125_v16 = vld [vmem:[%s5509_s1 + $0x188] sm:$0xff] }
 0x1e1   : > { %1003 = vmatpush.msrb.mxu1 %v3125_v16  ;;  %v3111_v16 = vld [vmem:[%s5509_s1 + $0x118] sm:$0xff] }
 0x1e2   : > { %v711_v58 = vmax.f32 %v678_v52, 0.0 }
 0x1e7   : > { %v680_v27 = vpop.f32.mrf.mxu1 }
 0x1e8   : > { %v681_v5 = vadd.f32 %v3554_v33, %v680_v27  ;;  %v663_v27 = vadd.f32 %v3554_v33, %v662_v13 }
 0x1ef   : > { %v683_v30 = vpop.f32.mrf.mxu1 }
 0x1f7   : > { %v686_v35 = vpop.f32.mrf.mxu1 }
 0x1f8   : > { %v687_v36 = vadd.f32 %v3554_v33, %v686_v35 }
 0x1fa   : > { %v714_v37 = vmax.f32 %v687_v36, 0.0 }
 0x1fc   : > { %756 = vrot.lane.b32.xlu0 %v714_v37, %s3573_s28  ;;  %v708_v37 = vmax.f32 %v669_v0, 0.0 }
 0x1ff   : > { %v689_v38 = vpop.f32.mrf.mxu1 }
 0x200   : > { %v690_v39 = vadd.f32 %v3554_v33, %v689_v38 }
 0x202   : > { %v715_v41 = vmax.f32 %v690_v39, 0.0  ;;  %v712_v39 = vmax.f32 %v681_v5, 0.0 }
 0x204   : > { %758 = vrot.lane.b32.xlu2 %v715_v41, %s3573_s28  ;;  %v684_v41 = vadd.f32 %v3554_v33, %v683_v30  ;;  %v707_v30 = vmax.f32 %v666_v10, 0.0  ;;  %v3115_v10 = vld [vmem:[%s5509_s1 + $0x138] sm:$0xff] }
 0x207   : > { %v692_v42 = vpop.f32.mrf.mxu1 }
 0x208   : > { %v693_v43 = vadd.f32 %v3554_v33, %v692_v42  ;;  %v672_v42 = vadd.f32 %v3554_v33, %v671_v22  ;;  %v657_v22 = vadd.f32 %v3554_v33, %v3843_v6 }
 0x20a   : > { %v716_v46 = vmax.f32 %v693_v43, 0.0  ;;  %v705_v43 = vmax.f32 %v660_v24, 0.0  ;;  %v704_v52 = vmax.f32 %v657_v22, 0.0  ;;  %v3113_v22 = vld [vmem:[%s5509_s1 + $0x128] sm:$0xff] }
 0x20c   : > { %760 = vrot.lane.b32.xlu1 %v716_v46, %s3573_s28  ;;  %v713_v46 = vmax.f32 %v684_v41, 0.0 }
 0x20f   : > { %v695_v47 = vpop.f32.mrf.mxu1 }
 0x210   : > { %v696_v48 = vadd.f32 %v3554_v33, %v695_v47  ;;  %v709_v47 = vmax.f32 %v672_v42, 0.0  ;;  %v3123_v42 = vld [vmem:[%s5509_s1 + $0x178] sm:$0xff] }
 0x211   : > { %924 = vmatpush.msrb.mxu3 %v3123_v42  ;;  %v3109_v42 = vld [vmem:[%s5509_s1 + $0x108] sm:$0xff] }
 0x212   : > { %v717_v49 = vmax.f32 %v696_v48, 0.0  ;;  %v710_v48 = vmax.f32 %v675_v19, 0.0  ;;  %v3119_v19 = vld [vmem:[%s5509_s1 + $0x158] sm:$0xff] }
 0x214   : > { %762 = vrot.lane.b32.xlu0 %v717_v49, %s3573_s28  ;;  %v706_v49 = vmax.f32 %v663_v27, 0.0  ;;  %v3118_v27 = vld [vmem:[%s5509_s1 + $0x150] sm:$0xff] }
 0x217   : > { %v698_v53 = vpop.f32.mrf.mxu1 }
 0x218   : > { %v699_v57 = vadd.f32 %v3554_v33, %v698_v53 }
 0x21a   : > { %v718_v63 = vmax.f32 %v699_v57, 0.0 }
 0x21c   : > { %750 = vrot.lane.b32.xlu0 %v711_v58, %s3573_s28  ;;  %764 = vrot.lane.b32.xlu2 %v718_v63, %s3573_s28  ;;  %v3124_v58 = vld [vmem:[%s5509_s1 + $0x180] sm:$0xff] }
 0x21d   : > { %1004 = vmatpush.msrb.mxu1 %v3124_v58  ;;  %v3110_v58 = vld [vmem:[%s5509_s1 + $0x110] sm:$0xff] }
 0x21f   : > { %v701_v35 = vpop.f32.mrf.mxu1 }
 0x220   : > { %v702_v36 = vadd.f32 %v3554_v33, %v701_v35 }
 0x222   : > { %v719_v38 = vmax.f32 %v702_v36, 0.0 }
 0x224   : > { %744 = vrot.lane.b32.xlu0 %v708_v37, %s3573_s28  ;;  %766 = vrot.lane.b32.xlu1 %v719_v38, %s3573_s28 }
 0x225   : > { %752 = vrot.lane.b32.xlu2 %v712_v39, %s3573_s28 }
 0x22c   : > { %738 = vrot.lane.b32.xlu0 %v705_v43, %s3573_s28  ;;  %754 = vrot.lane.b32.xlu1 %v713_v46, %s3573_s28  ;;  %v3122_v43 = vld [vmem:[%s5509_s1 + $0x170] sm:$0xff]  ;;  %v3121_v46 = vld [vmem:[%s5509_s1 + $0x168] sm:$0xff] }
 0x22d   : > { %746 = vrot.lane.b32.xlu2 %v709_v47, %s3573_s28  ;;  %925 = vmatpush.msrb.mxu3 %v3122_v43  ;;  %v3120_v47 = vld [vmem:[%s5509_s1 + $0x160] sm:$0xff] }
 0x22e   : > { %v3108_v43 = vld [vmem:[%s5509_s1 + $0x100] sm:$0xff] }
 0x22f   : > { %926 = vmatpush.msrb.mxu3 %v3121_v46 }
 0x231   : > { %927 = vmatpush.msrb.mxu3 %v3120_v47 }
 0x233   : > { %928 = vmatpush.msrb.mxu3 %v3119_v19 }
 0x234   : > { %748 = vrot.lane.b32.xlu1 %v710_v48, %s3573_s28  ;;  %v3117_v48 = vld [vmem:[%s5509_s1 + $0x148] sm:$0xff] }
 0x235   : > { %740 = vrot.lane.b32.xlu2 %v706_v49, %s3573_s28  ;;  %929 = vmatpush.msrb.mxu3 %v3118_v27  ;;  %v3116_v49 = vld [vmem:[%s5509_s1 + $0x140] sm:$0xff] }
 0x237   : > { %930 = vmatpush.msrb.mxu3 %v3117_v48 }
 0x239   : > { %931 = vmatpush.msrb.mxu3 %v3116_v49 }
 0x23b   : > { %932 = vmatpush.msrb.mxu3 %v3115_v10 }
 0x23c   : > { %742 = vrot.lane.b32.xlu1 %v707_v30, %s3573_s28  ;;  %v3114_v30 = vld [vmem:[%s5509_s1 + $0x130] sm:$0xff] }
 0x23d   : > { %933 = vmatpush.msrb.mxu3 %v3114_v30 }
 0x23f   : > { %934 = vmatpush.msrb.mxu3 %v3113_v22 }
 0x244   : > { %736 = vrot.lane.b32.xlu1 %v704_v52, %s3573_s28  ;;  %v3112_v52 = vld [vmem:[%s5509_s1 + $0x120] sm:$0xff] }
 0x245   : > { %935 = vmatpush.msrb.mxu3 %v3112_v52 }
 0x247   : > { %936 = vmatpush.msrb.mxu3 %v3111_v16 }
 0x249   : > { %937 = vmatpush.msrb.mxu3 %v3110_v58 }
 0x24b   : > { %938 = vmatpush.msrb.mxu3 %v3109_v42 }
 0x24d   : > { %939 = vmatpush.msrb.mxu3 %v3108_v43 }
 0x25e   : > { %v3865_v53 = vpop.permute.xlu2 %758 }
 0x26e   : > { %v3867_v57 = vpop.permute.xlu0 %756 }
 0x276   : > { %v3871_v23 = vpop.permute.xlu2 %764 }
 0x27e   : > { %v3869_v13 = vpop.permute.xlu1 %760 }
 0x27f   : > { %v3891_v63 = vpop.permute.xlu2 %752 }
 0x286   : > { %v3879_v6 = vpop.permute.xlu0 %762 }
 0x287   : > { %v3907_v35 = vpop.permute.xlu2 %746 }
 0x28e   : > { %v3895_v0 = vpop.permute.xlu0 %750 }
 0x28f   : > { %v3925_v39 = vpop.permute.xlu2 %740 }
 0x296   : > { %v3881_v33 = vpop.permute.xlu1 %766  ;;  %v3913_v37 = vpop.permute.xlu0 %744 }
 0x297   : > { %3091 = vmatpush.msk.msrb.mxu0 %vm446_vm0, %v3881_v33  ;;  %3489 = vmatpush.msk.msra.mxu2 %vm446_vm0, %v3881_v33 }
 0x299   : > { %786 = vmatpush.msrb.mxu0 %v3871_v23  ;;  %3490 = vmatpush.msra.mxu2 %v3871_v23 }
 0x29b   : > { %787 = vmatpush.msrb.mxu0 %v3879_v6  ;;  %3491 = vmatpush.msra.mxu2 %v3879_v6 }
 0x29d   : > { %788 = vmatpush.msrb.mxu0 %v3869_v13  ;;  %3492 = vmatpush.msra.mxu2 %v3869_v13 }
 0x29e   : > { %v3897_v5 = vpop.permute.xlu1 %754  ;;  %v3929_v24 = vpop.permute.xlu0 %738 }
 0x29f   : > { %789 = vmatpush.msrb.mxu0 %v3865_v53  ;;  %3493 = vmatpush.msra.mxu2 %v3865_v53 }
 0x2a1   : > { %790 = vmatpush.msrb.mxu0 %v3867_v57  ;;  %3494 = vmatpush.msra.mxu2 %v3867_v57 }
 0x2a3   : > { %791 = vmatpush.msrb.mxu0 %v3897_v5  ;;  %3495 = vmatpush.msra.mxu2 %v3897_v5 }
 0x2a5   : > { %792 = vmatpush.msrb.mxu0 %v3891_v63  ;;  %3496 = vmatpush.msra.mxu2 %v3891_v63 }
 0x2a6   : > { %v3909_v36 = vpop.permute.xlu1 %748 }
 0x2a7   : > { %793 = vmatpush.msrb.mxu0 %v3895_v0  ;;  %3497 = vmatpush.msra.mxu2 %v3895_v0 }
 0x2a9   : > { %794 = vmatpush.msrb.mxu0 %v3909_v36  ;;  %3498 = vmatpush.msra.mxu2 %v3909_v36 }
 0x2ab   : > { %795 = vmatpush.msrb.mxu0 %v3907_v35  ;;  %3499 = vmatpush.msra.mxu2 %v3907_v35 }
 0x2ad   : > { %796 = vmatpush.msrb.mxu0 %v3913_v37  ;;  %3500 = vmatpush.msra.mxu2 %v3913_v37 }
 0x2ae   : > { %v3921_v38 = vpop.permute.xlu1 %742 }
 0x2af   : > { %797 = vmatpush.msrb.mxu0 %v3921_v38  ;;  %3501 = vmatpush.msra.mxu2 %v3921_v38 }
 0x2b1   : > { %798 = vmatpush.msrb.mxu0 %v3925_v39  ;;  %3502 = vmatpush.msra.mxu2 %v3925_v39 }
 0x2b3   : > { %799 = vmatpush.msrb.mxu0 %v3929_v24  ;;  %3503 = vmatpush.msra.mxu2 %v3929_v24 }
 0x2b6   : > { %v3933_v41 = vpop.permute.xlu1 %736 }
 0x2b7   : > { %800 = vmatpush.msrb.mxu0 %v3933_v41  ;;  %3504 = vmatpush.msra.mxu2 %v3933_v41 }
 0x2b8   : > { %3127 = vmatmul.msk.f32.vlgmr.msrb.gmra.mxu1 %vm851_vm7, %v3933_v41  ;;  %3092 = vmatmul.msk.f32.vlgmr.msrb.gmra.mxu0 %vm397_vm3, %v3659_v55 }
 0x2b9   : > { %3096 = vmatmul.msk.f32.vlgmr.msra.gmra.mxu2 %vm397_vm3, %v3662_v56 }
 0x2c0   : > { %3128 = vmatmul.msk.f32.gmra.mxu1 %vm851_vm7, %v3929_v24  ;;  %3093 = vmatmul.msk.f32.gmra.mxu0 %vm397_vm3, %v3679_v61 }
 0x2c1   : > { %3097 = vmatmul.msk.f32.gmra.mxu2 %vm397_vm3, %v3682_v62 }
 0x2c8   : > { %3129 = vmatmul.msk.f32.gmra.mxu1 %vm851_vm7, %v3925_v39  ;;  %3094 = vmatmul.msk.f32.gmra.mxu0 %vm397_vm3, %v3699_v3 }
 0x2c9   : > { %3098 = vmatmul.msk.f32.gmra.mxu2 %vm397_vm3, %v3702_v4 }
 0x2d0   : > { %3130 = vmatmul.msk.f32.gmra.mxu1 %vm851_vm7, %v3921_v38  ;;  %3095 = vmatmul.msk.f32.gmra.mxu0 %vm397_vm3, %v3716_v8 }
 0x2d1   : > { %3099 = vmatmul.msk.f32.gmra.mxu2 %vm397_vm3, %v3719_v9 }
 0x2d8   : > { %3131 = vmatmul.msk.f32.gmra.mxu1 %vm851_vm7, %v3913_v37 }
 0x2d9   : > { %3100 = vmatmul.msk.f32.gmra.mxu2 %vm397_vm3, %v3731_v12 }
 0x2e0   : > { %3132 = vmatmul.msk.f32.gmra.mxu1 %vm851_vm7, %v3907_v35 }
 0x2e1   : > { %3101 = vmatmul.msk.f32.gmra.mxu2 %vm397_vm3, %v3741_v15 }
 0x2e8   : > { %3133 = vmatmul.msk.f32.gmra.mxu1 %vm851_vm7, %v3909_v36 }
 0x2e9   : > { %3102 = vmatmul.msk.f32.gmra.mxu2 %vm397_vm3, %v3751_v18 }
 0x2f0   : > { %3134 = vmatmul.msk.f32.gmra.mxu1 %vm851_vm7, %v3895_v0 }
 0x2f1   : > { %3103 = vmatmul.msk.f32.gmra.mxu2 %vm397_vm3, %v3761_v21 }
 0x2f8   : > { %3135 = vmatmul.msk.f32.gmra.mxu1 %vm851_vm7, %v3891_v63 }
 0x2f9   : > { %3104 = vmatmul.msk.f32.gmra.mxu2 %vm397_vm3, %v3777_v26 }
 0x300   : > { %3136 = vmatmul.msk.f32.gmra.mxu1 %vm851_vm7, %v3897_v5 }
 0x301   : > { %3105 = vmatmul.msk.f32.gmra.mxu2 %vm397_vm3, %v3787_v29 }
 0x308   : > { %3137 = vmatmul.msk.f32.gmra.mxu1 %vm851_vm7, %v3867_v57 }
 0x309   : > { %3106 = vmatmul.msk.f32.gmra.mxu2 %vm397_vm3, %v3797_v32 }
 0x310   : > { %3138 = vmatmul.msk.f32.gmra.mxu1 %vm851_vm7, %v3865_v53 }
 0x311   : > { %3107 = vmatmul.msk.f32.gmra.mxu2 %vm397_vm3, %v3804_v34 }
 0x318   : > { %3139 = vmatmul.msk.f32.gmra.mxu1 %vm851_vm7, %v3869_v13 }
 0x320   : > { %3140 = vmatmul.msk.f32.gmra.mxu1 %vm851_vm7, %v3879_v6 }
 0x328   : > { %3141 = vmatmul.msk.f32.gmra.mxu1 %vm851_vm7, %v3871_v23 }
 0x330   : > { %3142 = vmatmul.msk.f32.gmra.mxu1 %vm851_vm7, %v3881_v33 }
 0x335   : > { %v802_v46 = vpop.f32.mrf.mxu0 }
 0x336   : > { %v852_v47 = vsel %vm851_vm7, %v802_v46, %v3933_v41 }
 0x337   : > { %940 = vmatmul.f32.vlgmr.msrb.gmra.mxu3 %v852_v47 }
 0x33c   : > { %v814_v19 = vpop.f32.mrf.mxu2 }
 0x33d   : > { %v805_v27 = vpop.f32.mrf.mxu0  ;;  %v856_v41 = vsel %vm851_vm7, %v814_v19, %v3913_v37 }
 0x33e   : > { %v853_v48 = vsel %vm851_vm7, %v805_v27, %v3929_v24 }
 0x33f   : > { %943 = vmatmul.f32.gmra.mxu3 %v853_v48  ;;  %v4075_v48 = vpop.f32.mrf.mxu1 }
 0x344   : > { %v817_v30 = vpop.f32.mrf.mxu2 }
 0x345   : > { %v808_v49 = vpop.f32.mrf.mxu0  ;;  %v857_v24 = vsel %vm851_vm7, %v817_v30, %v3907_v35 }
 0x346   : > { %v854_v10 = vsel %vm851_vm7, %v808_v49, %v3925_v39 }
 0x347   : > { %946 = vmatmul.f32.gmra.mxu3 %v854_v10  ;;  %v4081_v10 = vpop.f32.mrf.mxu1 }
 0x34c   : > { %v820_v16 = vpop.f32.mrf.mxu2 }
 0x34d   : > { %v811_v22 = vpop.f32.mrf.mxu0  ;;  %v858_v39 = vsel %vm851_vm7, %v820_v16, %v3909_v36 }
 0x34e   : > { %v855_v52 = vsel %vm851_vm7, %v811_v22, %v3921_v38 }
 0x34f   : > { %949 = vmatmul.f32.gmra.mxu3 %v855_v52 }
 0x354   : > { %v823_v58 = vpop.f32.mrf.mxu2 }
 0x355   : > { %v859_v43 = vsel %vm851_vm7, %v823_v58, %v3895_v0 }
 0x357   : > { %952 = vmatmul.f32.gmra.mxu3 %v856_v41 }
 0x35c   : > { %v826_v42 = vpop.f32.mrf.mxu2 }
 0x35d   : > { %v860_v46 = vsel %vm851_vm7, %v826_v42, %v3891_v63 }
 0x35f   : > { %955 = vmatmul.f32.gmra.mxu3 %v857_v24 }
 0x364   : > { %v829_v38 = vpop.f32.mrf.mxu2 }
 0x365   : > { %v861_v47 = vsel %vm851_vm7, %v829_v38, %v3897_v5 }
 0x367   : > { %958 = vmatmul.f32.gmra.mxu3 %v858_v39 }
 0x36c   : > { %v832_v37 = vpop.f32.mrf.mxu2 }
 0x36d   : > { %v862_v19 = vsel %vm851_vm7, %v832_v37, %v3867_v57 }
 0x36f   : > { %961 = vmatmul.f32.gmra.mxu3 %v859_v43 }
 0x374   : > { %v835_v35 = vpop.f32.mrf.mxu2 }
 0x375   : > { %v863_v0 = vsel %vm851_vm7, %v835_v35, %v3865_v53 }
 0x377   : > { %964 = vmatmul.f32.gmra.mxu3 %v860_v46 }
 0x37c   : > { %v838_v36 = vpop.f32.mrf.mxu2 }
 0x37d   : > { %v864_v27 = vsel %vm851_vm7, %v838_v36, %v3869_v13  ;;  %v4085_v13 = vpop.f32.mrf.mxu1  ;;  %v4106_v36 = vld [vmem:[%s5510_s2 + $0x1] ss:$0 sm:$0xff] }
 0x37f   : > { %967 = vmatmul.f32.gmra.mxu3 %v861_v47 }
 0x384   : > { %v841_v63 = vpop.f32.mrf.mxu2 }
 0x385   : > { %v865_v5 = vsel %vm851_vm7, %v841_v63, %v3879_v6  ;;  %v4089_v52 = vpop.f32.mrf.mxu1 }
 0x387   : > { %970 = vmatmul.f32.gmra.mxu3 %v862_v19 }
 0x38c   : > { %v844_v49 = vpop.f32.mrf.mxu2 }
 0x38d   : > { %v866_v57 = vsel %vm851_vm7, %v844_v49, %v3871_v23  ;;  %v1018_v16 = vpop.f32.mrf.mxu1 }
 0x38f   : > { %973 = vmatmul.f32.gmra.mxu3 %v863_v0 }
 0x394   : > { %v847_v53 = vpop.f32.mrf.mxu2 }
 0x395   : > { %v867_v30 = vsel %vm851_vm7, %v847_v53, %v3881_v33  ;;  %v4095_v23 = vpop.f32.mrf.mxu1 }
 0x397   : > { %976 = vmatmul.f32.gmra.mxu3 %v864_v27 }
 0x39d   : > { %v4099_v24 = vpop.f32.mrf.mxu1 }
 0x39f   : > { %979 = vmatmul.f32.gmra.mxu3 %v865_v5 }
 0x3a5   : > { %v1027_v39 = vpop.f32.mrf.mxu1 }
 0x3a7   : > { %982 = vmatmul.f32.gmra.mxu3 %v866_v57 }
 0x3ad   : > { %v1030_v38 = vpop.f32.mrf.mxu1 }
 0x3af   : > { %985 = vmatmul.f32.gmra.mxu3 %v867_v30 }
 0x3b5   : > { %v1033_v37 = vpop.f32.mrf.mxu1 }
 0x3ba   : > { %v4087_v22 = vpop.f32.mrf.mxu3 }
 0x3bd   : > { %v1036_v35 = vpop.f32.mrf.mxu1 }
 0x3c2   : > { %v4091_v6 = vpop.f32.mrf.mxu3 }
 0x3c5   : > { %v1039_v63 = vpop.f32.mrf.mxu1 }
 0x3ca   : > { %v4093_v41 = vpop.f32.mrf.mxu3 }
 0x3cd   : > { %v1042_v54 = vpop.f32.mrf.mxu1 }
 0x3d2   : > { %v4097_v58 = vpop.f32.mrf.mxu3 }
 0x3da   : > { %v953_v42 = vpop.f32.mrf.mxu3 }
 0x3e2   : > { %v956_v33 = vpop.f32.mrf.mxu3 }
 0x3ea   : > { %v4101_v43 = vpop.f32.mrf.mxu3 }
 0x3f2   : > { %v962_v46 = vpop.f32.mrf.mxu3 }
 0x3fa   : > { %v965_v47 = vpop.f32.mrf.mxu3 }
 0x402   : > { %v968_v19 = vpop.f32.mrf.mxu3 }
 0x40a   : > { %v971_v0 = vpop.f32.mrf.mxu3 }
 0x40b   : > { %v972_v27 = vadd.f32 %v4106_v36, %v971_v0  ;;  %v1045_v0 = vpop.f32.mrf.mxu1 }
 0x40d   : > { %v1037_v5 = vadd.f32 %v1036_v35, %v972_v27 }
 0x40f   : > { %v1064_v49 = vmax.f32 %v1037_v5, 0.0 }
 0x411   : > { %1106 = vrot.lane.b32.xlu1 %v1064_v49, %s3574_s19  ;;  %v963_v49 = vadd.f32 %v4106_v36, %v962_v46 }
 0x412   : > { %v974_v57 = vpop.f32.mrf.mxu3 }
 0x413   : > { %v975_v53 = vadd.f32 %v4106_v36, %v974_v57 }
 0x415   : > { %v1040_v30 = vadd.f32 %v1039_v63, %v975_v53  ;;  %v1048_v63 = vpop.f32.mrf.mxu1 }
 0x417   : > { %v1065_v31 = vmax.f32 %v1040_v30, 0.0 }
 0x419   : > { %1108 = vrot.lane.b32.xlu0 %v1065_v31, %s3574_s19  ;;  %v1028_v31 = vadd.f32 %v1027_v39, %v963_v49  ;;  %v957_v49 = vadd.f32 %v4106_v36, %v956_v33  ;;  %v948_v33 = vadd.f32 %v4106_v36, %v4093_v41 }
 0x41a   : > { %v977_v28 = vpop.f32.mrf.mxu3 }
 0x41b   : > { %v978_v25 = vadd.f32 %v4106_v36, %v977_v28 }
 0x41d   : > { %v1043_v20 = vadd.f32 %v1042_v54, %v978_v25  ;;  %v966_v54 = vadd.f32 %v4106_v36, %v965_v47  ;;  %v1061_v25 = vmax.f32 %v1028_v31, 0.0 }
 0x41f   : > { %v1066_v17 = vmax.f32 %v1043_v20, 0.0 }
 0x421   : > { %1110 = vrot.lane.b32.xlu2 %v1066_v17, %s3574_s19  ;;  %v954_v17 = vadd.f32 %v4106_v36, %v953_v42  ;;  %v945_v42 = vadd.f32 %v4106_v36, %v4091_v6 }
 0x422   : > { %v980_v35 = vpop.f32.mrf.mxu3 }
 0x423   : > { %v981_v27 = vadd.f32 %v4106_v36, %v980_v35  ;;  %v1010_v31 = vadd.f32 %v4081_v10, %v945_v42  ;;  %v951_v10 = vadd.f32 %v4106_v36, %v4097_v58 }
 0x425   : > { %v1046_v5 = vadd.f32 %v1045_v0, %v981_v27  ;;  %v1031_v0 = vadd.f32 %v1030_v38, %v966_v54  ;;  %v1051_v27 = vpop.f32.mrf.mxu1  ;;  %v1022_v38 = vadd.f32 %v4095_v23, %v957_v49  ;;  %v1013_v23 = vadd.f32 %v4085_v13, %v948_v33  ;;  %v3174_v33 = vld [vmem:[%s5509_s1 + $0x270] sm:$0xff] }
 0x427   : > { %v1067_v57 = vmax.f32 %v1046_v5, 0.0  ;;  %v1019_v5 = vadd.f32 %v1018_v16, %v954_v17  ;;  %v1059_v6 = vmax.f32 %v1022_v38, 0.0  ;;  %v1056_v54 = vmax.f32 %v1013_v23, 0.0  ;;  %v3179_v17 = vld [vmem:[%s5509_s1 + $0x298] sm:$0xff]  ;;  %v3169_v23 = vld [vmem:[%s5509_s1 + $0x248] sm:$0xff] }
 0x428   : > { %1353 = vmatpush.msra.mxu3 %v3179_v17 }
 0x429   : > { %1112 = vrot.lane.b32.xlu1 %v1067_v57, %s3574_s19  ;;  %v969_v57 = vadd.f32 %v4106_v36, %v968_v19  ;;  %v960_v19 = vadd.f32 %v4106_v36, %v4101_v43  ;;  %v1016_v43 = vadd.f32 %v4089_v52, %v951_v10  ;;  %v3178_v52 = vld [vmem:[%s5509_s1 + $0x290] sm:$0xff]  ;;  %v3167_v10 = vld [vmem:[%s5509_s1 + $0x238] sm:$0xff] }
 0x42a   : > { %v983_v53 = vpop.f32.mrf.mxu3  ;;  %1354 = vmatpush.msra.mxu3 %v3178_v52 }
 0x42b   : > { %v984_v30 = vadd.f32 %v4106_v36, %v983_v53  ;;  %v1058_v53 = vmax.f32 %v1019_v5, 0.0  ;;  %v1034_v16 = vadd.f32 %v1033_v37, %v969_v57  ;;  %v1025_v37 = vadd.f32 %v4099_v24, %v960_v19  ;;  %v3173_v19 = vld [vmem:[%s5509_s1 + $0x268] sm:$0xff] }
 0x42d   : > { %v1049_v28 = vadd.f32 %v1048_v63, %v984_v30  ;;  %v1062_v63 = vmax.f32 %v1031_v0, 0.0  ;;  %v1063_v30 = vmax.f32 %v1034_v16, 0.0  ;;  %v1060_v41 = vmax.f32 %v1025_v37, 0.0  ;;  %v3168_v37 = vld [vmem:[%s5509_s1 + $0x240] sm:$0xff] }
 0x42f   : > { %v1068_v20 = vmax.f32 %v1049_v28, 0.0  ;;  %v1055_v28 = vmax.f32 %v1010_v31, 0.0  ;;  %v3175_v31 = vld [vmem:[%s5509_s1 + $0x278] sm:$0xff] }
 0x430   : > { %1276 = vmatpush.msrb.mxu2 %v3175_v31 }
 0x431   : > { %1114 = vrot.lane.b32.xlu0 %v1068_v20, %s3574_s19  ;;  %1100 = vrot.lane.b32.xlu1 %v1061_v25, %s3574_s19  ;;  %v942_v20 = vadd.f32 %v4106_v36, %v4087_v22  ;;  %v1057_v25 = vmax.f32 %v1016_v43, 0.0  ;;  %v3177_v22 = vld [vmem:[%s5509_s1 + $0x288] sm:$0xff]  ;;  %v3164_v43 = vld [vmem:[%s5509_s1 + $0x220] sm:$0xff] }
 0x432   : > { %v986_v46 = vpop.f32.mrf.mxu3  ;;  %1355 = vmatpush.msra.mxu3 %v3177_v22  ;;  %1277 = vmatpush.msrb.mxu2 %v3174_v33 }
 0x433   : > { %v987_v35 = vadd.f32 %v4106_v36, %v986_v46  ;;  %v1007_v13 = vadd.f32 %v4075_v48, %v942_v20  ;;  %v3176_v48 = vld [vmem:[%s5509_s1 + $0x280] sm:$0xff]  ;;  %v3163_v20 = vld [vmem:[%s5509_s1 + $0x218] sm:$0xff] }
 0x434   : > { %1356 = vmatpush.msra.mxu3 %v3176_v48  ;;  %1278 = vmatpush.msrb.mxu2 %v3173_v19 }
 0x435   : > { %v1052_v39 = vadd.f32 %v1051_v27, %v987_v35  ;;  %v1054_v24 = vmax.f32 %v1007_v13, 0.0  ;;  %v3161_v13 = vld [vmem:[%s5509_s1 + $0x208] sm:$0xff] }
 0x437   : > { %v1069_v47 = vmax.f32 %v1052_v39, 0.0 }
 0x439   : > { %1116 = vrot.lane.b32.xlu2 %v1069_v47, %s3574_s19  ;;  %1102 = vrot.lane.b32.xlu0 %v1062_v63, %s3574_s19 }
 0x43a   : > { %1094 = vrot.lane.b32.xlu1 %v1058_v53, %s3574_s19 }
 0x441   : > { %1104 = vrot.lane.b32.xlu2 %v1063_v30, %s3574_s19  ;;  %1096 = vrot.lane.b32.xlu0 %v1059_v6, %s3574_s19  ;;  %v3172_v30 = vld [vmem:[%s5509_s1 + $0x260] sm:$0xff]  ;;  %v3171_v6 = vld [vmem:[%s5509_s1 + $0x258] sm:$0xff] }
 0x442   : > { %1088 = vrot.lane.b32.xlu1 %v1055_v28, %s3574_s19  ;;  %1279 = vmatpush.msrb.mxu2 %v3172_v30  ;;  %v3170_v28 = vld [vmem:[%s5509_s1 + $0x250] sm:$0xff] }
 0x444   : > { %1280 = vmatpush.msrb.mxu2 %v3171_v6 }
 0x446   : > { %1281 = vmatpush.msrb.mxu2 %v3170_v28 }
 0x448   : > { %1282 = vmatpush.msrb.mxu2 %v3169_v23 }
 0x449   : > { %1098 = vrot.lane.b32.xlu2 %v1060_v41, %s3574_s19  ;;  %1090 = vrot.lane.b32.xlu0 %v1056_v54, %s3574_s19  ;;  %v3166_v41 = vld [vmem:[%s5509_s1 + $0x230] sm:$0xff]  ;;  %v3165_v54 = vld [vmem:[%s5509_s1 + $0x228] sm:$0xff] }
 0x44a   : > { %1283 = vmatpush.msrb.mxu2 %v3168_v37 }
 0x44c   : > { %1284 = vmatpush.msrb.mxu2 %v3167_v10 }
 0x44e   : > { %1285 = vmatpush.msrb.mxu2 %v3166_v41 }
 0x450   : > { %1286 = vmatpush.msrb.mxu2 %v3165_v54 }
 0x451   : > { %1092 = vrot.lane.b32.xlu2 %v1057_v25, %s3574_s19  ;;  %v3162_v25 = vld [vmem:[%s5509_s1 + $0x210] sm:$0xff] }
 0x452   : > { %1287 = vmatpush.msrb.mxu2 %v3164_v43 }
 0x454   : > { %1288 = vmatpush.msrb.mxu2 %v3163_v20 }
 0x456   : > { %1289 = vmatpush.msrb.mxu2 %v3162_v25 }
 0x458   : > { %1290 = vmatpush.msrb.mxu2 %v3161_v13 }
 0x459   : > { %1086 = vrot.lane.b32.xlu2 %v1054_v24, %s3574_s19  ;;  %v3160_v24 = vld [vmem:[%s5509_s1 + $0x200] sm:$0xff] }
 0x45a   : > { %1291 = vmatpush.msrb.mxu2 %v3160_v24 }
 0x47b   : > { %v4151_v58 = vpop.permute.xlu2 %1110 }
 0x483   : > { %v4169_v46 = vpop.permute.xlu1 %1106 }
 0x48b   : > { %v4171_v0 = vpop.permute.xlu0 %1108 }
 0x493   : > { %v4165_v36 = vpop.permute.xlu2 %1116 }
 0x494   : > { %3143 = vmatpush.msk.msra.mxu0 %vm446_vm0, %v4165_v36 }
 0x49b   : > { %v4173_v35 = vpop.permute.xlu2 %1104  ;;  %v4175_v27 = vpop.permute.xlu1 %1112 }
 0x4a3   : > { %v4177_v5 = vpop.permute.xlu0 %1114  ;;  %v4179_v39 = vpop.permute.xlu2 %1098 }
 0x4a4   : > { %1136 = vmatpush.msra.mxu0 %v4177_v5  ;;  %v4183_v49 = vpop.permute.xlu1 %1100 }
 0x4a6   : > { %1137 = vmatpush.msra.mxu0 %v4175_v27 }
 0x4a8   : > { %1138 = vmatpush.msra.mxu0 %v4151_v58 }
 0x4aa   : > { %1139 = vmatpush.msra.mxu0 %v4171_v0 }
 0x4ab   : > { %v4187_v57 = vpop.permute.xlu0 %1102  ;;  %v4189_v47 = vpop.permute.xlu2 %1092 }
 0x4ac   : > { %1140 = vmatpush.msra.mxu0 %v4169_v46  ;;  %v4194_v63 = vpop.permute.xlu1 %1094 }
 0x4ae   : > { %1141 = vmatpush.msra.mxu0 %v4173_v35 }
 0x4b0   : > { %1142 = vmatpush.msra.mxu0 %v4187_v57 }
 0x4b2   : > { %1143 = vmatpush.msra.mxu0 %v4183_v49 }
 0x4b3   : > { %v4197_v42 = vpop.permute.xlu0 %1096  ;;  %v4199_v53 = vpop.permute.xlu2 %1086 }
 0x4b4   : > { %1144 = vmatpush.msra.mxu0 %v4179_v39  ;;  %3181 = vmatmul.msk.f32.vlgmr.msra.gmra.mxu3 %vm1201_vm8, %v4199_v53  ;;  %v4209_v16 = vpop.permute.xlu1 %1088 }
 0x4b6   : > { %1145 = vmatpush.msra.mxu0 %v4197_v42 }
 0x4b8   : > { %1146 = vmatpush.msra.mxu0 %v4194_v63 }
 0x4ba   : > { %1147 = vmatpush.msra.mxu0 %v4189_v47 }
 0x4bb   : > { %v4207_v38 = vpop.permute.xlu0 %1090 }
 0x4bc   : > { %1148 = vmatpush.msra.mxu0 %v4207_v38  ;;  %3182 = vmatmul.msk.f32.gmra.mxu3 %vm1201_vm8, %v4209_v16 }
 0x4be   : > { %1149 = vmatpush.msra.mxu0 %v4209_v16 }
 0x4c0   : > { %1150 = vmatpush.msra.mxu0 %v4199_v53 }
 0x4c1   : > { %3144 = vmatmul.msk.f32.vlgmr.msra.gmra.mxu0 %vm397_vm3, %v3659_v55 }
 0x4c4   : > { %3183 = vmatmul.msk.f32.gmra.mxu3 %vm1201_vm8, %v4207_v38 }
 0x4c9   : > { %3145 = vmatmul.msk.f32.gmra.mxu0 %vm397_vm3, %v3679_v61 }
 0x4cc   : > { %3184 = vmatmul.msk.f32.gmra.mxu3 %vm1201_vm8, %v4189_v47 }
 0x4d1   : > { %3146 = vmatmul.msk.f32.gmra.mxu0 %vm397_vm3, %v3699_v3 }
 0x4d4   : > { %3185 = vmatmul.msk.f32.gmra.mxu3 %vm1201_vm8, %v4194_v63 }
 0x4d9   : > { %3147 = vmatmul.msk.f32.gmra.mxu0 %vm397_vm3, %v3716_v8 }
 0x4dc   : > { %3186 = vmatmul.msk.f32.gmra.mxu3 %vm1201_vm8, %v4197_v42 }
 0x4e1   : > { %3148 = vmatmul.msk.f32.gmra.mxu0 %vm397_vm3, %v3662_v56 }
 0x4e4   : > { %3187 = vmatmul.msk.f32.gmra.mxu3 %vm1201_vm8, %v4179_v39 }
 0x4e9   : > { %3149 = vmatmul.msk.f32.gmra.mxu0 %vm397_vm3, %v3682_v62 }
 0x4ec   : > { %3188 = vmatmul.msk.f32.gmra.mxu3 %vm1201_vm8, %v4183_v49 }
 0x4f1   : > { %3150 = vmatmul.msk.f32.gmra.mxu0 %vm397_vm3, %v3702_v4 }
 0x4f4   : > { %3189 = vmatmul.msk.f32.gmra.mxu3 %vm1201_vm8, %v4187_v57 }
 0x4f9   : > { %3151 = vmatmul.msk.f32.gmra.mxu0 %vm397_vm3, %v3719_v9 }
 0x4fc   : > { %3190 = vmatmul.msk.f32.gmra.mxu3 %vm1201_vm8, %v4173_v35 }
 0x501   : > { %3152 = vmatmul.msk.f32.gmra.mxu0 %vm397_vm3, %v3731_v12 }
 0x504   : > { %3191 = vmatmul.msk.f32.gmra.mxu3 %vm1201_vm8, %v4169_v46 }
 0x509   : > { %3153 = vmatmul.msk.f32.gmra.mxu0 %vm397_vm3, %v3741_v15 }
 0x50c   : > { %3192 = vmatmul.msk.f32.gmra.mxu3 %vm1201_vm8, %v4171_v0 }
 0x511   : > { %3154 = vmatmul.msk.f32.gmra.mxu0 %vm397_vm3, %v3751_v18 }
 0x514   : > { %3193 = vmatmul.msk.f32.gmra.mxu3 %vm1201_vm8, %v4151_v58 }
 0x519   : > { %3155 = vmatmul.msk.f32.gmra.mxu0 %vm397_vm3, %v3761_v21 }
 0x51c   : > { %3194 = vmatmul.msk.f32.gmra.mxu3 %vm1201_vm8, %v4175_v27 }
 0x521   : > { %3156 = vmatmul.msk.f32.gmra.mxu0 %vm397_vm3, %v3777_v26 }
 0x524   : > { %3195 = vmatmul.msk.f32.gmra.mxu3 %vm1201_vm8, %v4177_v5 }
 0x529   : > { %3157 = vmatmul.msk.f32.gmra.mxu0 %vm397_vm3, %v3787_v29 }
 0x52c   : > { %3196 = vmatmul.msk.f32.gmra.mxu3 %vm1201_vm8, %v4165_v36 }
 0x531   : > { %3158 = vmatmul.msk.f32.gmra.mxu0 %vm397_vm3, %v3797_v32 }
 0x537   : > { %v4350_v13 = vpop.f32.mrf.mxu3 }
 0x539   : > { %3159 = vmatmul.msk.f32.gmra.mxu0 %vm397_vm3, %v3804_v34 }
 0x53e   : > { %v1152_v17 = vpop.f32.mrf.mxu0 }
 0x53f   : > { %v1202_v52 = vsel %vm1201_vm8, %v1152_v17, %v4199_v53  ;;  %v4356_v17 = vpop.f32.mrf.mxu3 }
 0x540   : > { %1292 = vmatmul.f32.vlgmr.msrb.gmra.mxu2 %v1202_v52 }
 0x546   : > { %v1155_v22 = vpop.f32.mrf.mxu0 }
 0x547   : > { %v1203_v48 = vsel %vm1201_vm8, %v1155_v22, %v4209_v16 }
 0x548   : > { %1295 = vmatmul.f32.gmra.mxu2 %v1203_v48 }
 0x54e   : > { %v1158_v31 = vpop.f32.mrf.mxu0 }
 0x54f   : > { %v1204_v33 = vsel %vm1201_vm8, %v1158_v31, %v4207_v38 }
 0x550   : > { %1298 = vmatmul.f32.gmra.mxu2 %v1204_v33 }
 0x556   : > { %v1161_v19 = vpop.f32.mrf.mxu0 }
 0x557   : > { %v1205_v30 = vsel %vm1201_vm8, %v1161_v19, %v4189_v47 }
 0x558   : > { %1301 = vmatmul.f32.gmra.mxu2 %v1205_v30 }
 0x55e   : > { %v1164_v6 = vpop.f32.mrf.mxu0 }
 0x55f   : > { %v1206_v53 = vsel %vm1201_vm8, %v1164_v6, %v4194_v63 }
 0x560   : > { %1304 = vmatmul.f32.gmra.mxu2 %v1206_v53 }
 0x566   : > { %v1167_v28 = vpop.f32.mrf.mxu0 }
 0x567   : > { %v1207_v16 = vsel %vm1201_vm8, %v1167_v28, %v4197_v42 }
 0x568   : > { %1307 = vmatmul.f32.gmra.mxu2 %v1207_v16 }
 0x56e   : > { %v1170_v23 = vpop.f32.mrf.mxu0 }
 0x56f   : > { %v1208_v38 = vsel %vm1201_vm8, %v1170_v23, %v4179_v39 }
 0x570   : > { %1310 = vmatmul.f32.gmra.mxu2 %v1208_v38 }
 0x576   : > { %v1173_v37 = vpop.f32.mrf.mxu0 }
 0x577   : > { %v1209_v47 = vsel %vm1201_vm8, %v1173_v37, %v4183_v49 }
 0x578   : > { %1313 = vmatmul.f32.gmra.mxu2 %v1209_v47 }
 0x57e   : > { %v1176_v10 = vpop.f32.mrf.mxu0 }
 0x57f   : > { %v1210_v63 = vsel %vm1201_vm8, %v1176_v10, %v4187_v57 }
 0x580   : > { %1316 = vmatmul.f32.gmra.mxu2 %v1210_v63  ;;  %v4379_v63 = vld [vmem:[%s5510_s2 + $0x2] ss:$0 sm:$0xff] }
 0x586   : > { %v1179_v41 = vpop.f32.mrf.mxu0 }
 0x587   : > { %v1211_v42 = vsel %vm1201_vm8, %v1179_v41, %v4173_v35 }
 0x588   : > { %1319 = vmatmul.f32.gmra.mxu2 %v1211_v42 }
 0x58e   : > { %v1182_v54 = vpop.f32.mrf.mxu0 }
 0x58f   : > { %v1212_v39 = vsel %vm1201_vm8, %v1182_v54, %v4169_v46 }
 0x590   : > { %1322 = vmatmul.f32.gmra.mxu2 %v1212_v39 }
 0x596   : > { %v1185_v43 = vpop.f32.mrf.mxu0 }
 0x597   : > { %v1213_v49 = vsel %vm1201_vm8, %v1185_v43, %v4171_v0 }
 0x598   : > { %1325 = vmatmul.f32.gmra.mxu2 %v1213_v49 }
 0x59e   : > { %v1188_v20 = vpop.f32.mrf.mxu0 }
 0x59f   : > { %v1214_v57 = vsel %vm1201_vm8, %v1188_v20, %v4151_v58  ;;  %v4360_v58 = vpop.f32.mrf.mxu3 }
 0x5a0   : > { %1328 = vmatmul.f32.gmra.mxu2 %v1214_v57 }
 0x5a6   : > { %v1191_v25 = vpop.f32.mrf.mxu0 }
 0x5a7   : > { %v1215_v35 = vsel %vm1201_vm8, %v1191_v25, %v4175_v27  ;;  %v4364_v48 = vpop.f32.mrf.mxu3 }
 0x5a8   : > { %1331 = vmatmul.f32.gmra.mxu2 %v1215_v35 }
 0x5ae   : > { %v1194_v24 = vpop.f32.mrf.mxu0 }
 0x5af   : > { %v1216_v46 = vsel %vm1201_vm8, %v1194_v24, %v4177_v5  ;;  %v1370_v31 = vpop.f32.mrf.mxu3 }
 0x5b0   : > { %1334 = vmatmul.f32.gmra.mxu2 %v1216_v46 }
 0x5b6   : > { %v1197_v0 = vpop.f32.mrf.mxu0 }
 0x5b7   : > { %v1217_v52 = vsel %vm1201_vm8, %v1197_v0, %v4165_v36  ;;  %v4368_v19 = vpop.f32.mrf.mxu3 }
 0x5b8   : > { %1337 = vmatmul.f32.gmra.mxu2 %v1217_v52 }
 0x5bf   : > { %v4372_v30 = vpop.f32.mrf.mxu3 }
 0x5c3   : > { %v4362_v22 = vpop.f32.mrf.mxu2 }
 0x5c7   : > { %v1379_v36 = vpop.f32.mrf.mxu3 }
 0x5cb   : > { %v1296_v27 = vpop.f32.mrf.mxu2 }
 0x5cf   : > { %v1382_v16 = vpop.f32.mrf.mxu3 }
 0x5d3   : > { %v4366_v33 = vpop.f32.mrf.mxu2 }
 0x5d7   : > { %v1385_v38 = vpop.f32.mrf.mxu3 }
 0x5db   : > { %v4370_v5 = vpop.f32.mrf.mxu2 }
 0x5df   : > { %v1388_v47 = vpop.f32.mrf.mxu3 }
 0x5e3   : > { %v1305_v6 = vpop.f32.mrf.mxu2 }
 0x5e7   : > { %v1391_v54 = vpop.f32.mrf.mxu3 }
 0x5eb   : > { %v1308_v53 = vpop.f32.mrf.mxu2 }
 0x5ef   : > { %v1394_v25 = vpop.f32.mrf.mxu3 }
 0x5f3   : > { %v4374_v28 = vpop.f32.mrf.mxu2 }
 0x5fb   : > { %v1314_v23 = vpop.f32.mrf.mxu2 }
 0x603   : > { %v1317_v37 = vpop.f32.mrf.mxu2 }
 0x60b   : > { %v1320_v10 = vpop.f32.mrf.mxu2 }
 0x613   : > { %v1323_v41 = vpop.f32.mrf.mxu2 }
 0x614   : > { %v1324_v42 = vadd.f32 %v4379_v63, %v1323_v41  ;;  %v1397_v41 = vpop.f32.mrf.mxu3 }
 0x616   : > { %v1389_v39 = vadd.f32 %v1388_v47, %v1324_v42 }
 0x618   : > { %v1416_v43 = vmax.f32 %v1389_v39, 0.0 }
 0x61a   : > { %1458 = vrot.lane.b32.xlu2 %v1416_v43, %s3575_s11  ;;  %v1315_v43 = vadd.f32 %v4379_v63, %v1314_v23 }
 0x61b   : > { %v1326_v49 = vpop.f32.mrf.mxu2 }
 0x61c   : > { %v1327_v20 = vadd.f32 %v4379_v63, %v1326_v49 }
 0x61e   : > { %v1392_v57 = vadd.f32 %v1391_v54, %v1327_v20  ;;  %v1400_v54 = vpop.f32.mrf.mxu3 }
 0x620   : > { %v1417_v35 = vmax.f32 %v1392_v57, 0.0  ;;  %v1380_v57 = vadd.f32 %v1379_v36, %v1315_v43  ;;  %v1297_v43 = vadd.f32 %v4379_v63, %v1296_v27  ;;  %v1300_v27 = vadd.f32 %v4379_v63, %v4366_v33 }
 0x621   : > { %v1303_v33 = vadd.f32 %v4379_v63, %v4370_v5  ;;  %v3237_v5 = vld [vmem:[%s5509_s1 + $0x3b8] sm:$0xff] }
 0x622   : > { %1460 = vrot.lane.b32.xlu1 %v1417_v35, %s3575_s11  ;;  %1705 = vmatpush.msra.mxu2 %v3237_v5 }
 0x623   : > { %v1329_v24 = vpop.f32.mrf.mxu2 }
 0x624   : > { %v1330_v46 = vadd.f32 %v4379_v63, %v1329_v24 }
 0x626   : > { %v1395_v0 = vadd.f32 %v1394_v25, %v1330_v46  ;;  %v1306_v25 = vadd.f32 %v4379_v63, %v1305_v6  ;;  %v1318_v46 = vadd.f32 %v4379_v63, %v1317_v37 }
 0x628   : > { %v1418_v52 = vmax.f32 %v1395_v0, 0.0  ;;  %v1413_v0 = vmax.f32 %v1380_v57, 0.0 }
 0x62a   : > { %1462 = vrot.lane.b32.xlu0 %v1418_v52, %s3575_s11 }
 0x62b   : > { %v1332_v47 = vpop.f32.mrf.mxu2 }
 0x62c   : > { %v1333_v42 = vadd.f32 %v4379_v63, %v1332_v47  ;;  %v1383_v47 = vadd.f32 %v1382_v16, %v1318_v46  ;;  %v1294_v46 = vadd.f32 %v4379_v63, %v4362_v22  ;;  %v3235_v22 = vld [vmem:[%s5509_s1 + $0x3a8] sm:$0xff] }
 0x62e   : > { %v1398_v39 = vadd.f32 %v1397_v41, %v1333_v42  ;;  %v1371_v41 = vadd.f32 %v1370_v31, %v1306_v25  ;;  %v1362_v31 = vadd.f32 %v4356_v17, %v1297_v43  ;;  %v1365_v17 = vadd.f32 %v4360_v58, %v1300_v27 }
 0x62f   : > { %v1359_v58 = vadd.f32 %v4350_v13, %v1294_v46 }
 0x630   : > { %v1419_v49 = vmax.f32 %v1398_v39, 0.0  ;;  %v1403_v39 = vpop.f32.mrf.mxu3  ;;  %v1410_v6 = vmax.f32 %v1371_v41, 0.0  ;;  %v3233_v41 = vld [vmem:[%s5509_s1 + $0x398] sm:$0xff] }
 0x632   : > { %1464 = vrot.lane.b32.xlu2 %v1419_v49, %s3575_s11  ;;  %v1309_v49 = vadd.f32 %v4379_v63, %v1308_v53  ;;  %v1407_v53 = vmax.f32 %v1362_v31, 0.0 }
 0x633   : > { %v1335_v20 = vpop.f32.mrf.mxu2 }
 0x634   : > { %v1336_v35 = vadd.f32 %v4379_v63, %v1335_v20  ;;  %v1321_v20 = vadd.f32 %v4379_v63, %v1320_v10  ;;  %v1374_v16 = vadd.f32 %v4368_v19, %v1309_v49 }
 0x636   : > { %v1401_v24 = vadd.f32 %v1400_v54, %v1336_v35  ;;  %v1414_v54 = vmax.f32 %v1383_v47, 0.0  ;;  %v1386_v57 = vadd.f32 %v1385_v38, %v1321_v20  ;;  %v1411_v35 = vmax.f32 %v1374_v16, 0.0  ;;  %v3232_v47 = vld [vmem:[%s5509_s1 + $0x390] sm:$0xff] }
 0x637   : > { %v1408_v38 = vmax.f32 %v1365_v17, 0.0  ;;  %v3216_v17 = vld [vmem:[%s5509_s1 + $0x310] sm:$0xff] }
 0x638   : > { %v1420_v52 = vmax.f32 %v1401_v24, 0.0  ;;  %v1312_v24 = vadd.f32 %v4379_v63, %v4374_v28  ;;  %v1415_v10 = vmax.f32 %v1386_v57, 0.0  ;;  %v1368_v28 = vadd.f32 %v4364_v48, %v1303_v33  ;;  %v3236_v48 = vld [vmem:[%s5509_s1 + $0x3b0] sm:$0xff] }
 0x639   : > { %1706 = vmatpush.msra.mxu2 %v3236_v48 }
 0x63a   : > { %1452 = vrot.lane.b32.xlu2 %v1413_v0, %s3575_s11  ;;  %1466 = vrot.lane.b32.xlu1 %v1420_v52, %s3575_s11  ;;  %v1377_v19 = vadd.f32 %v4372_v30, %v1312_v24  ;;  %v1409_v0 = vmax.f32 %v1368_v28, 0.0  ;;  %v1406_v30 = vmax.f32 %v1359_v58, 0.0  ;;  %v3219_v24 = vld [vmem:[%s5509_s1 + $0x328] sm:$0xff] }
 0x63b   : > { %v1338_v23 = vpop.f32.mrf.mxu2  ;;  %1707 = vmatpush.msra.mxu2 %v3235_v22 }
 0x63c   : > { %v1339_v42 = vadd.f32 %v4379_v63, %v1338_v23  ;;  %v1412_v25 = vmax.f32 %v1377_v19, 0.0  ;;  %v3234_v63 = vld [vmem:[%s5509_s1 + $0x3a0] sm:$0xff]  ;;  %v3215_v19 = vld [vmem:[%s5509_s1 + $0x308] sm:$0xff] }
 0x63d   : > { %1708 = vmatpush.msra.mxu2 %v3234_v63 }
 0x63e   : > { %v1404_v36 = vadd.f32 %v1403_v39, %v1339_v42  ;;  %v3231_v39 = vld [vmem:[%s5509_s1 + $0x388] sm:$0xff] }
 0x63f   : > { %1709 = vmatpush.msra.mxu2 %v3233_v41 }
 0x640   : > { %v1421_v37 = vmax.f32 %v1404_v36, 0.0  ;;  %v3230_v36 = vld [vmem:[%s5509_s1 + $0x380] sm:$0xff] }
 0x641   : > { %1710 = vmatpush.msra.mxu2 %v3232_v47 }
 0x642   : > { %1446 = vrot.lane.b32.xlu2 %v1410_v6, %s3575_s11  ;;  %1454 = vrot.lane.b32.xlu1 %v1414_v54, %s3575_s11 }
 0x643   : > { %1468 = vrot.lane.b32.xlu0 %v1421_v37, %s3575_s11  ;;  %1711 = vmatpush.msra.mxu2 %v3231_v39  ;;  %v3287_v39 = vld [vmem:[%s5509_s1 + $0x478] sm:$0xff] }
 0x645   : > { %1712 = vmatpush.msra.mxu2 %v3230_v36 }
 0x64a   : > { %1440 = vrot.lane.b32.xlu2 %v1407_v53, %s3575_s11  ;;  %1448 = vrot.lane.b32.xlu1 %v1411_v35, %s3575_s11 }
 0x64b   : > { %1456 = vrot.lane.b32.xlu0 %v1415_v10, %s3575_s11  ;;  %v3218_v10 = vld [vmem:[%s5509_s1 + $0x320] sm:$0xff] }
 0x652   : > { %1442 = vrot.lane.b32.xlu1 %v1408_v38, %s3575_s11  ;;  %v3214_v38 = vld [vmem:[%s5509_s1 + $0x300] sm:$0xff] }
 0x653   : > { %1450 = vrot.lane.b32.xlu0 %v1412_v25, %s3575_s11 }
 0x65b   : > { %1444 = vrot.lane.b32.xlu0 %v1409_v0, %s3575_s11 }
 0x663   : > { %1438 = vrot.lane.b32.xlu0 %v1406_v30, %s3575_s11 }
 0x674   : > { %v4434_v13 = vpop.permute.xlu2 %1458 }
 0x68c   : > { %v4455_v43 = vpop.permute.xlu2 %1464 }
 0x694   : > { %v4429_v52 = vpop.permute.xlu1 %1460  ;;  %v4466_v54 = vpop.permute.xlu2 %1452 }
 0x69c   : > { %v4439_v23 = vpop.permute.xlu0 %1462  ;;  %v4479_v16 = vpop.permute.xlu2 %1446 }
 0x6a4   : > { %v4490_v53 = vpop.permute.xlu2 %1440 }
 0x6ac   : > { %v4447_v42 = vpop.permute.xlu1 %1466 }
 0x6b4   : > { %v4463_v6 = vpop.permute.xlu1 %1454 }
 0x6b5   : > { %v4457_v49 = vpop.permute.xlu0 %1468 }
 0x6b6   : > { %3197 = vmatpush.msk.msra.mxu1 %vm446_vm0, %v4457_v49 }
 0x6b8   : > { %1488 = vmatpush.msra.mxu1 %v4447_v42 }
 0x6ba   : > { %1489 = vmatpush.msra.mxu1 %v4455_v43 }
 0x6bc   : > { %1490 = vmatpush.msra.mxu1 %v4439_v23  ;;  %v4474_v20 = vpop.permute.xlu1 %1448 }
 0x6bd   : > { %v4468_v37 = vpop.permute.xlu0 %1456 }
 0x6be   : > { %1491 = vmatpush.msra.mxu1 %v4429_v52 }
 0x6c0   : > { %1492 = vmatpush.msra.mxu1 %v4434_v13 }
 0x6c2   : > { %1493 = vmatpush.msra.mxu1 %v4468_v37 }
 0x6c4   : > { %1494 = vmatpush.msra.mxu1 %v4463_v6  ;;  %v4487_v27 = vpop.permute.xlu1 %1442 }
 0x6c5   : > { %v4476_v31 = vpop.permute.xlu0 %1450 }
 0x6c6   : > { %1495 = vmatpush.msra.mxu1 %v4466_v54 }
 0x6c8   : > { %1496 = vmatpush.msra.mxu1 %v4476_v31 }
 0x6ca   : > { %1497 = vmatpush.msra.mxu1 %v4474_v20 }
 0x6cc   : > { %1498 = vmatpush.msra.mxu1 %v4479_v16 }
 0x6cd   : > { %v4484_v57 = vpop.permute.xlu0 %1444 }
 0x6ce   : > { %1499 = vmatpush.msra.mxu1 %v4484_v57 }
 0x6d0   : > { %1500 = vmatpush.msra.mxu1 %v4487_v27 }
 0x6d2   : > { %1501 = vmatpush.msra.mxu1 %v4490_v53 }
 0x6d5   : > { %v4493_v35 = vpop.permute.xlu0 %1438 }
 0x6d6   : > { %1502 = vmatpush.msra.mxu1 %v4493_v35  ;;  %3239 = vmatmul.msk.f32.vlgmr.msra.gmra.mxu2 %vm1553_vm9, %v4493_v35 }
 0x6d7   : > { %3198 = vmatmul.msk.f32.vlgmr.msra.gmra.mxu1 %vm397_vm3, %v3659_v55  ;;  %v3229_v55 = vld [vmem:[%s5509_s1 + $0x378] sm:$0xff] }
 0x6d8   : > { %1632 = vmatpush.msrb.mxu0 %v3229_v55  ;;  %1932 = vmatpush.msrb.mxu1 %v3287_v39  ;;  %v3279_v55 = vld [vmem:[%s5509_s1 + $0x438] sm:$0xff] }
 0x6de   : > { %3240 = vmatmul.msk.f32.gmra.mxu2 %vm1553_vm9, %v4490_v53 }
 0x6df   : > { %3199 = vmatmul.msk.f32.gmra.mxu1 %vm397_vm3, %v3679_v61  ;;  %v3227_v61 = vld [vmem:[%s5509_s1 + $0x368] sm:$0xff] }
 0x6e6   : > { %3241 = vmatmul.msk.f32.gmra.mxu2 %vm1553_vm9, %v4487_v27 }
 0x6e7   : > { %3200 = vmatmul.msk.f32.gmra.mxu1 %vm397_vm3, %v3699_v3  ;;  %v3225_v3 = vld [vmem:[%s5509_s1 + $0x358] sm:$0xff] }
 0x6ee   : > { %3242 = vmatmul.msk.f32.gmra.mxu2 %vm1553_vm9, %v4484_v57 }
 0x6ef   : > { %3201 = vmatmul.msk.f32.gmra.mxu1 %vm397_vm3, %v3716_v8  ;;  %v3223_v8 = vld [vmem:[%s5509_s1 + $0x348] sm:$0xff] }
 0x6f6   : > { %3243 = vmatmul.msk.f32.gmra.mxu2 %vm1553_vm9, %v4479_v16 }
 0x6f7   : > { %3202 = vmatmul.msk.f32.gmra.mxu1 %vm397_vm3, %v3662_v56  ;;  %v3228_v56 = vld [vmem:[%s5509_s1 + $0x370] sm:$0xff] }
 0x6f8   : > { %1633 = vmatpush.msrb.mxu0 %v3228_v56 }
 0x6fa   : > { %1634 = vmatpush.msrb.mxu0 %v3227_v61 }
 0x6fe   : > { %3244 = vmatmul.msk.f32.gmra.mxu2 %vm1553_vm9, %v4474_v20 }
 0x6ff   : > { %3203 = vmatmul.msk.f32.gmra.mxu1 %vm397_vm3, %v3682_v62  ;;  %v3226_v62 = vld [vmem:[%s5509_s1 + $0x360] sm:$0xff] }
 0x700   : > { %1635 = vmatpush.msrb.mxu0 %v3226_v62  ;;  %v3277_v62 = vld [vmem:[%s5509_s1 + $0x428] sm:$0xff] }
 0x702   : > { %1636 = vmatpush.msrb.mxu0 %v3225_v3  ;;  %v3276_v3 = vld [vmem:[%s5509_s1 + $0x420] sm:$0xff] }
 0x706   : > { %3245 = vmatmul.msk.f32.gmra.mxu2 %vm1553_vm9, %v4476_v31 }
 0x707   : > { %3204 = vmatmul.msk.f32.gmra.mxu1 %vm397_vm3, %v3702_v4  ;;  %v3224_v4 = vld [vmem:[%s5509_s1 + $0x350] sm:$0xff] }
 0x708   : > { %1637 = vmatpush.msrb.mxu0 %v3224_v4  ;;  %v3275_v4 = vld [vmem:[%s5509_s1 + $0x418] sm:$0xff] }
 0x70a   : > { %1638 = vmatpush.msrb.mxu0 %v3223_v8 }
 0x70e   : > { %3246 = vmatmul.msk.f32.gmra.mxu2 %vm1553_vm9, %v4466_v54 }
 0x70f   : > { %3205 = vmatmul.msk.f32.gmra.mxu1 %vm397_vm3, %v3719_v9  ;;  %v3222_v9 = vld [vmem:[%s5509_s1 + $0x340] sm:$0xff] }
 0x710   : > { %1639 = vmatpush.msrb.mxu0 %v3222_v9 }
 0x716   : > { %3247 = vmatmul.msk.f32.gmra.mxu2 %vm1553_vm9, %v4463_v6 }
 0x717   : > { %3206 = vmatmul.msk.f32.gmra.mxu1 %vm397_vm3, %v3731_v12  ;;  %v3221_v12 = vld [vmem:[%s5509_s1 + $0x338] sm:$0xff] }
 0x718   : > { %1640 = vmatpush.msrb.mxu0 %v3221_v12  ;;  %v3273_v12 = vld [vmem:[%s5509_s1 + $0x408] sm:$0xff] }
 0x71e   : > { %3248 = vmatmul.msk.f32.gmra.mxu2 %vm1553_vm9, %v4468_v37 }
 0x71f   : > { %3207 = vmatmul.msk.f32.gmra.mxu1 %vm397_vm3, %v3741_v15  ;;  %v3220_v15 = vld [vmem:[%s5509_s1 + $0x330] sm:$0xff] }
 0x720   : > { %1641 = vmatpush.msrb.mxu0 %v3220_v15 }
 0x722   : > { %1642 = vmatpush.msrb.mxu0 %v3219_v24  ;;  %v3272_v24 = vld [vmem:[%s5509_s1 + $0x400] sm:$0xff] }
 0x724   : > { %1643 = vmatpush.msrb.mxu0 %v3218_v10 }
 0x726   : > { %3249 = vmatmul.msk.f32.gmra.mxu2 %vm1553_vm9, %v4434_v13 }
 0x727   : > { %3208 = vmatmul.msk.f32.gmra.mxu1 %vm397_vm3, %v3751_v18  ;;  %v3217_v18 = vld [vmem:[%s5509_s1 + $0x318] sm:$0xff] }
 0x728   : > { %1644 = vmatpush.msrb.mxu0 %v3217_v18 }
 0x72a   : > { %1645 = vmatpush.msrb.mxu0 %v3216_v17 }
 0x72c   : > { %1646 = vmatpush.msrb.mxu0 %v3215_v19 }
 0x72e   : > { %3250 = vmatmul.msk.f32.gmra.mxu2 %vm1553_vm9, %v4429_v52  ;;  %1647 = vmatpush.msrb.mxu0 %v3214_v38 }
 0x72f   : > { %3209 = vmatmul.msk.f32.gmra.mxu1 %vm397_vm3, %v3761_v21 }
 0x736   : > { %3251 = vmatmul.msk.f32.gmra.mxu2 %vm1553_vm9, %v4439_v23 }
 0x737   : > { %3210 = vmatmul.msk.f32.gmra.mxu1 %vm397_vm3, %v3777_v26 }
 0x73e   : > { %3252 = vmatmul.msk.f32.gmra.mxu2 %vm1553_vm9, %v4455_v43 }
 0x73f   : > { %3211 = vmatmul.msk.f32.gmra.mxu1 %vm397_vm3, %v3787_v29 }
 0x746   : > { %3253 = vmatmul.msk.f32.gmra.mxu2 %vm1553_vm9, %v4447_v42 }
 0x747   : > { %3212 = vmatmul.msk.f32.gmra.mxu1 %vm397_vm3, %v3797_v32 }
 0x74e   : > { %3254 = vmatmul.msk.f32.gmra.mxu2 %vm1553_vm9, %v4457_v49 }
 0x74f   : > { %3213 = vmatmul.msk.f32.gmra.mxu1 %vm397_vm3, %v3804_v34 }
 0x754   : > { %v1504_v21 = vpop.f32.mrf.mxu1 }
 0x755   : > { %v1554_v26 = vsel %vm1553_vm9, %v1504_v21, %v4493_v35  ;;  %v3280_v35 = vld [vmem:[%s5509_s1 + $0x440] sm:$0xff] }
 0x756   : > { %1648 = vmatmul.f32.vlgmr.msrb.gmra.mxu0 %v1554_v26 }
 0x759   : > { %v1714_v15 = vpop.f32.mrf.mxu2 }
 0x75c   : > { %v1507_v33 = vpop.f32.mrf.mxu1 }
 0x75d   : > { %v1555_v29 = vsel %vm1553_vm9, %v1507_v33, %v4490_v53  ;;  %v3281_v53 = vld [vmem:[%s5509_s1 + $0x448] sm:$0xff]  ;;  %v4691_v33 = vld [vmem:[%s5510_s2 + $0x3] ss:$0 sm:$0xff] }
 0x75e   : > { %1651 = vmatmul.f32.gmra.mxu0 %v1555_v29 }
 0x761   : > { %v1717_v17 = vpop.f32.mrf.mxu2 }
 0x764   : > { %v1510_v25 = vpop.f32.mrf.mxu1 }
 0x765   : > { %v1556_v32 = vsel %vm1553_vm9, %v1510_v25, %v4487_v27 }
 0x766   : > { %1654 = vmatmul.f32.gmra.mxu0 %v1556_v32 }
 0x769   : > { %v1720_v38 = vpop.f32.mrf.mxu2 }
 0x76c   : > { %v1513_v28 = vpop.f32.mrf.mxu1 }
 0x76d   : > { %v1557_v46 = vsel %vm1553_vm9, %v1513_v28, %v4484_v57 }
 0x76e   : > { %1657 = vmatmul.f32.gmra.mxu0 %v1557_v46 }
 0x771   : > { %v1723_v25 = vpop.f32.mrf.mxu2 }
 0x774   : > { %v1516_v34 = vpop.f32.mrf.mxu1 }
 0x775   : > { %v1558_v0 = vsel %vm1553_vm9, %v1516_v34, %v4479_v16  ;;  %v3283_v16 = vld [vmem:[%s5509_s1 + $0x458] sm:$0xff] }
 0x776   : > { %1660 = vmatmul.f32.gmra.mxu0 %v1558_v0 }
 0x779   : > { %v1726_v34 = vpop.f32.mrf.mxu2 }
 0x77c   : > { %v1519_v58 = vpop.f32.mrf.mxu1 }
 0x77d   : > { %v1559_v30 = vsel %vm1553_vm9, %v1519_v58, %v4474_v20  ;;  %v3286_v20 = vld [vmem:[%s5509_s1 + $0x470] sm:$0xff] }
 0x77e   : > { %1663 = vmatmul.f32.gmra.mxu0 %v1559_v30  ;;  %1933 = vmatpush.msrb.mxu1 %v3286_v20 }
 0x784   : > { %v1522_v5 = vpop.f32.mrf.mxu1 }
 0x785   : > { %v1560_v48 = vsel %vm1553_vm9, %v1522_v5, %v4476_v31 }
 0x786   : > { %1666 = vmatmul.f32.gmra.mxu0 %v1560_v48 }
 0x78c   : > { %v1525_v22 = vpop.f32.mrf.mxu1 }
 0x78d   : > { %v1561_v63 = vsel %vm1553_vm9, %v1525_v22, %v4466_v54  ;;  %v3284_v54 = vld [vmem:[%s5509_s1 + $0x460] sm:$0xff]  ;;  %v1729_v22 = vpop.f32.mrf.mxu2 }
 0x78e   : > { %1669 = vmatmul.f32.gmra.mxu0 %v1561_v63 }
 0x794   : > { %v1528_v41 = vpop.f32.mrf.mxu1 }
 0x795   : > { %v1562_v47 = vsel %vm1553_vm9, %v1528_v41, %v4463_v6  ;;  %v3285_v6 = vld [vmem:[%s5509_s1 + $0x468] sm:$0xff] }
 0x796   : > { %1672 = vmatmul.f32.gmra.mxu0 %v1562_v47  ;;  %1934 = vmatpush.msrb.mxu1 %v3285_v6 }
 0x798   : > { %1935 = vmatpush.msrb.mxu1 %v3284_v54 }
 0x79a   : > { %1936 = vmatpush.msrb.mxu1 %v3283_v16 }
 0x79c   : > { %v1531_v36 = vpop.f32.mrf.mxu1 }
 0x79d   : > { %v1563_v31 = vsel %vm1553_vm9, %v1531_v36, %v4468_v37  ;;  %v3282_v37 = vld [vmem:[%s5509_s1 + $0x450] sm:$0xff]  ;;  %v1732_v36 = vpop.f32.mrf.mxu2 }
 0x79e   : > { %1675 = vmatmul.f32.gmra.mxu0 %v1563_v31  ;;  %1937 = vmatpush.msrb.mxu1 %v3282_v37 }
 0x7a0   : > { %1938 = vmatpush.msrb.mxu1 %v3281_v53 }
 0x7a2   : > { %1939 = vmatpush.msrb.mxu1 %v3280_v35 }
 0x7a4   : > { %v1534_v57 = vpop.f32.mrf.mxu1  ;;  %1940 = vmatpush.msrb.mxu1 %v3279_v55 }
 0x7a5   : > { %v1564_v27 = vsel %vm1553_vm9, %v1534_v57, %v4434_v13  ;;  %v3278_v13 = vld [vmem:[%s5509_s1 + $0x430] sm:$0xff]  ;;  %v1735_v37 = vpop.f32.mrf.mxu2 }
 0x7a6   : > { %1678 = vmatmul.f32.gmra.mxu0 %v1564_v27  ;;  %1941 = vmatpush.msrb.mxu1 %v3278_v13 }
 0x7a8   : > { %1942 = vmatpush.msrb.mxu1 %v3277_v62 }
 0x7aa   : > { %1943 = vmatpush.msrb.mxu1 %v3276_v3 }
 0x7ac   : > { %v1537_v56 = vpop.f32.mrf.mxu1  ;;  %1944 = vmatpush.msrb.mxu1 %v3275_v4 }
 0x7ad   : > { %v1565_v61 = vsel %vm1553_vm9, %v1537_v56, %v4429_v52  ;;  %v3274_v52 = vld [vmem:[%s5509_s1 + $0x410] sm:$0xff]  ;;  %v1738_v13 = vpop.f32.mrf.mxu2 }
 0x7ae   : > { %1681 = vmatmul.f32.gmra.mxu0 %v1565_v61  ;;  %1945 = vmatpush.msrb.mxu1 %v3274_v52 }
 0x7b0   : > { %1946 = vmatpush.msrb.mxu1 %v3273_v12 }
 0x7b2   : > { %1947 = vmatpush.msrb.mxu1 %v3272_v24 }
 0x7b4   : > { %v1540_v8 = vpop.f32.mrf.mxu1 }
 0x7b5   : > { %v1566_v9 = vsel %vm1553_vm9, %v1540_v8, %v4439_v23  ;;  %v1741_v52 = vpop.f32.mrf.mxu2 }
 0x7b6   : > { %1684 = vmatmul.f32.gmra.mxu0 %v1566_v9 }
 0x7bc   : > { %v1543_v10 = vpop.f32.mrf.mxu1 }
 0x7bd   : > { %v1567_v18 = vsel %vm1553_vm9, %v1543_v10, %v4455_v43  ;;  %v1744_v10 = vpop.f32.mrf.mxu2 }
 0x7be   : > { %1687 = vmatmul.f32.gmra.mxu0 %v1567_v18 }
 0x7c4   : > { %v1546_v23 = vpop.f32.mrf.mxu1 }
 0x7c5   : > { %v1568_v19 = vsel %vm1553_vm9, %v1546_v23, %v4447_v42 }
 0x7c6   : > { %1690 = vmatmul.f32.gmra.mxu0 %v1568_v19 }
 0x7cc   : > { %v1549_v21 = vpop.f32.mrf.mxu1 }
 0x7cd   : > { %v1569_v26 = vsel %vm1553_vm9, %v1549_v21, %v4457_v49 }
 0x7ce   : > { %1693 = vmatmul.f32.gmra.mxu0 %v1569_v26  ;;  %v1747_v26 = vpop.f32.mrf.mxu2 }
 0x7d3   : > { %v1649_v29 = vpop.f32.mrf.mxu0 }
 0x7d4   : > { %v1650_v43 = vadd.f32 %v4691_v33, %v1649_v29 }
 0x7d6   : > { %v4694_v32 = vadd.f32 %v1714_v15, %v1650_v43 }
 0x7d8   : > { %v1762_v42 = vmax.f32 %v4694_v32, 0.0  ;;  %v273_v32 = vadd.s32 1, %v3692_v1  ;;  %v275_v1 = vadd.s32 1, %v3656_v51  ;;  %v277_v51 = vadd.s32 1, %v3696_v2 }
 0x7d9   : > { %v279_v2 = vadd.s32 1, %v3728_v11  ;;  %v280_v11 = vadd.s32 1, %v3738_v14  ;;  %v3298_v14 = vld [vmem:[%s5509_s1 + $0x4d0] sm:$0xff] }
 0x7da   : > { %1948 = vmatmul.f32.vlgmr.msrb.gmra.mxu1 %v1762_v42  ;;  %vm289_vm13 = vcmp.eq.s32.totalorder %v3646_v45, %v273_v32  ;;  %vm291_vm15 = vcmp.eq.s32.totalorder %v3646_v45, %v275_v1  ;;  %vm293_vm2 = vcmp.eq.s32.totalorder %v3646_v45, %v277_v51  ;;  %v3333_v32 = vld [vmem:[%s5509_s1 + $0x558] sm:$0xff]  ;;  %v3331_v1 = vld [vmem:[%s5509_s1 + $0x548] sm:$0xff]  ;;  %v3330_v51 = vld [vmem:[%s5509_s1 + $0x540] sm:$0xff] }
 0x7db   : > { %v1652_v28 = vpop.f32.mrf.mxu0  ;;  %vm295_vm5 = vcmp.eq.s32.totalorder %v3646_v45, %v279_v2  ;;  %vm296_vm6 = vcmp.eq.s32.totalorder %v3646_v45, %v280_v11  ;;  %v3328_v2 = vld [vmem:[%s5509_s1 + $0x530] sm:$0xff]  ;;  %v3326_v11 = vld [vmem:[%s5509_s1 + $0x520] sm:$0xff] }
 0x7dc   : > { %v1653_v49 = vadd.f32 %v4691_v33, %v1652_v28 }
 0x7de   : > { %v4700_v46 = vadd.f32 %v1717_v17, %v1653_v49 }
 0x7e0   : > { %v1763_v0 = vmax.f32 %v4700_v46, 0.0 }
 0x7e2   : > { %1951 = vmatmul.f32.gmra.mxu1 %v1763_v0 }
 0x7e3   : > { %v1655_v58 = vpop.f32.mrf.mxu0 }
 0x7e4   : > { %v1656_v30 = vadd.f32 %v4691_v33, %v1655_v58 }
 0x7e6   : > { %v4706_v5 = vadd.f32 %v1720_v38, %v1656_v30 }
 0x7e8   : > { %v1764_v48 = vmax.f32 %v4706_v5, 0.0  ;;  %v272_v5 = vadd.s32 1, %v3672_v59  ;;  %v274_v59 = vadd.s32 1, %v3644_v44  ;;  %v276_v44 = vadd.s32 1, %v3676_v60 }
 0x7e9   : > { %v278_v60 = vadd.s32 1, %v3713_v7  ;;  %v3302_v7 = vld [vmem:[%s5509_s1 + $0x4f0] sm:$0xff] }
 0x7ea   : > { %1954 = vmatmul.f32.gmra.mxu1 %v1764_v48  ;;  %vm288_vm12 = vcmp.eq.s32.totalorder %v3646_v45, %v272_v5  ;;  %vm290_vm14 = vcmp.eq.s32.totalorder %v3646_v45, %v274_v59  ;;  %vm292_vm1 = vcmp.eq.s32.totalorder %v3646_v45, %v276_v44  ;;  %v3334_v5 = vld [vmem:[%s5509_s1 + $0x560] sm:$0xff]  ;;  %v3332_v59 = vld [vmem:[%s5509_s1 + $0x550] sm:$0xff] }
 0x7eb   : > { %v1658_v63 = vpop.f32.mrf.mxu0  ;;  %vm294_vm4 = vcmp.eq.s32.totalorder %v3646_v45, %v278_v60  ;;  %v3329_v60 = vld [vmem:[%s5509_s1 + $0x538] sm:$0xff] }
 0x7ec   : > { %v1659_v41 = vadd.f32 %v4691_v33, %v1658_v63 }
 0x7ee   : > { %v4712_v47 = vadd.f32 %v1723_v25, %v1659_v41 }
 0x7f0   : > { %v1765_v39 = vmax.f32 %v4712_v47, 0.0 }
 0x7f2   : > { %1957 = vmatmul.f32.gmra.mxu1 %v1765_v39 }
 0x7f3   : > { %v1661_v20 = vpop.f32.mrf.mxu0 }
 0x7f4   : > { %v1662_v31 = vadd.f32 %v4691_v33, %v1661_v20 }
 0x7f6   : > { %v4718_v6 = vadd.f32 %v1726_v34, %v1662_v31  ;;  %v1750_v34 = vpop.f32.mrf.mxu2 }
 0x7f8   : > { %v1766_v54 = vmax.f32 %v4718_v6, 0.0  ;;  %v3303_v6 = vld [vmem:[%s5509_s1 + $0x4f8] sm:$0xff] }
 0x7f9   : > { %1997 = vmatpush.msra.mxu0 %v3303_v6  ;;  %v3327_v6 = vld [vmem:[%s5509_s1 + $0x528] sm:$0xff] }
 0x7fa   : > { %1960 = vmatmul.f32.gmra.mxu1 %v1766_v54 }
 0x7fb   : > { %v1664_v16 = vpop.f32.mrf.mxu0  ;;  %1998 = vmatpush.msra.mxu0 %v3302_v7 }
 0x7fc   : > { %v1665_v57 = vadd.f32 %v4691_v33, %v1664_v16 }
 0x7fe   : > { %v4724_v27 = vadd.f32 %v1729_v22, %v1665_v57 }
 0x800   : > { %v1767_v53 = vmax.f32 %v4724_v27, 0.0  ;;  %v271_v27 = vadd.s32 1, %v3652_v50 }
 0x802   : > { %1963 = vmatmul.f32.gmra.mxu1 %v1767_v53  ;;  %vm287_vm11 = vcmp.eq.s32.totalorder %v3646_v45, %v271_v27 }
 0x803   : > { %v1667_v35 = vpop.f32.mrf.mxu0 }
 0x804   : > { %v1668_v55 = vadd.f32 %v4691_v33, %v1667_v35 }
 0x806   : > { %v4730_v56 = vadd.f32 %v1732_v36, %v1668_v55  ;;  %v1753_v36 = vpop.f32.mrf.mxu2 }
 0x808   : > { %v1768_v61 = vmax.f32 %v4730_v56, 0.0 }
 0x80a   : > { %1966 = vmatmul.f32.gmra.mxu1 %v1768_v61 }
 0x80b   : > { %v1670_v62 = vpop.f32.mrf.mxu0 }
 0x80c   : > { %v1671_v3 = vadd.f32 %v4691_v33, %v1670_v62 }
 0x80e   : > { %v1736_v4 = vadd.f32 %v1735_v37, %v1671_v3  ;;  %v1756_v37 = vpop.f32.mrf.mxu2 }
 0x810   : > { %v1769_v8 = vmax.f32 %v1736_v4, 0.0 }
 0x812   : > { %1969 = vmatmul.f32.gmra.mxu1 %v1769_v8 }
 0x813   : > { %v1673_v9 = vpop.f32.mrf.mxu0 }
 0x814   : > { %v1674_v12 = vadd.f32 %v4691_v33, %v1673_v9 }
 0x816   : > { %v1739_v15 = vadd.f32 %v1738_v13, %v1674_v12  ;;  %v1759_v4 = vpop.f32.mrf.mxu2  ;;  %v3300_v12 = vld [vmem:[%s5509_s1 + $0x4e0] sm:$0xff] }
 0x818   : > { %v1770_v24 = vmax.f32 %v1739_v15, 0.0  ;;  %v3299_v15 = vld [vmem:[%s5509_s1 + $0x4d8] sm:$0xff] }
 0x81a   : > { %1972 = vmatmul.f32.gmra.mxu1 %v1770_v24 }
 0x81b   : > { %v1676_v18 = vpop.f32.mrf.mxu0 }
 0x81c   : > { %v1677_v17 = vadd.f32 %v4691_v33, %v1676_v18 }
 0x81e   : > { %v1742_v23 = vadd.f32 %v1741_v52, %v1677_v17  ;;  %v3297_v17 = vld [vmem:[%s5509_s1 + $0x4c8] sm:$0xff] }
 0x820   : > { %v1771_v19 = vmax.f32 %v1742_v23, 0.0  ;;  %v3296_v23 = vld [vmem:[%s5509_s1 + $0x4c0] sm:$0xff] }
 0x822   : > { %1975 = vmatmul.f32.gmra.mxu1 %v1771_v19 }
 0x823   : > { %v1679_v38 = vpop.f32.mrf.mxu0 }
 0x824   : > { %v1680_v21 = vadd.f32 %v4691_v33, %v1679_v38  ;;  %v3294_v38 = vld [vmem:[%s5509_s1 + $0x4b0] sm:$0xff] }
 0x826   : > { %v1745_v29 = vadd.f32 %v1744_v10, %v1680_v21  ;;  %v5525_v10 = vld [vmem:[#allocation2_spill] sm:$0xff] }
 0x827   : > { %v281_v18 = vadd.s32 1, %v5525_v10 }
 0x828   : > { %v1772_v43 = vmax.f32 %v1745_v29, 0.0 }
 0x82a   : > { %1978 = vmatmul.f32.gmra.mxu1 %v1772_v43 }
 0x82b   : > { %v1682_v25 = vpop.f32.mrf.mxu0 }
 0x82c   : > { %v1683_v28 = vadd.f32 %v4691_v33, %v1682_v25  ;;  %v3292_v25 = vld [vmem:[%s5509_s1 + $0x4a0] sm:$0xff] }
 0x82e   : > { %v1748_v49 = vadd.f32 %v1747_v26, %v1683_v28  ;;  %v5526_v26 = vld [vmem:[#allocation3_spill] sm:$0xff]  ;;  %v3291_v28 = vld [vmem:[%s5509_s1 + $0x498] sm:$0xff] }
 0x82f   : > { %v282_v29 = vadd.s32 1, %v5526_v26 }
 0x830   : > { %v1773_v58 = vmax.f32 %v1748_v49, 0.0  ;;  %v3290_v49 = vld [vmem:[%s5509_s1 + $0x490] sm:$0xff] }
 0x832   : > { %1981 = vmatmul.f32.gmra.mxu1 %v1773_v58 }
 0x833   : > { %v1685_v30 = vpop.f32.mrf.mxu0 }
 0x834   : > { %v1686_v22 = vadd.f32 %v4691_v33, %v1685_v30 }
 0x836   : > { %v1751_v63 = vadd.f32 %v1750_v34, %v1686_v22  ;;  %v3289_v22 = vld [vmem:[%s5509_s1 + $0x488] sm:$0xff] }
 0x838   : > { %v1774_v41 = vmax.f32 %v1751_v63, 0.0  ;;  %v3288_v63 = vld [vmem:[%s5509_s1 + $0x480] sm:$0xff] }
 0x83a   : > { %1984 = vmatmul.f32.gmra.mxu1 %v1774_v41 }
 0x83b   : > { %v1688_v20 = vpop.f32.mrf.mxu0 }
 0x83c   : > { %v1689_v31 = vadd.f32 %v4691_v33, %v1688_v20 }
 0x83e   : > { %v1754_v16 = vadd.f32 %v1753_v36, %v1689_v31  ;;  %v5528_v36 = vld [vmem:[#allocation5_spill] sm:$0xff] }
 0x83f   : > { %v284_v20 = vadd.s32 1, %v5528_v36 }
 0x840   : > { %v1775_v57 = vmax.f32 %v1754_v16, 0.0  ;;  %v5529_v16 = vld [vmem:[#allocation6_spill] sm:$0xff] }
 0x842   : > { %1987 = vmatmul.f32.gmra.mxu1 %v1775_v57 }
 0x843   : > { %v1691_v35 = vpop.f32.mrf.mxu0 }
 0x844   : > { %v1692_v55 = vadd.f32 %v4691_v33, %v1691_v35 }
 0x846   : > { %v1757_v56 = vadd.f32 %v1756_v37, %v1692_v55 }
 0x848   : > { %v1776_v13 = vmax.f32 %v1757_v56, 0.0 }
 0x84a   : > { %1990 = vmatmul.f32.gmra.mxu1 %v1776_v13 }
 0x84b   : > { %v1694_v62 = vpop.f32.mrf.mxu0 }
 0x84c   : > { %v1695_v3 = vadd.f32 %v4691_v33, %v1694_v62  ;;  %v270_v33 = vadd.s32 1, %v3641_v40 }
 0x84e   : > { %v1760_v52 = vadd.f32 %v1759_v4, %v1695_v3  ;;  %vm286_vm10 = vcmp.eq.s32.totalorder %v3646_v45, %v270_v33  ;;  %v3336_v33 = vld [vmem:[%s5509_s1 + $0x570] sm:$0xff] }
 0x850   : > { %v1777_v9 = vmax.f32 %v1760_v52, 0.0 }
 0x852   : > { %3255 = vmatpush.msk.msrb.mxu3 %vm446_vm0, %v1777_v9  ;;  %1993 = vmatmul.f32.gmra.mxu1 %v1777_v9  ;;  %v3337_v9 = vld [vmem:[%s5509_s1 + $0x578] sm:$0xff] }
 0x854   : > { %1830 = vmatpush.msrb.mxu3 %v1776_v13 }
 0x856   : > { %1831 = vmatpush.msrb.mxu3 %v1775_v57  ;;  %v285_v57 = vadd.s32 1, %v5529_v16 }
 0x858   : > { %1832 = vmatpush.msrb.mxu3 %v1774_v41 }
 0x85a   : > { %1833 = vmatpush.msrb.mxu3 %v1773_v58  ;;  %v5527_v58 = vld [vmem:[#allocation4_spill] sm:$0xff] }
 0x85b   : > { %v283_v30 = vadd.s32 1, %v5527_v58 }
 0x85c   : > { %1834 = vmatpush.msrb.mxu3 %v1772_v43  ;;  %v3293_v43 = vld [vmem:[%s5509_s1 + $0x4a8] sm:$0xff] }
 0x85e   : > { %1835 = vmatpush.msrb.mxu3 %v1771_v19  ;;  %v3295_v19 = vld [vmem:[%s5509_s1 + $0x4b8] sm:$0xff] }
 0x860   : > { %1836 = vmatpush.msrb.mxu3 %v1770_v24 }
 0x862   : > { %1837 = vmatpush.msrb.mxu3 %v1769_v8 }
 0x864   : > { %1838 = vmatpush.msrb.mxu3 %v1768_v61  ;;  %v5524_v61 = vmov 0.0  }
 0x865   : > { %v4756_v8 = vsel %vm286_vm10, 1.0, %v5524_v61  ;;  %v4765_v40 = vsel %vm287_vm11, 1.0, %v5524_v61  ;;  %v4772_v50 = vsel %vm288_vm12, 1.0, %v5524_v61  ;;  %v4786_v46 = vsel %vm290_vm14, 1.0, %v5524_v61 }
 0x866   : > { %1839 = vmatpush.msrb.mxu3 %v1767_v53  ;;  %v4807_v47 = vsel %vm293_vm2, 1.0, %v5524_v61  ;;  %v3301_v53 = vld [vmem:[%s5509_s1 + $0x4e8] sm:$0xff]  ;;  %v4846_v24 = vsel %vm296_vm6, 1.0, %v5524_v61  ;;  %vm297_vm10 = vcmp.eq.s32.totalorder %v3646_v45, %v281_v18  ;;  %vm298_vm11 = vcmp.eq.s32.totalorder %v3646_v45, %v282_v29  ;;  %v3322_v18 = vld [vmem:[%s5509_s1 + $0x500] sm:$0xff] }
 0x867   : > { %1999 = vmatpush.msra.mxu0 %v3301_v53  ;;  %v4865_v21 = vsel %vm297_vm10, 1.0, %v5524_v61  ;;  %v4884_v34 = vsel %vm298_vm11, 1.0, %v5524_v61  ;;  %vm299_vm12 = vcmp.eq.s32.totalorder %v3646_v45, %v283_v30  ;;  %vm301_vm14 = vcmp.eq.s32.totalorder %v3646_v45, %v285_v57  ;;  %v3325_v53 = vld [vmem:[%s5509_s1 + $0x518] sm:$0xff]  ;;  %v4966_v29 = vld [vmem:[%s5510_s2 + $0x4] ss:$0 sm:$0xff] }
 0x868   : > { %1840 = vmatpush.msrb.mxu3 %v1766_v54  ;;  %v4827_v54 = vsel %vm295_vm5, 1.0, %v5524_v61  ;;  %v4897_v41 = vsel %vm299_vm12, 1.0, %v5524_v61  ;;  %v4911_v37 = vsel %vm301_vm14, 1.0, %v5524_v61 }
 0x869   : > { %2000 = vmatpush.msra.mxu0 %v3300_v12  ;;  %v1949_v12 = vpop.f32.mrf.mxu1 }
 0x86a   : > { %1841 = vmatpush.msrb.mxu3 %v1765_v39  ;;  %v4814_v39 = vsel %vm294_vm4, 1.0, %v5524_v61 }
 0x86b   : > { %2001 = vmatpush.msra.mxu0 %v3299_v15  ;;  %v3324_v15 = vld [vmem:[%s5509_s1 + $0x510] sm:$0xff] }
 0x86c   : > { %1842 = vmatpush.msrb.mxu3 %v1764_v48  ;;  %v4800_v48 = vsel %vm292_vm1, 1.0, %v5524_v61 }
 0x86d   : > { %2002 = vmatpush.msra.mxu0 %v3298_v14  ;;  %v3323_v14 = vld [vmem:[%s5509_s1 + $0x508] sm:$0xff] }
 0x86e   : > { %1843 = vmatpush.msrb.mxu3 %v1763_v0  ;;  %v4793_v0 = vsel %vm291_vm15, 1.0, %v5524_v61 }
 0x86f   : > { %2003 = vmatpush.msra.mxu0 %v3297_v17 }
 0x870   : > { %1844 = vmatpush.msrb.mxu3 %v1762_v42  ;;  %v4779_v42 = vsel %vm289_vm13, 1.0, %v5524_v61  ;;  %vm300_vm13 = vcmp.eq.s32.totalorder %v3646_v45, %v284_v20 }
 0x871   : > { %3256 = vmatmul.msk.f32.vlgmr.msrb.gmra.mxu3 %vm397_vm3, %v4756_v8  ;;  %2004 = vmatpush.msra.mxu0 %v3296_v23  ;;  %v4904_v31 = vsel %vm300_vm13, 1.0, %v5524_v61  ;;  %v3335_v61 = vld [vmem:[%s5509_s1 + $0x568] sm:$0xff]  ;;  %v1952_v17 = vpop.f32.mrf.mxu1 }
 0x872   : > { %2224 = vmatpush.msra.mxu3 %v3337_v9 }
 0x873   : > { %2005 = vmatpush.msra.mxu0 %v3295_v19 }
 0x874   : > { %2225 = vmatpush.msra.mxu3 %v3336_v33 }
 0x875   : > { %2006 = vmatpush.msra.mxu0 %v3294_v38 }
 0x876   : > { %2226 = vmatpush.msra.mxu3 %v3335_v61 }
 0x877   : > { %2007 = vmatpush.msra.mxu0 %v3293_v43 }
 0x878   : > { %2227 = vmatpush.msra.mxu3 %v3334_v5 }
 0x879   : > { %3257 = vmatmul.msk.f32.gmra.mxu3 %vm397_vm3, %v4765_v40  ;;  %2008 = vmatpush.msra.mxu0 %v3292_v25  ;;  %v1955_v19 = vpop.f32.mrf.mxu1  ;;  %v1950_v25 = vadd.f32 %v4966_v29, %v1949_v12 }
 0x87a   : > { %2228 = vmatpush.msra.mxu3 %v3333_v32  ;;  %v1956_v16 = vadd.f32 %v4966_v29, %v1955_v19 }
 0x87b   : > { %2009 = vmatpush.msra.mxu0 %v3291_v28 }
 0x87c   : > { %2229 = vmatpush.msra.mxu3 %v3332_v59 }
 0x87d   : > { %2010 = vmatpush.msra.mxu0 %v3290_v49 }
 0x87e   : > { %2230 = vmatpush.msra.mxu3 %v3331_v1 }
 0x87f   : > { %2011 = vmatpush.msra.mxu0 %v3289_v22  ;;  %v1953_v22 = vadd.f32 %v4966_v29, %v1952_v17 }
 0x880   : > { %2231 = vmatpush.msra.mxu3 %v3330_v51 }
 0x881   : > { %3258 = vmatmul.msk.f32.gmra.mxu3 %vm397_vm3, %v4772_v50  ;;  %2012 = vmatpush.msra.mxu0 %v3288_v63  ;;  %v1958_v43 = vpop.f32.mrf.mxu1 }
 0x882   : > { %2232 = vmatpush.msra.mxu3 %v3329_v60 }
 0x884   : > { %2233 = vmatpush.msra.mxu3 %v3328_v2 }
 0x886   : > { %2234 = vmatpush.msra.mxu3 %v3327_v6 }
 0x888   : > { %2235 = vmatpush.msra.mxu3 %v3326_v11 }
 0x889   : > { %3259 = vmatmul.msk.f32.gmra.mxu3 %vm397_vm3, %v4779_v42  ;;  %v1961_v30 = vpop.f32.mrf.mxu1 }
 0x88a   : > { %2236 = vmatpush.msra.mxu3 %v3325_v53 }
 0x88c   : > { %2237 = vmatpush.msra.mxu3 %v3324_v15 }
 0x88e   : > { %2238 = vmatpush.msra.mxu3 %v3323_v14 }
 0x890   : > { %2239 = vmatpush.msra.mxu3 %v3322_v18 }
 0x891   : > { %3260 = vmatmul.msk.f32.gmra.mxu3 %vm397_vm3, %v4786_v46  ;;  %v1964_v57 = vpop.f32.mrf.mxu1 }
 0x892   : > { %v1965_v5 = vadd.f32 %v4966_v29, %v1964_v57 }
 0x899   : > { %3261 = vmatmul.msk.f32.gmra.mxu3 %vm397_vm3, %v4793_v0 }
 0x8a1   : > { %3262 = vmatmul.msk.f32.gmra.mxu3 %vm397_vm3, %v4800_v48 }
 0x8a9   : > { %3263 = vmatmul.msk.f32.gmra.mxu3 %vm397_vm3, %v4807_v47 }
 0x8b1   : > { %3264 = vmatmul.msk.f32.gmra.mxu3 %vm397_vm3, %v4814_v39 }
 0x8b9   : > { %3265 = vmatmul.msk.f32.gmra.mxu3 %vm397_vm3, %v4827_v54 }
 0x8c1   : > { %3266 = vmatmul.msk.f32.gmra.mxu3 %vm397_vm3, %v4846_v24 }
 0x8c9   : > { %3267 = vmatmul.msk.f32.gmra.mxu3 %vm397_vm3, %v4865_v21 }
 0x8d1   : > { %3268 = vmatmul.msk.f32.gmra.mxu3 %vm397_vm3, %v4884_v34 }
 0x8d9   : > { %3269 = vmatmul.msk.f32.gmra.mxu3 %vm397_vm3, %v4897_v41 }
 0x8e1   : > { %3270 = vmatmul.msk.f32.gmra.mxu3 %vm397_vm3, %v4904_v31 }
 0x8e9   : > { %3271 = vmatmul.msk.f32.gmra.mxu3 %vm397_vm3, %v4911_v37 }
 0x8f4   : > { %v1846_v35 = vpop.f32.mrf.mxu3 }
 0x8f5   : > { %2013 = vmatmul.f32.vlgmr.msra.gmra.mxu0 %v1846_v35 }
 0x8fc   : > { %v1849_v55 = vpop.f32.mrf.mxu3 }
 0x8fd   : > { %2016 = vmatmul.f32.gmra.mxu0 %v1849_v55 }
 0x904   : > { %v1852_v56 = vpop.f32.mrf.mxu3 }
 0x905   : > { %2019 = vmatmul.f32.gmra.mxu0 %v1852_v56 }
 0x90c   : > { %v1855_v13 = vpop.f32.mrf.mxu3 }
 0x90d   : > { %2022 = vmatmul.f32.gmra.mxu0 %v1855_v13  ;;  %v1959_v13 = vadd.f32 %v4966_v29, %v1958_v43 }
 0x914   : > { %v1858_v62 = vpop.f32.mrf.mxu3 }
 0x915   : > { %2025 = vmatmul.f32.gmra.mxu0 %v1858_v62 }
 0x91c   : > { %v1861_v3 = vpop.f32.mrf.mxu3 }
 0x91d   : > { %2028 = vmatmul.f32.gmra.mxu0 %v1861_v3 }
 0x924   : > { %v1864_v4 = vpop.f32.mrf.mxu3 }
 0x925   : > { %2031 = vmatmul.f32.gmra.mxu0 %v1864_v4  ;;  %v1967_v4 = vpop.f32.mrf.mxu1 }
 0x926   : > { %v1968_v51 = vadd.f32 %v4966_v29, %v1967_v4 }
 0x92c   : > { %v1867_v45 = vpop.f32.mrf.mxu3 }
 0x92d   : > { %2034 = vmatmul.f32.gmra.mxu0 %v1867_v45 }
 0x934   : > { %v1870_v52 = vpop.f32.mrf.mxu3 }
 0x935   : > { %2037 = vmatmul.f32.gmra.mxu0 %v1870_v52  ;;  %v1962_v52 = vadd.f32 %v4966_v29, %v1961_v30 }
 0x93c   : > { %v1873_v27 = vpop.f32.mrf.mxu3 }
 0x93d   : > { %2040 = vmatmul.f32.gmra.mxu0 %v1873_v27  ;;  %v1970_v27 = vpop.f32.mrf.mxu1 }
 0x944   : > { %v1876_v44 = vpop.f32.mrf.mxu3 }
 0x945   : > { %2043 = vmatmul.f32.gmra.mxu0 %v1876_v44  ;;  %v1973_v44 = vpop.f32.mrf.mxu1 }
 0x946   : > { %v1974_v14 = vadd.f32 %v4966_v29, %v1973_v44 }
 0x94c   : > { %v1879_v7 = vpop.f32.mrf.mxu3 }
 0x94d   : > { %2046 = vmatmul.f32.gmra.mxu0 %v1879_v7  ;;  %v1971_v7 = vadd.f32 %v4966_v29, %v1970_v27  ;;  %v1976_v11 = vpop.f32.mrf.mxu1 }
 0x94e   : > { %v1977_v19 = vadd.f32 %v4966_v29, %v1976_v11 }
 0x954   : > { %v1882_v10 = vpop.f32.mrf.mxu3 }
 0x955   : > { %2049 = vmatmul.f32.gmra.mxu0 %v1882_v10  ;;  %v1979_v17 = vpop.f32.mrf.mxu1 }
 0x95c   : > { %v1885_v23 = vpop.f32.mrf.mxu3 }
 0x95d   : > { %2052 = vmatmul.f32.gmra.mxu0 %v1885_v23 }
 0x964   : > { %v1888_v38 = vpop.f32.mrf.mxu3 }
 0x965   : > { %2055 = vmatmul.f32.gmra.mxu0 %v1888_v38 }
 0x96c   : > { %v1891_v26 = vpop.f32.mrf.mxu3 }
 0x96d   : > { %2058 = vmatmul.f32.gmra.mxu0 %v1891_v26 }
 0x972   : > { %v2014_v28 = vpop.f32.mrf.mxu0 }
 0x973   : > { %v4969_v49 = vadd.f32 %v2014_v28, %v1950_v25  ;;  %v1982_v25 = vpop.f32.mrf.mxu1  ;;  %v1980_v28 = vadd.f32 %v4966_v29, %v1979_v17 }
 0x974   : > { %v1983_v57 = vadd.f32 %v4966_v29, %v1982_v25  ;;  %v3393_v25 = vld [vmem:[%s5509_s1 + $0x668] sm:$0xff] }
 0x975   : > { %v2062_v58 = vmax.f32 %v4969_v49, 0.0  ;;  %v3344_v49 = vld [vmem:[%s5509_s1 + $0x5b0] sm:$0xff] }
 0x977   : > { %2240 = vmatmul.f32.vlgmr.msra.gmra.mxu3 %v2062_v58 }
 0x97a   : > { %v2017_v63 = vpop.f32.mrf.mxu0 }
 0x97b   : > { %v4975_v36 = vadd.f32 %v2017_v63, %v1953_v22 }
 0x97d   : > { %v2063_v20 = vmax.f32 %v4975_v36, 0.0  ;;  %v3342_v36 = vld [vmem:[%s5509_s1 + $0x5a0] sm:$0xff] }
 0x97f   : > { %2243 = vmatmul.f32.gmra.mxu3 %v2063_v20 }
 0x982   : > { %v2020_v35 = vpop.f32.mrf.mxu0 }
 0x983   : > { %v4981_v55 = vadd.f32 %v2020_v35, %v1956_v16  ;;  %v1985_v16 = vpop.f32.mrf.mxu1 }
 0x984   : > { %v1986_v4 = vadd.f32 %v4966_v29, %v1985_v16  ;;  %v3389_v16 = vld [vmem:[%s5509_s1 + $0x648] sm:$0xff] }
 0x985   : > { %v2064_v56 = vmax.f32 %v4981_v55, 0.0  ;;  %v3340_v55 = vld [vmem:[%s5509_s1 + $0x590] sm:$0xff] }
 0x987   : > { %2246 = vmatmul.f32.gmra.mxu3 %v2064_v56 }
 0x98a   : > { %v2023_v62 = vpop.f32.mrf.mxu0 }
 0x98b   : > { %v4987_v3 = vadd.f32 %v2023_v62, %v1959_v13 }
 0x98d   : > { %v2065_v45 = vmax.f32 %v4987_v3, 0.0  ;;  %v3338_v3 = vld [vmem:[%s5509_s1 + $0x580] sm:$0xff] }
 0x98f   : > { %2249 = vmatmul.f32.gmra.mxu3 %v2065_v45 }
 0x992   : > { %v2026_v9 = vpop.f32.mrf.mxu0 }
 0x993   : > { %v4993_v33 = vadd.f32 %v2026_v9, %v1962_v52  ;;  %v1988_v52 = vpop.f32.mrf.mxu1 }
 0x995   : > { %v2066_v61 = vmax.f32 %v4993_v33, 0.0 }
 0x997   : > { %2252 = vmatmul.f32.gmra.mxu3 %v2066_v61 }
 0x99a   : > { %v2029_v32 = vpop.f32.mrf.mxu0 }
 0x99b   : > { %v4999_v59 = vadd.f32 %v2029_v32, %v1965_v5  ;;  %v1989_v32 = vadd.f32 %v4966_v29, %v1988_v52 }
 0x99d   : > { %v2067_v1 = vmax.f32 %v4999_v59, 0.0 }
 0x99f   : > { %2255 = vmatmul.f32.gmra.mxu3 %v2067_v1 }
 0x9a2   : > { %v2032_v60 = vpop.f32.mrf.mxu0 }
 0x9a3   : > { %v5005_v2 = vadd.f32 %v2032_v60, %v1968_v51  ;;  %v1991_v60 = vpop.f32.mrf.mxu1 }
 0x9a5   : > { %v2068_v6 = vmax.f32 %v5005_v2, 0.0 }
 0x9a7   : > { %2258 = vmatmul.f32.gmra.mxu3 %v2068_v6 }
 0x9aa   : > { %v2035_v53 = vpop.f32.mrf.mxu0 }
 0x9ab   : > { %v2036_v12 = vadd.f32 %v2035_v53, %v1971_v7  ;;  %v1992_v7 = vadd.f32 %v4966_v29, %v1991_v60  ;;  %v3380_v60 = vld [vmem:[%s5509_s1 + $0x600] sm:$0xff] }
 0x9ad   : > { %v2069_v15 = vmax.f32 %v2036_v12, 0.0 }
 0x9af   : > { %2261 = vmatmul.f32.gmra.mxu3 %v2069_v15 }
 0x9b2   : > { %v2038_v10 = vpop.f32.mrf.mxu0 }
 0x9b3   : > { %v2039_v18 = vadd.f32 %v2038_v10, %v1974_v14  ;;  %v1994_v14 = vpop.f32.mrf.mxu1 }
 0x9b4   : > { %v1995_v10 = vadd.f32 %v4966_v29, %v1994_v14  ;;  %v3345_v29 = vld [vmem:[%s5509_s1 + $0x5b8] sm:$0xff]  ;;  %v5152_v14 = vld [vmem:[%s5510_s2 + $0x5] ss:$0 sm:$0xff] }
 0x9b5   : > { %v2070_v23 = vmax.f32 %v2039_v18, 0.0  ;;  %2297 = vmatpush.msra.mxu1 %v3345_v29 }
 0x9b7   : > { %2264 = vmatmul.f32.gmra.mxu3 %v2070_v23  ;;  %2298 = vmatpush.msra.mxu1 %v3344_v49 }
 0x9ba   : > { %v2041_v38 = vpop.f32.mrf.mxu0 }
 0x9bb   : > { %v2042_v26 = vadd.f32 %v2041_v38, %v1977_v19 }
 0x9bd   : > { %v2071_v43 = vmax.f32 %v2042_v26, 0.0  ;;  %v3395_v26 = vld [vmem:[%s5509_s1 + $0x678] sm:$0xff] }
 0x9bf   : > { %2267 = vmatmul.f32.gmra.mxu3 %v2071_v43 }
 0x9c2   : > { %v2044_v30 = vpop.f32.mrf.mxu0 }
 0x9c3   : > { %v2045_v22 = vadd.f32 %v2044_v30, %v1980_v28  ;;  %v3392_v30 = vld [vmem:[%s5509_s1 + $0x660] sm:$0xff] }
 0x9c5   : > { %v2072_v63 = vmax.f32 %v2045_v22, 0.0  ;;  %v3391_v22 = vld [vmem:[%s5509_s1 + $0x658] sm:$0xff] }
 0x9c7   : > { %2270 = vmatmul.f32.gmra.mxu3 %v2072_v63 }
 0x9ca   : > { %v2047_v35 = vpop.f32.mrf.mxu0 }
 0x9cb   : > { %v2048_v13 = vadd.f32 %v2047_v35, %v1983_v57  ;;  %v3388_v35 = vld [vmem:[%s5509_s1 + $0x640] sm:$0xff] }
 0x9cd   : > { %v2073_v62 = vmax.f32 %v2048_v13, 0.0  ;;  %v3387_v13 = vld [vmem:[%s5509_s1 + $0x638] sm:$0xff] }
 0x9cf   : > { %2273 = vmatmul.f32.gmra.mxu3 %v2073_v62 }
 0x9d2   : > { %v2050_v9 = vpop.f32.mrf.mxu0 }
 0x9d3   : > { %v2051_v27 = vadd.f32 %v2050_v9, %v1986_v4  ;;  %v3385_v4 = vld [vmem:[%s5509_s1 + $0x628] sm:$0xff]  ;;  %v3384_v9 = vld [vmem:[%s5509_s1 + $0x620] sm:$0xff] }
 0x9d5   : > { %v2074_v5 = vmax.f32 %v2051_v27, 0.0  ;;  %v3383_v27 = vld [vmem:[%s5509_s1 + $0x618] sm:$0xff] }
 0x9d7   : > { %2276 = vmatmul.f32.gmra.mxu3 %v2074_v5 }
 0x9da   : > { %v2053_v44 = vpop.f32.mrf.mxu0 }
 0x9db   : > { %v2054_v51 = vadd.f32 %v2053_v44, %v1989_v32  ;;  %v3382_v32 = vld [vmem:[%s5509_s1 + $0x610] sm:$0xff]  ;;  %v3381_v44 = vld [vmem:[%s5509_s1 + $0x608] sm:$0xff] }
 0x9dd   : > { %v2075_v2 = vmax.f32 %v2054_v51, 0.0 }
 0x9df   : > { %2279 = vmatmul.f32.gmra.mxu3 %v2075_v2 }
 0x9e2   : > { %v2056_v11 = vpop.f32.mrf.mxu0 }
 0x9e3   : > { %v2057_v53 = vadd.f32 %v2056_v11, %v1992_v7 }
 0x9e5   : > { %v2076_v12 = vmax.f32 %v2057_v53, 0.0 }
 0x9e7   : > { %2282 = vmatmul.f32.gmra.mxu3 %v2076_v12 }
 0x9ea   : > { %v2059_v18 = vpop.f32.mrf.mxu0 }
 0x9eb   : > { %v2060_v17 = vadd.f32 %v2059_v18, %v1995_v10 }
 0x9ed   : > { %v2077_v19 = vmax.f32 %v2060_v17, 0.0 }
 0x9ef   : > { %3305 = vmatpush.msk.msrb.mxu2 %vm446_vm0, %v2077_v19  ;;  %2285 = vmatmul.f32.gmra.mxu3 %v2077_v19 }
 0x9f1   : > { %2082 = vmatpush.msrb.mxu2 %v2076_v12 }
 0x9f3   : > { %2083 = vmatpush.msrb.mxu2 %v2075_v2 }
 0x9f5   : > { %2084 = vmatpush.msrb.mxu2 %v2074_v5 }
 0x9f7   : > { %2085 = vmatpush.msrb.mxu2 %v2073_v62  ;;  %v3386_v62 = vld [vmem:[%s5509_s1 + $0x630] sm:$0xff] }
 0x9f9   : > { %2086 = vmatpush.msrb.mxu2 %v2072_v63  ;;  %v3390_v63 = vld [vmem:[%s5509_s1 + $0x650] sm:$0xff] }
 0x9fa   : > { %v2241_v5 = vpop.f32.mrf.mxu3 }
 0x9fb   : > { %2087 = vmatpush.msrb.mxu2 %v2071_v43  ;;  %v3394_v43 = vld [vmem:[%s5509_s1 + $0x670] sm:$0xff]  ;;  %v2242_v18 = vadd.f32 %v5152_v14, %v2241_v5 }
 0x9fd   : > { %2088 = vmatpush.msrb.mxu2 %v2070_v23 }
 0x9ff   : > { %2089 = vmatpush.msrb.mxu2 %v2069_v15 }
 0xa01   : > { %2090 = vmatpush.msrb.mxu2 %v2068_v6 }
 0xa02   : > { %v2244_v2 = vpop.f32.mrf.mxu3 }
 0xa03   : > { %2091 = vmatpush.msrb.mxu2 %v2067_v1 }
 0xa05   : > { %2092 = vmatpush.msrb.mxu2 %v2066_v61 }
 0xa07   : > { %2093 = vmatpush.msrb.mxu2 %v2065_v45 }
 0xa09   : > { %2094 = vmatpush.msrb.mxu2 %v2064_v56  ;;  %v3339_v56 = vld [vmem:[%s5509_s1 + $0x588] sm:$0xff] }
 0xa0a   : > { %v2247_v11 = vpop.f32.mrf.mxu3 }
 0xa0b   : > { %2095 = vmatpush.msrb.mxu2 %v2063_v20  ;;  %v3341_v20 = vld [vmem:[%s5509_s1 + $0x598] sm:$0xff] }
 0xa0d   : > { %2096 = vmatpush.msrb.mxu2 %v2062_v58  ;;  %v3343_v58 = vld [vmem:[%s5509_s1 + $0x5a8] sm:$0xff] }
 0xa0e   : > { %3306 = vmatmul.msk.f32.vlgmr.msrb.gmra.mxu2 %vm397_vm3, %v4756_v8  ;;  %2299 = vmatpush.msra.mxu1 %v3343_v58  ;;  %v2245_v58 = vadd.f32 %v5152_v14, %v2244_v2 }
 0xa0f   : > { %2512 = vmatpush.msra.mxu2 %v3395_v26 }
 0xa10   : > { %2300 = vmatpush.msra.mxu1 %v3342_v36 }
 0xa11   : > { %2513 = vmatpush.msra.mxu2 %v3394_v43 }
 0xa12   : > { %2301 = vmatpush.msra.mxu1 %v3341_v20  ;;  %v2250_v10 = vpop.f32.mrf.mxu3 }
 0xa13   : > { %2514 = vmatpush.msra.mxu2 %v3393_v25 }
 0xa14   : > { %2302 = vmatpush.msra.mxu1 %v3340_v55 }
 0xa15   : > { %2515 = vmatpush.msra.mxu2 %v3392_v30 }
 0xa16   : > { %3307 = vmatmul.msk.f32.gmra.mxu2 %vm397_vm3, %v4765_v40  ;;  %2303 = vmatpush.msra.mxu1 %v3339_v56  ;;  %v2248_v56 = vadd.f32 %v5152_v14, %v2247_v11 }
 0xa17   : > { %2516 = vmatpush.msra.mxu2 %v3391_v22 }
 0xa18   : > { %2304 = vmatpush.msra.mxu1 %v3338_v3 }
 0xa19   : > { %2517 = vmatpush.msra.mxu2 %v3390_v63 }
 0xa1a   : > { %v2253_v49 = vpop.f32.mrf.mxu3 }
 0xa1b   : > { %2518 = vmatpush.msra.mxu2 %v3389_v16 }
 0xa1d   : > { %2519 = vmatpush.msra.mxu2 %v3388_v35 }
 0xa1e   : > { %3308 = vmatmul.msk.f32.gmra.mxu2 %vm397_vm3, %v4772_v50 }
 0xa1f   : > { %2520 = vmatpush.msra.mxu2 %v3387_v13 }
 0xa21   : > { %2521 = vmatpush.msra.mxu2 %v3386_v62 }
 0xa22   : > { %v2256_v3 = vpop.f32.mrf.mxu3 }
 0xa23   : > { %2522 = vmatpush.msra.mxu2 %v3385_v4  ;;  %v2257_v30 = vadd.f32 %v5152_v14, %v2256_v3 }
 0xa25   : > { %2523 = vmatpush.msra.mxu2 %v3384_v9 }
 0xa26   : > { %3309 = vmatmul.msk.f32.gmra.mxu2 %vm397_vm3, %v4779_v42 }
 0xa27   : > { %2524 = vmatpush.msra.mxu2 %v3383_v27 }
 0xa29   : > { %2525 = vmatpush.msra.mxu2 %v3382_v32 }
 0xa2b   : > { %2526 = vmatpush.msra.mxu2 %v3381_v44 }
 0xa2d   : > { %2527 = vmatpush.msra.mxu2 %v3380_v60 }
 0xa2e   : > { %3310 = vmatmul.msk.f32.gmra.mxu2 %vm397_vm3, %v4786_v46 }
 0xa36   : > { %3311 = vmatmul.msk.f32.gmra.mxu2 %vm397_vm3, %v4793_v0 }
 0xa3e   : > { %3312 = vmatmul.msk.f32.gmra.mxu2 %vm397_vm3, %v4800_v48 }
 0xa46   : > { %3313 = vmatmul.msk.f32.gmra.mxu2 %vm397_vm3, %v4807_v47 }
 0xa4e   : > { %3314 = vmatmul.msk.f32.gmra.mxu2 %vm397_vm3, %v4814_v39 }
 0xa56   : > { %3315 = vmatmul.msk.f32.gmra.mxu2 %vm397_vm3, %v4827_v54 }
 0xa5e   : > { %3316 = vmatmul.msk.f32.gmra.mxu2 %vm397_vm3, %v4846_v24 }
 0xa66   : > { %3317 = vmatmul.msk.f32.gmra.mxu2 %vm397_vm3, %v4865_v21 }
 0xa6e   : > { %3318 = vmatmul.msk.f32.gmra.mxu2 %vm397_vm3, %v4884_v34 }
 0xa76   : > { %3319 = vmatmul.msk.f32.gmra.mxu2 %vm397_vm3, %v4897_v41 }
 0xa7e   : > { %3320 = vmatmul.msk.f32.gmra.mxu2 %vm397_vm3, %v4904_v31 }
 0xa86   : > { %3321 = vmatmul.msk.f32.gmra.mxu2 %vm397_vm3, %v4911_v37 }
 0xa91   : > { %v2098_v45 = vpop.f32.mrf.mxu2 }
 0xa92   : > { %3347 = vmatmul.msk.f32.vlgmr.msra.gmra.mxu1 %vm1553_vm9, %v2098_v45 }
 0xa99   : > { %v2101_v33 = vpop.f32.mrf.mxu2 }
 0xa9a   : > { %3348 = vmatmul.msk.f32.gmra.mxu1 %vm1553_vm9, %v2101_v33 }
 0xaa1   : > { %v2104_v61 = vpop.f32.mrf.mxu2 }
 0xaa2   : > { %3349 = vmatmul.msk.f32.gmra.mxu1 %vm1553_vm9, %v2104_v61 }
 0xaa9   : > { %v2107_v59 = vpop.f32.mrf.mxu2 }
 0xaaa   : > { %3350 = vmatmul.msk.f32.gmra.mxu1 %vm1553_vm9, %v2107_v59  ;;  %v2251_v59 = vadd.f32 %v5152_v14, %v2250_v10 }
 0xab1   : > { %v2110_v1 = vpop.f32.mrf.mxu2 }
 0xab2   : > { %3351 = vmatmul.msk.f32.gmra.mxu1 %vm1553_vm9, %v2110_v1 }
 0xab9   : > { %v2113_v6 = vpop.f32.mrf.mxu2 }
 0xaba   : > { %3352 = vmatmul.msk.f32.gmra.mxu1 %vm1553_vm9, %v2113_v6 }
 0xac1   : > { %v2116_v15 = vpop.f32.mrf.mxu2 }
 0xac2   : > { %3353 = vmatmul.msk.f32.gmra.mxu1 %vm1553_vm9, %v2116_v15  ;;  %v2259_v15 = vpop.f32.mrf.mxu3 }
 0xac3   : > { %v2260_v35 = vadd.f32 %v5152_v14, %v2259_v15 }
 0xac9   : > { %v2119_v23 = vpop.f32.mrf.mxu2 }
 0xaca   : > { %3354 = vmatmul.msk.f32.gmra.mxu1 %vm1553_vm9, %v2119_v23 }
 0xad1   : > { %v2122_v38 = vpop.f32.mrf.mxu2 }
 0xad2   : > { %3355 = vmatmul.msk.f32.gmra.mxu1 %vm1553_vm9, %v2122_v38  ;;  %v2254_v38 = vadd.f32 %v5152_v14, %v2253_v49 }
 0xad9   : > { %v2125_v28 = vpop.f32.mrf.mxu2 }
 0xada   : > { %3356 = vmatmul.msk.f32.gmra.mxu1 %vm1553_vm9, %v2125_v28  ;;  %v2262_v28 = vpop.f32.mrf.mxu3 }
 0xae1   : > { %v2128_v57 = vpop.f32.mrf.mxu2 }
 0xae2   : > { %3357 = vmatmul.msk.f32.gmra.mxu1 %vm1553_vm9, %v2128_v57  ;;  %v2265_v57 = vpop.f32.mrf.mxu3 }
 0xae3   : > { %v2266_v44 = vadd.f32 %v5152_v14, %v2265_v57 }
 0xae9   : > { %v2131_v52 = vpop.f32.mrf.mxu2 }
 0xaea   : > { %3358 = vmatmul.msk.f32.gmra.mxu1 %vm1553_vm9, %v2131_v52  ;;  %v2263_v52 = vadd.f32 %v5152_v14, %v2262_v28  ;;  %v2268_v9 = vpop.f32.mrf.mxu3 }
 0xaeb   : > { %v2269_v11 = vadd.f32 %v5152_v14, %v2268_v9 }
 0xaf1   : > { %v2134_v51 = vpop.f32.mrf.mxu2 }
 0xaf2   : > { %3359 = vmatmul.msk.f32.gmra.mxu1 %vm1553_vm9, %v2134_v51  ;;  %v2271_v2 = vpop.f32.mrf.mxu3 }
 0xaf9   : > { %v2137_v7 = vpop.f32.mrf.mxu2 }
 0xafa   : > { %3360 = vmatmul.msk.f32.gmra.mxu1 %vm1553_vm9, %v2137_v7 }
 0xb01   : > { %v2140_v53 = vpop.f32.mrf.mxu2 }
 0xb02   : > { %3361 = vmatmul.msk.f32.gmra.mxu1 %vm1553_vm9, %v2140_v53 }
 0xb09   : > { %v2143_v12 = vpop.f32.mrf.mxu2 }
 0xb0a   : > { %3362 = vmatmul.msk.f32.gmra.mxu1 %vm1553_vm9, %v2143_v12 }
 0xb0f   : > { %v2306_v17 = vpop.f32.mrf.mxu1 }
 0xb10   : > { %v5156_v19 = vadd.f32 %v2306_v17, %v2242_v18  ;;  %v2274_v18 = vpop.f32.mrf.mxu3  ;;  %v2272_v17 = vadd.f32 %v5152_v14, %v2271_v2 }
 0xb11   : > { %v2275_v3 = vadd.f32 %v5152_v14, %v2274_v18  ;;  %v3445_v18 = vld [vmem:[%s5509_s1 + $0x758] sm:$0xff] }
 0xb12   : > { %v2354_v29 = vmax.f32 %v5156_v19, 0.0  ;;  %v3398_v19 = vld [vmem:[%s5509_s1 + $0x690] sm:$0xff] }
 0xb14   : > { %2528 = vmatmul.f32.vlgmr.msra.gmra.mxu2 %v2354_v29 }
 0xb17   : > { %v2309_v36 = vpop.f32.mrf.mxu1 }
 0xb18   : > { %v5162_v20 = vadd.f32 %v2309_v36, %v2245_v58 }
 0xb1a   : > { %v2355_v55 = vmax.f32 %v5162_v20, 0.0  ;;  %v3396_v20 = vld [vmem:[%s5509_s1 + $0x680] sm:$0xff] }
 0xb1c   : > { %2531 = vmatmul.f32.gmra.mxu2 %v2355_v55 }
 0xb1f   : > { %v2312_v45 = vpop.f32.mrf.mxu1 }
 0xb20   : > { %v5168_v33 = vadd.f32 %v2312_v45, %v2248_v56  ;;  %v2277_v56 = vpop.f32.mrf.mxu3 }
 0xb21   : > { %v2278_v15 = vadd.f32 %v5152_v14, %v2277_v56  ;;  %v3441_v56 = vld [vmem:[%s5509_s1 + $0x738] sm:$0xff] }
 0xb22   : > { %v2356_v61 = vmax.f32 %v5168_v33, 0.0 }
 0xb24   : > { %2534 = vmatmul.f32.gmra.mxu2 %v2356_v61 }
 0xb27   : > { %v2315_v1 = vpop.f32.mrf.mxu1 }
 0xb28   : > { %v5174_v6 = vadd.f32 %v2315_v1, %v2251_v59 }
 0xb2a   : > { %v2357_v23 = vmax.f32 %v5174_v6, 0.0 }
 0xb2c   : > { %2537 = vmatmul.f32.gmra.mxu2 %v2357_v23 }
 0xb2f   : > { %v2318_v26 = vpop.f32.mrf.mxu1 }
 0xb30   : > { %v5180_v43 = vadd.f32 %v2318_v26, %v2254_v38  ;;  %v2280_v38 = vpop.f32.mrf.mxu3 }
 0xb32   : > { %v2358_v25 = vmax.f32 %v5180_v43, 0.0 }
 0xb34   : > { %2540 = vmatmul.f32.gmra.mxu2 %v2358_v25 }
 0xb37   : > { %v2321_v22 = vpop.f32.mrf.mxu1 }
 0xb38   : > { %v5186_v63 = vadd.f32 %v2321_v22, %v2257_v30  ;;  %v2281_v22 = vadd.f32 %v5152_v14, %v2280_v38 }
 0xb3a   : > { %v2359_v16 = vmax.f32 %v5186_v63, 0.0 }
 0xb3c   : > { %2543 = vmatmul.f32.gmra.mxu2 %v2359_v16 }
 0xb3f   : > { %v2324_v13 = vpop.f32.mrf.mxu1 }
 0xb40   : > { %v5192_v62 = vadd.f32 %v2324_v13, %v2260_v35  ;;  %v2283_v13 = vpop.f32.mrf.mxu3 }
 0xb42   : > { %v2360_v4 = vmax.f32 %v5192_v62, 0.0 }
 0xb44   : > { %2546 = vmatmul.f32.gmra.mxu2 %v2360_v4 }
 0xb47   : > { %v2327_v27 = vpop.f32.mrf.mxu1 }
 0xb48   : > { %v2328_v5 = vadd.f32 %v2327_v27, %v2263_v52  ;;  %v2284_v52 = vadd.f32 %v5152_v14, %v2283_v13 }
 0xb4a   : > { %v2361_v32 = vmax.f32 %v2328_v5, 0.0 }
 0xb4c   : > { %2549 = vmatmul.f32.gmra.mxu2 %v2361_v32 }
 0xb4f   : > { %v2330_v51 = vpop.f32.mrf.mxu1 }
 0xb50   : > { %v2331_v60 = vadd.f32 %v2330_v51, %v2266_v44  ;;  %v2286_v44 = vpop.f32.mrf.mxu3 }
 0xb51   : > { %v2287_v51 = vadd.f32 %v5152_v14, %v2286_v44  ;;  %v3399_v14 = vld [vmem:[%s5509_s1 + $0x698] sm:$0xff] }
 0xb52   : > { %v2362_v7 = vmax.f32 %v2331_v60, 0.0  ;;  %2589 = vmatpush.msrb.mxu3 %v3399_v14 }
 0xb54   : > { %2552 = vmatmul.f32.gmra.mxu2 %v2362_v7  ;;  %2590 = vmatpush.msrb.mxu3 %v3398_v19 }
 0xb57   : > { %v2333_v53 = vpop.f32.mrf.mxu1 }
 0xb58   : > { %v2334_v12 = vadd.f32 %v2333_v53, %v2269_v11  ;;  %v3447_v53 = vld [vmem:[%s5509_s1 + $0x768] sm:$0xff] }
 0xb5a   : > { %v2363_v10 = vmax.f32 %v2334_v12, 0.0  ;;  %v3446_v12 = vld [vmem:[%s5509_s1 + $0x760] sm:$0xff] }
 0xb5c   : > { %2555 = vmatmul.f32.gmra.mxu2 %v2363_v10 }
 0xb5f   : > { %v2336_v49 = vpop.f32.mrf.mxu1 }
 0xb60   : > { %v2337_v58 = vadd.f32 %v2336_v49, %v2272_v17  ;;  %v3444_v17 = vld [vmem:[%s5509_s1 + $0x750] sm:$0xff]  ;;  %v3443_v49 = vld [vmem:[%s5509_s1 + $0x748] sm:$0xff] }
 0xb62   : > { %v2364_v36 = vmax.f32 %v2337_v58, 0.0  ;;  %v3442_v58 = vld [vmem:[%s5509_s1 + $0x740] sm:$0xff] }
 0xb64   : > { %2558 = vmatmul.f32.gmra.mxu2 %v2364_v36 }
 0xb67   : > { %v2339_v45 = vpop.f32.mrf.mxu1 }
 0xb68   : > { %v2340_v59 = vadd.f32 %v2339_v45, %v2275_v3  ;;  %v3440_v3 = vld [vmem:[%s5509_s1 + $0x730] sm:$0xff]  ;;  %v3439_v45 = vld [vmem:[%s5509_s1 + $0x728] sm:$0xff] }
 0xb6a   : > { %v2365_v1 = vmax.f32 %v2340_v59, 0.0  ;;  %v3438_v59 = vld [vmem:[%s5509_s1 + $0x720] sm:$0xff] }
 0xb6c   : > { %2561 = vmatmul.f32.gmra.mxu2 %v2365_v1 }
 0xb6f   : > { %v2342_v26 = vpop.f32.mrf.mxu1 }
 0xb70   : > { %v2343_v28 = vadd.f32 %v2342_v26, %v2278_v15  ;;  %v3436_v26 = vld [vmem:[%s5509_s1 + $0x710] sm:$0xff] }
 0xb72   : > { %v2366_v30 = vmax.f32 %v2343_v28, 0.0  ;;  %v3435_v28 = vld [vmem:[%s5509_s1 + $0x708] sm:$0xff] }
 0xb74   : > { %2564 = vmatmul.f32.gmra.mxu2 %v2366_v30 }
 0xb77   : > { %v2345_v57 = vpop.f32.mrf.mxu1 }
 0xb78   : > { %v2346_v35 = vadd.f32 %v2345_v57, %v2281_v22 }
 0xb7a   : > { %v2367_v62 = vmax.f32 %v2346_v35, 0.0 }
 0xb7c   : > { %2567 = vmatmul.f32.gmra.mxu2 %v2367_v62 }
 0xb7f   : > { %v2348_v9 = vpop.f32.mrf.mxu1 }
 0xb80   : > { %v2349_v27 = vadd.f32 %v2348_v9, %v2284_v52  ;;  %v5328_v52 = vld [vmem:[%s5510_s2 + $0x6] ss:$0 sm:$0xff] }
 0xb82   : > { %v2368_v5 = vmax.f32 %v2349_v27, 0.0 }
 0xb84   : > { %2570 = vmatmul.f32.gmra.mxu2 %v2368_v5 }
 0xb87   : > { %v2351_v60 = vpop.f32.mrf.mxu1 }
 0xb88   : > { %v2352_v2 = vadd.f32 %v2351_v60, %v2287_v51 }
 0xb8a   : > { %v2369_v11 = vmax.f32 %v2352_v2, 0.0 }
 0xb8c   : > { %3363 = vmatpush.msk.msrb.mxu0 %vm446_vm0, %v2369_v11  ;;  %2573 = vmatmul.f32.gmra.mxu2 %v2369_v11 }
 0xb8e   : > { %2374 = vmatpush.msrb.mxu0 %v2368_v5 }
 0xb90   : > { %2375 = vmatpush.msrb.mxu0 %v2367_v62 }
 0xb92   : > { %2376 = vmatpush.msrb.mxu0 %v2366_v30  ;;  %v3434_v30 = vld [vmem:[%s5509_s1 + $0x700] sm:$0xff] }
 0xb94   : > { %2377 = vmatpush.msrb.mxu0 %v2365_v1  ;;  %v3437_v1 = vld [vmem:[%s5509_s1 + $0x718] sm:$0xff] }
 0xb96   : > { %2378 = vmatpush.msrb.mxu0 %v2364_v36 }
 0xb97   : > { %v2529_v38 = vpop.f32.mrf.mxu2 }
 0xb98   : > { %2379 = vmatpush.msrb.mxu0 %v2363_v10  ;;  %v2530_v27 = vadd.f32 %v5328_v52, %v2529_v38 }
 0xb9a   : > { %2380 = vmatpush.msrb.mxu0 %v2362_v7  ;;  %v3448_v7 = vld [vmem:[%s5509_s1 + $0x770] sm:$0xff] }
 0xb9c   : > { %2381 = vmatpush.msrb.mxu0 %v2361_v32  ;;  %v3449_v32 = vld [vmem:[%s5509_s1 + $0x778] sm:$0xff] }
 0xb9e   : > { %2382 = vmatpush.msrb.mxu0 %v2360_v4 }
 0xb9f   : > { %v2532_v57 = vpop.f32.mrf.mxu2 }
 0xba0   : > { %2383 = vmatpush.msrb.mxu0 %v2359_v16  ;;  %v2533_v2 = vadd.f32 %v5328_v52, %v2532_v57 }
 0xba2   : > { %2384 = vmatpush.msrb.mxu0 %v2358_v25 }
 0xba4   : > { %2385 = vmatpush.msrb.mxu0 %v2357_v23 }
 0xba6   : > { %2386 = vmatpush.msrb.mxu0 %v2356_v61 }
 0xba7   : > { %v2535_v13 = vpop.f32.mrf.mxu2 }
 0xba8   : > { %2387 = vmatpush.msrb.mxu0 %v2355_v55 }
 0xbaa   : > { %2388 = vmatpush.msrb.mxu0 %v2354_v29  ;;  %v3397_v29 = vld [vmem:[%s5509_s1 + $0x688] sm:$0xff] }
 0xbab   : > { %3364 = vmatmul.msk.f32.vlgmr.msrb.gmra.mxu0 %vm397_vm3, %v4756_v8  ;;  %2591 = vmatpush.msrb.mxu3 %v3397_v29  ;;  %v2536_v29 = vadd.f32 %v5328_v52, %v2535_v13 }
 0xbac   : > { %2798 = vmatpush.msra.mxu0 %v3449_v32 }
 0xbad   : > { %2592 = vmatpush.msrb.mxu3 %v3396_v20 }
 0xbae   : > { %2799 = vmatpush.msra.mxu0 %v3448_v7 }
 0xbaf   : > { %v2538_v9 = vpop.f32.mrf.mxu2 }
 0xbb0   : > { %2800 = vmatpush.msra.mxu0 %v3447_v53 }
 0xbb2   : > { %2801 = vmatpush.msra.mxu0 %v3446_v12 }
 0xbb3   : > { %3365 = vmatmul.msk.f32.gmra.mxu0 %vm397_vm3, %v4765_v40 }
 0xbb4   : > { %2802 = vmatpush.msra.mxu0 %v3445_v18 }
 0xbb6   : > { %2803 = vmatpush.msra.mxu0 %v3444_v17 }
 0xbb7   : > { %v2541_v60 = vpop.f32.mrf.mxu2 }
 0xbb8   : > { %2804 = vmatpush.msra.mxu0 %v3443_v49 }
 0xbba   : > { %2805 = vmatpush.msra.mxu0 %v3442_v58 }
 0xbbb   : > { %3366 = vmatmul.msk.f32.gmra.mxu0 %vm397_vm3, %v4772_v50 }
 0xbbc   : > { %2806 = vmatpush.msra.mxu0 %v3441_v56 }
 0xbbe   : > { %2807 = vmatpush.msra.mxu0 %v3440_v3 }
 0xbbf   : > { %v2544_v20 = vpop.f32.mrf.mxu2 }
 0xbc0   : > { %2808 = vmatpush.msra.mxu0 %v3439_v45  ;;  %v2545_v12 = vadd.f32 %v5328_v52, %v2544_v20 }
 0xbc2   : > { %2809 = vmatpush.msra.mxu0 %v3438_v59 }
 0xbc3   : > { %3367 = vmatmul.msk.f32.gmra.mxu0 %vm397_vm3, %v4779_v42 }
 0xbc4   : > { %2810 = vmatpush.msra.mxu0 %v3437_v1 }
 0xbc6   : > { %2811 = vmatpush.msra.mxu0 %v3436_v26 }
 0xbc8   : > { %2812 = vmatpush.msra.mxu0 %v3435_v28 }
 0xbca   : > { %2813 = vmatpush.msra.mxu0 %v3434_v30 }
 0xbcb   : > { %3368 = vmatmul.msk.f32.gmra.mxu0 %vm397_vm3, %v4786_v46 }
 0xbd3   : > { %3369 = vmatmul.msk.f32.gmra.mxu0 %vm397_vm3, %v4793_v0 }
 0xbdb   : > { %3370 = vmatmul.msk.f32.gmra.mxu0 %vm397_vm3, %v4800_v48 }
 0xbe3   : > { %3371 = vmatmul.msk.f32.gmra.mxu0 %vm397_vm3, %v4807_v47 }
 0xbeb   : > { %3372 = vmatmul.msk.f32.gmra.mxu0 %vm397_vm3, %v4814_v39 }
 0xbf3   : > { %3373 = vmatmul.msk.f32.gmra.mxu0 %vm397_vm3, %v4827_v54 }
 0xbfb   : > { %3374 = vmatmul.msk.f32.gmra.mxu0 %vm397_vm3, %v4846_v24 }
 0xc03   : > { %3375 = vmatmul.msk.f32.gmra.mxu0 %vm397_vm3, %v4865_v21 }
 0xc0b   : > { %3376 = vmatmul.msk.f32.gmra.mxu0 %vm397_vm3, %v4884_v34 }
 0xc13   : > { %3377 = vmatmul.msk.f32.gmra.mxu0 %vm397_vm3, %v4897_v41 }
 0xc1b   : > { %3378 = vmatmul.msk.f32.gmra.mxu0 %vm397_vm3, %v4904_v31 }
 0xc23   : > { %3379 = vmatmul.msk.f32.gmra.mxu0 %vm397_vm3, %v4911_v37 }
 0xc28   : > { %v2390_v55 = vpop.f32.mrf.mxu0 }
 0xc29   : > { %3401 = vmatmul.msk.f32.vlgmr.msrb.gmra.mxu3 %vm1201_vm8, %v2390_v55 }
 0xc30   : > { %v2393_v33 = vpop.f32.mrf.mxu0 }
 0xc31   : > { %3402 = vmatmul.msk.f32.gmra.mxu3 %vm1201_vm8, %v2393_v33 }
 0xc38   : > { %v2396_v61 = vpop.f32.mrf.mxu0 }
 0xc39   : > { %3403 = vmatmul.msk.f32.gmra.mxu3 %vm1201_vm8, %v2396_v61 }
 0xc40   : > { %v2399_v6 = vpop.f32.mrf.mxu0 }
 0xc41   : > { %3404 = vmatmul.msk.f32.gmra.mxu3 %vm1201_vm8, %v2399_v6  ;;  %v2539_v6 = vadd.f32 %v5328_v52, %v2538_v9 }
 0xc48   : > { %v2402_v23 = vpop.f32.mrf.mxu0 }
 0xc49   : > { %3405 = vmatmul.msk.f32.gmra.mxu3 %vm1201_vm8, %v2402_v23 }
 0xc50   : > { %v2405_v43 = vpop.f32.mrf.mxu0 }
 0xc51   : > { %3406 = vmatmul.msk.f32.gmra.mxu3 %vm1201_vm8, %v2405_v43 }
 0xc58   : > { %v2408_v25 = vpop.f32.mrf.mxu0 }
 0xc59   : > { %3407 = vmatmul.msk.f32.gmra.mxu3 %vm1201_vm8, %v2408_v25  ;;  %v2547_v25 = vpop.f32.mrf.mxu2 }
 0xc5a   : > { %v2548_v58 = vadd.f32 %v5328_v52, %v2547_v25 }
 0xc60   : > { %v2411_v63 = vpop.f32.mrf.mxu0 }
 0xc61   : > { %3408 = vmatmul.msk.f32.gmra.mxu3 %vm1201_vm8, %v2411_v63  ;;  %v2550_v53 = vpop.f32.mrf.mxu2 }
 0xc62   : > { %v2551_v45 = vadd.f32 %v5328_v52, %v2550_v53 }
 0xc68   : > { %v2414_v16 = vpop.f32.mrf.mxu0 }
 0xc69   : > { %3409 = vmatmul.msk.f32.gmra.mxu3 %vm1201_vm8, %v2414_v16  ;;  %v2542_v16 = vadd.f32 %v5328_v52, %v2541_v60  ;;  %v2553_v49 = vpop.f32.mrf.mxu2 }
 0xc6a   : > { %v2554_v26 = vadd.f32 %v5328_v52, %v2553_v49 }
 0xc70   : > { %v2417_v4 = vpop.f32.mrf.mxu0 }
 0xc71   : > { %3410 = vmatmul.msk.f32.gmra.mxu3 %vm1201_vm8, %v2417_v4  ;;  %v2556_v59 = vpop.f32.mrf.mxu2 }
 0xc78   : > { %v2420_v10 = vpop.f32.mrf.mxu0 }
 0xc79   : > { %3411 = vmatmul.msk.f32.gmra.mxu3 %vm1201_vm8, %v2420_v10 }
 0xc80   : > { %v2423_v36 = vpop.f32.mrf.mxu0 }
 0xc81   : > { %3412 = vmatmul.msk.f32.gmra.mxu3 %vm1201_vm8, %v2423_v36 }
 0xc88   : > { %v2426_v15 = vpop.f32.mrf.mxu0 }
 0xc89   : > { %3413 = vmatmul.msk.f32.gmra.mxu3 %vm1201_vm8, %v2426_v15 }
 0xc90   : > { %v2429_v22 = vpop.f32.mrf.mxu0 }
 0xc91   : > { %3414 = vmatmul.msk.f32.gmra.mxu3 %vm1201_vm8, %v2429_v22  ;;  %v2559_v22 = vpop.f32.mrf.mxu2 }
 0xc98   : > { %v2432_v35 = vpop.f32.mrf.mxu0 }
 0xc99   : > { %3415 = vmatmul.msk.f32.gmra.mxu3 %vm1201_vm8, %v2432_v35  ;;  %v2557_v35 = vadd.f32 %v5328_v52, %v2556_v59 }
 0xca0   : > { %v2435_v62 = vpop.f32.mrf.mxu0 }
 0xca1   : > { %3416 = vmatmul.msk.f32.gmra.mxu3 %vm1201_vm8, %v2435_v62 }
 0xcac   : > { %v2594_v5 = vpop.f32.mrf.mxu3 }
 0xcad   : > { %v5331_v44 = vadd.f32 %v2594_v5, %v2530_v27  ;;  %v2562_v27 = vpop.f32.mrf.mxu2  ;;  %v2560_v5 = vadd.f32 %v5328_v52, %v2559_v22 }
 0xcae   : > { %v2563_v20 = vadd.f32 %v5328_v52, %v2562_v27 }
 0xcaf   : > { %v2642_v51 = vmax.f32 %v5331_v44, 0.0 }
 0xcb1   : > { %2814 = vmatmul.f32.vlgmr.msra.gmra.mxu0 %v2642_v51 }
 0xcb4   : > { %v2597_v11 = vpop.f32.mrf.mxu3 }
 0xcb5   : > { %v5337_v14 = vadd.f32 %v2597_v11, %v2533_v2 }
 0xcb7   : > { %v2643_v19 = vmax.f32 %v5337_v14, 0.0 }
 0xcb9   : > { %2817 = vmatmul.f32.gmra.mxu0 %v2643_v19 }
 0xcbc   : > { %v2600_v55 = vpop.f32.mrf.mxu3 }
 0xcbd   : > { %v5343_v33 = vadd.f32 %v2600_v55, %v2536_v29  ;;  %v2565_v29 = vpop.f32.mrf.mxu2 }
 0xcbe   : > { %v2566_v25 = vadd.f32 %v5328_v52, %v2565_v29 }
 0xcbf   : > { %v2644_v61 = vmax.f32 %v5343_v33, 0.0  ;;  %v5449_v33 = vld [vmem:[%s5510_s2 + $0x7] ss:$0 sm:$0xff] }
 0xcc1   : > { %2820 = vmatmul.f32.gmra.mxu0 %v2644_v61 }
 0xcc4   : > { %v2603_v23 = vpop.f32.mrf.mxu3 }
 0xcc5   : > { %v5349_v43 = vadd.f32 %v2603_v23, %v2539_v6 }
 0xcc7   : > { %v2645_v63 = vmax.f32 %v5349_v43, 0.0 }
 0xcc9   : > { %2823 = vmatmul.f32.gmra.mxu0 %v2645_v63 }
 0xccc   : > { %v2606_v4 = vpop.f32.mrf.mxu3 }
 0xccd   : > { %v5355_v32 = vadd.f32 %v2606_v4, %v2542_v16  ;;  %v2568_v16 = vpop.f32.mrf.mxu2 }
 0xccf   : > { %v2646_v7 = vmax.f32 %v5355_v32, 0.0 }
 0xcd1   : > { %2826 = vmatmul.f32.gmra.mxu0 %v2646_v7 }
 0xcd4   : > { %v2609_v10 = vpop.f32.mrf.mxu3 }
 0xcd5   : > { %v5361_v18 = vadd.f32 %v2609_v10, %v2545_v12  ;;  %v2569_v10 = vadd.f32 %v5328_v52, %v2568_v16 }
 0xcd7   : > { %v2647_v17 = vmax.f32 %v5361_v18, 0.0 }
 0xcd9   : > { %2829 = vmatmul.f32.gmra.mxu0 %v2647_v17 }
 0xcdc   : > { %v2612_v36 = vpop.f32.mrf.mxu3 }
 0xcdd   : > { %v5367_v56 = vadd.f32 %v2612_v36, %v2548_v58  ;;  %v2571_v36 = vpop.f32.mrf.mxu2 }
 0xcdf   : > { %v2648_v3 = vmax.f32 %v5367_v56, 0.0 }
 0xce1   : > { %2832 = vmatmul.f32.gmra.mxu0 %v2648_v3 }
 0xce4   : > { %v2615_v1 = vpop.f32.mrf.mxu3 }
 0xce5   : > { %v2616_v15 = vadd.f32 %v2615_v1, %v2551_v45  ;;  %v2572_v45 = vadd.f32 %v5328_v52, %v2571_v36 }
 0xce7   : > { %v2649_v38 = vmax.f32 %v2616_v15, 0.0 }
 0xce9   : > { %2835 = vmatmul.f32.gmra.mxu0 %v2649_v38 }
 0xcec   : > { %v2618_v28 = vpop.f32.mrf.mxu3 }
 0xced   : > { %v2619_v30 = vadd.f32 %v2618_v28, %v2554_v26  ;;  %v2574_v26 = vpop.f32.mrf.mxu2 }
 0xcee   : > { %v2575_v28 = vadd.f32 %v5328_v52, %v2574_v26 }
 0xcef   : > { %v2650_v57 = vmax.f32 %v2619_v30, 0.0 }
 0xcf1   : > { %2838 = vmatmul.f32.gmra.mxu0 %v2650_v57 }
 0xcf4   : > { %v2621_v13 = vpop.f32.mrf.mxu3 }
 0xcf5   : > { %v2622_v62 = vadd.f32 %v2621_v13, %v2557_v35 }
 0xcf7   : > { %v2651_v9 = vmax.f32 %v2622_v62, 0.0 }
 0xcf9   : > { %2841 = vmatmul.f32.gmra.mxu0 %v2651_v9 }
 0xcfc   : > { %v2624_v60 = vpop.f32.mrf.mxu3 }
 0xcfd   : > { %v2625_v2 = vadd.f32 %v2624_v60, %v2560_v5 }
 0xcff   : > { %v2652_v11 = vmax.f32 %v2625_v2, 0.0 }
 0xd01   : > { %2844 = vmatmul.f32.gmra.mxu0 %v2652_v11 }
 0xd04   : > { %v2627_v55 = vpop.f32.mrf.mxu3 }
 0xd05   : > { %v2628_v6 = vadd.f32 %v2627_v55, %v2563_v20 }
 0xd07   : > { %v2653_v23 = vmax.f32 %v2628_v6, 0.0 }
 0xd09   : > { %2847 = vmatmul.f32.gmra.mxu0 %v2653_v23 }
 0xd0c   : > { %v2630_v4 = vpop.f32.mrf.mxu3 }
 0xd0d   : > { %v2631_v53 = vadd.f32 %v2630_v4, %v2566_v25 }
 0xd0f   : > { %v2654_v12 = vmax.f32 %v2631_v53, 0.0 }
 0xd11   : > { %2850 = vmatmul.f32.gmra.mxu0 %v2654_v12 }
 0xd14   : > { %v2633_v49 = vpop.f32.mrf.mxu3 }
 0xd15   : > { %v2634_v58 = vadd.f32 %v2633_v49, %v2569_v10 }
 0xd17   : > { %v2655_v56 = vmax.f32 %v2634_v58, 0.0 }
 0xd19   : > { %2853 = vmatmul.f32.gmra.mxu0 %v2655_v56 }
 0xd1c   : > { %v2636_v59 = vpop.f32.mrf.mxu3 }
 0xd1d   : > { %v2637_v1 = vadd.f32 %v2636_v59, %v2572_v45 }
 0xd1f   : > { %v2656_v15 = vmax.f32 %v2637_v1, 0.0 }
 0xd21   : > { %2856 = vmatmul.f32.gmra.mxu0 %v2656_v15 }
 0xd24   : > { %v2639_v30 = vpop.f32.mrf.mxu3 }
 0xd25   : > { %v2640_v22 = vadd.f32 %v2639_v30, %v2575_v28 }
 0xd27   : > { %v2657_v35 = vmax.f32 %v2640_v22, 0.0 }
 0xd29   : > { %3417 = vmatpush.msk.msrb.mxu1 %vm446_vm0, %v2657_v35  ;;  %2859 = vmatmul.f32.gmra.mxu0 %v2657_v35  ;;  %vm2943_vm0 = vcmask 126976  }
 0xd2b   : > { %2662 = vmatpush.msrb.mxu1 %v2656_v15 }
 0xd2d   : > { %2663 = vmatpush.msrb.mxu1 %v2655_v56 }
 0xd2f   : > { %2664 = vmatpush.msrb.mxu1 %v2654_v12 }
 0xd31   : > { %2665 = vmatpush.msrb.mxu1 %v2653_v23 }
 0xd33   : > { %2666 = vmatpush.msrb.mxu1 %v2652_v11 }
 0xd35   : > { %2667 = vmatpush.msrb.mxu1 %v2651_v9 }
 0xd37   : > { %2668 = vmatpush.msrb.mxu1 %v2650_v57 }
 0xd39   : > { %2669 = vmatpush.msrb.mxu1 %v2649_v38 }
 0xd3b   : > { %2670 = vmatpush.msrb.mxu1 %v2648_v3 }
 0xd3d   : > { %2671 = vmatpush.msrb.mxu1 %v2647_v17 }
 0xd3f   : > { %2672 = vmatpush.msrb.mxu1 %v2646_v7 }
 0xd41   : > { %2673 = vmatpush.msrb.mxu1 %v2645_v63 }
 0xd43   : > { %2674 = vmatpush.msrb.mxu1 %v2644_v61 }
 0xd45   : > { %2675 = vmatpush.msrb.mxu1 %v2643_v19 }
 0xd47   : > { %2676 = vmatpush.msrb.mxu1 %v2642_v51 }
 0xd48   : > { %3418 = vmatmul.msk.f32.vlgmr.msrb.gmra.mxu1 %vm397_vm3, %v4756_v8  ;;  %v3451_v8 = vld [vmem:[%s5509_s1 + $0x788] sm:$0xff] }
 0xd49   : > { %2877 = vmatpush.msrb.mxu2 %v3451_v8 }
 0xd50   : > { %3419 = vmatmul.msk.f32.gmra.mxu1 %vm397_vm3, %v4765_v40  ;;  %v3450_v40 = vld [vmem:[%s5509_s1 + $0x780] sm:$0xff] }
 0xd51   : > { %2878 = vmatpush.msrb.mxu2 %v3450_v40 }
 0xd58   : > { %3420 = vmatmul.msk.f32.gmra.mxu1 %vm397_vm3, %v4772_v50 }
 0xd60   : > { %3421 = vmatmul.msk.f32.gmra.mxu1 %vm397_vm3, %v4779_v42 }
 0xd68   : > { %3422 = vmatmul.msk.f32.gmra.mxu1 %vm397_vm3, %v4786_v46 }
 0xd70   : > { %3423 = vmatmul.msk.f32.gmra.mxu1 %vm397_vm3, %v4793_v0 }
 0xd78   : > { %3424 = vmatmul.msk.f32.gmra.mxu1 %vm397_vm3, %v4800_v48 }
 0xd80   : > { %3425 = vmatmul.msk.f32.gmra.mxu1 %vm397_vm3, %v4807_v47 }
 0xd88   : > { %3426 = vmatmul.msk.f32.gmra.mxu1 %vm397_vm3, %v4814_v39 }
 0xd90   : > { %3427 = vmatmul.msk.f32.gmra.mxu1 %vm397_vm3, %v4827_v54 }
 0xd98   : > { %3428 = vmatmul.msk.f32.gmra.mxu1 %vm397_vm3, %v4846_v24 }
 0xda0   : > { %3429 = vmatmul.msk.f32.gmra.mxu1 %vm397_vm3, %v4865_v21 }
 0xda8   : > { %3430 = vmatmul.msk.f32.gmra.mxu1 %vm397_vm3, %v4884_v34 }
 0xdb0   : > { %3431 = vmatmul.msk.f32.gmra.mxu1 %vm397_vm3, %v4897_v41 }
 0xdb8   : > { %3432 = vmatmul.msk.f32.gmra.mxu1 %vm397_vm3, %v4904_v31 }
 0xdc0   : > { %3433 = vmatmul.msk.f32.gmra.mxu1 %vm397_vm3, %v4911_v37  ;;  %v2815_v37 = vpop.f32.mrf.mxu0 }
 0xdc1   : > { %v2816_v43 = vadd.f32 %v5449_v33, %v2815_v37 }
 0xdc5   : > { %v2678_v50 = vpop.f32.mrf.mxu1 }
 0xdc6   : > { %3453 = vmatmul.msk.f32.vlgmr.msrb.gmra.mxu2 %vm851_vm7, %v2678_v50 }
 0xdc8   : > { %v2818_v44 = vpop.f32.mrf.mxu0 }
 0xdc9   : > { %v2819_v18 = vadd.f32 %v5449_v33, %v2818_v44 }
 0xdcd   : > { %v2681_v42 = vpop.f32.mrf.mxu1 }
 0xdce   : > { %3454 = vmatmul.msk.f32.gmra.mxu2 %vm851_vm7, %v2681_v42 }
 0xdd0   : > { %v2821_v14 = vpop.f32.mrf.mxu0 }
 0xdd1   : > { %v2822_v38 = vadd.f32 %v5449_v33, %v2821_v14 }
 0xdd5   : > { %v2684_v46 = vpop.f32.mrf.mxu1 }
 0xdd6   : > { %3455 = vmatmul.msk.f32.gmra.mxu2 %vm851_vm7, %v2684_v46 }
 0xdd8   : > { %v2824_v61 = vpop.f32.mrf.mxu0 }
 0xdd9   : > { %v2825_v9 = vadd.f32 %v5449_v33, %v2824_v61 }
 0xddd   : > { %v2687_v0 = vpop.f32.mrf.mxu1 }
 0xdde   : > { %3456 = vmatmul.msk.f32.gmra.mxu2 %vm851_vm7, %v2687_v0 }
 0xde0   : > { %v2827_v7 = vpop.f32.mrf.mxu0 }
 0xde1   : > { %v2828_v2 = vadd.f32 %v5449_v33, %v2827_v7 }
 0xde5   : > { %v2690_v48 = vpop.f32.mrf.mxu1 }
 0xde6   : > { %3457 = vmatmul.msk.f32.gmra.mxu2 %vm851_vm7, %v2690_v48 }
 0xde8   : > { %v2830_v57 = vpop.f32.mrf.mxu0 }
 0xde9   : > { %v2831_v55 = vadd.f32 %v5449_v33, %v2830_v57 }
 0xded   : > { %v2693_v47 = vpop.f32.mrf.mxu1 }
 0xdee   : > { %3458 = vmatmul.msk.f32.gmra.mxu2 %vm851_vm7, %v2693_v47 }
 0xdf0   : > { %v2833_v60 = vpop.f32.mrf.mxu0 }
 0xdf1   : > { %v2834_v16 = vadd.f32 %v5449_v33, %v2833_v60 }
 0xdf5   : > { %v2696_v39 = vpop.f32.mrf.mxu1 }
 0xdf6   : > { %3459 = vmatmul.msk.f32.gmra.mxu2 %vm851_vm7, %v2696_v39 }
 0xdf8   : > { %v2836_v20 = vpop.f32.mrf.mxu0 }
 0xdf9   : > { %v2837_v12 = vadd.f32 %v5449_v33, %v2836_v20 }
 0xdfd   : > { %v2699_v54 = vpop.f32.mrf.mxu1 }
 0xdfe   : > { %3460 = vmatmul.msk.f32.gmra.mxu2 %vm851_vm7, %v2699_v54 }
 0xe00   : > { %v2839_v25 = vpop.f32.mrf.mxu0 }
 0xe01   : > { %v2840_v36 = vadd.f32 %v5449_v33, %v2839_v25 }
 0xe05   : > { %v2702_v24 = vpop.f32.mrf.mxu1 }
 0xe06   : > { %3461 = vmatmul.msk.f32.gmra.mxu2 %vm851_vm7, %v2702_v24 }
 0xe08   : > { %v2842_v10 = vpop.f32.mrf.mxu0 }
 0xe09   : > { %v2843_v1 = vadd.f32 %v5449_v33, %v2842_v10 }
 0xe0d   : > { %v2705_v21 = vpop.f32.mrf.mxu1 }
 0xe0e   : > { %3462 = vmatmul.msk.f32.gmra.mxu2 %vm851_vm7, %v2705_v21 }
 0xe10   : > { %v2845_v59 = vpop.f32.mrf.mxu0 }
 0xe11   : > { %v2846_v30 = vadd.f32 %v5449_v33, %v2845_v59 }
 0xe15   : > { %v2708_v34 = vpop.f32.mrf.mxu1 }
 0xe16   : > { %3463 = vmatmul.msk.f32.gmra.mxu2 %vm851_vm7, %v2708_v34 }
 0xe18   : > { %v2848_v28 = vpop.f32.mrf.mxu0 }
 0xe19   : > { %v2849_v40 = vadd.f32 %v5449_v33, %v2848_v28 }
 0xe1d   : > { %v2711_v41 = vpop.f32.mrf.mxu1 }
 0xe1e   : > { %3464 = vmatmul.msk.f32.gmra.mxu2 %vm851_vm7, %v2711_v41 }
 0xe20   : > { %v2851_v8 = vpop.f32.mrf.mxu0 }
 0xe21   : > { %v2852_v46 = vadd.f32 %v5449_v33, %v2851_v8 }
 0xe25   : > { %v2714_v31 = vpop.f32.mrf.mxu1 }
 0xe26   : > { %3465 = vmatmul.msk.f32.gmra.mxu2 %vm851_vm7, %v2714_v31 }
 0xe28   : > { %v2854_v0 = vpop.f32.mrf.mxu0 }
 0xe29   : > { %v2855_v39 = vadd.f32 %v5449_v33, %v2854_v0 }
 0xe2d   : > { %v2717_v52 = vpop.f32.mrf.mxu1 }
 0xe2e   : > { %3466 = vmatmul.msk.f32.gmra.mxu2 %vm851_vm7, %v2717_v52 }
 0xe30   : > { %v2857_v21 = vpop.f32.mrf.mxu0 }
 0xe31   : > { %v2858_v34 = vadd.f32 %v5449_v33, %v2857_v21 }
 0xe35   : > { %v2720_v51 = vpop.f32.mrf.mxu1 }
 0xe36   : > { %3467 = vmatmul.msk.f32.gmra.mxu2 %vm851_vm7, %v2720_v51 }
 0xe38   : > { %v2860_v37 = vpop.f32.mrf.mxu0 }
 0xe39   : > { %v2861_v52 = vadd.f32 %v5449_v33, %v2860_v37 }
 0xe3d   : > { %v2723_v19 = vpop.f32.mrf.mxu1 }
 0xe3e   : > { %3468 = vmatmul.msk.f32.gmra.mxu2 %vm851_vm7, %v2723_v19 }
 0xe49   : > { %v2880_v63 = vpop.f32.mrf.mxu2 }
 0xe4a   : > { %v2881_v32 = vadd.f32 %v2880_v63, %v2816_v43 }
 0xe4c   : > { %2928 = vst.msk [vmem:[%s5457_s23] sm:$0xff] %vm851_vm7, %v2881_v32 }
 0xe51   : > { %v2883_v17 = vpop.f32.mrf.mxu2 }
 0xe52   : > { %v2884_v3 = vadd.f32 %v2883_v17, %v2819_v18 }
 0xe54   : > { %2929 = vst.msk [vmem:[%s5457_s23 + $0x8] sm:$0xff] %vm851_vm7, %v2884_v3 }
 0xe59   : > { %v2886_v13 = vpop.f32.mrf.mxu2 }
 0xe5a   : > { %v2887_v62 = vadd.f32 %v2886_v13, %v2822_v38 }
 0xe5c   : > { %2930 = vst.msk [vmem:[%s5457_s23 + $0x10] sm:$0xff] %vm851_vm7, %v2887_v62 }
 0xe61   : > { %v2889_v27 = vpop.f32.mrf.mxu2 }
 0xe62   : > { %v2890_v5 = vadd.f32 %v2889_v27, %v2825_v9 }
 0xe64   : > { %2931 = vst.msk [vmem:[%s5457_s23 + $0x18] sm:$0xff] %vm851_vm7, %v2890_v5 }
 0xe69   : > { %v2892_v11 = vpop.f32.mrf.mxu2 }
 0xe6a   : > { %v2893_v29 = vadd.f32 %v2892_v11, %v2828_v2 }
 0xe6c   : > { %2932 = vst.msk [vmem:[%s5457_s23 + $0x20] sm:$0xff] %vm851_vm7, %v2893_v29 }
 0xe71   : > { %v2895_v6 = vpop.f32.mrf.mxu2 }
 0xe72   : > { %v2896_v23 = vadd.f32 %v2895_v6, %v2831_v55 }
 0xe74   : > { %2933 = vst.msk [vmem:[%s5457_s23 + $0x28] sm:$0xff] %vm851_vm7, %v2896_v23 }
 0xe79   : > { %v2898_v4 = vpop.f32.mrf.mxu2 }
 0xe7a   : > { %v2899_v53 = vadd.f32 %v2898_v4, %v2834_v16 }
 0xe7c   : > { %2934 = vst.msk [vmem:[%s5457_s23 + $0x30] sm:$0xff] %vm851_vm7, %v2899_v53 }
 0xe81   : > { %v2901_v49 = vpop.f32.mrf.mxu2 }
 0xe82   : > { %v2902_v58 = vadd.f32 %v2901_v49, %v2837_v12 }
 0xe84   : > { %2935 = vst.msk [vmem:[%s5457_s23 + $0x38] sm:$0xff] %vm851_vm7, %v2902_v58 }
 0xe89   : > { %v2904_v56 = vpop.f32.mrf.mxu2 }
 0xe8a   : > { %v2905_v45 = vadd.f32 %v2904_v56, %v2840_v36 }
 0xe8c   : > { %2936 = vst.msk [vmem:[%s5457_s23 + $0x40] sm:$0xff] %vm851_vm7, %v2905_v45 }
 0xe91   : > { %v2907_v15 = vpop.f32.mrf.mxu2 }
 0xe92   : > { %v2908_v26 = vadd.f32 %v2907_v15, %v2843_v1 }
 0xe94   : > { %2937 = vst.msk [vmem:[%s5457_s23 + $0x48] sm:$0xff] %vm851_vm7, %v2908_v26 }
 0xe99   : > { %v2910_v22 = vpop.f32.mrf.mxu2 }
 0xe9a   : > { %v2911_v35 = vadd.f32 %v2910_v22, %v2846_v30 }
 0xe9c   : > { %2938 = vst.msk [vmem:[%s5457_s23 + $0x50] sm:$0xff] %vm851_vm7, %v2911_v35 }
 0xea1   : > { %v2913_v50 = vpop.f32.mrf.mxu2 }
 0xea2   : > { %v2914_v42 = vadd.f32 %v2913_v50, %v2849_v40 }
 0xea4   : > { %2939 = vst.msk [vmem:[%s5457_s23 + $0x58] sm:$0xff] %vm851_vm7, %v2914_v42 }
 0xea9   : > { %v2916_v48 = vpop.f32.mrf.mxu2 }
 0xeaa   : > { %v2917_v47 = vadd.f32 %v2916_v48, %v2852_v46 }
 0xeac   : > { %2940 = vst.msk [vmem:[%s5457_s23 + $0x60] sm:$0xff] %vm851_vm7, %v2917_v47 }
 0xeb1   : > { %v2919_v54 = vpop.f32.mrf.mxu2 }
 0xeb2   : > { %v2920_v24 = vadd.f32 %v2919_v54, %v2855_v39 }
 0xeb4   : > { %2941 = vst.msk [vmem:[%s5457_s23 + $0x68] sm:$0xff] %vm851_vm7, %v2920_v24 }
 0xeb9   : > { %v2922_v41 = vpop.f32.mrf.mxu2 }
 0xeba   : > { %v2923_v31 = vadd.f32 %v2922_v41, %v2858_v34 }
 0xebc   : > { %2942 = vst.msk [vmem:[%s5457_s23 + $0x70] sm:$0xff] %vm851_vm7, %v2923_v31 }
 0xec1   : > { %v2925_v44 = vpop.f32.mrf.mxu2 }
 0xec2   : > { %v2926_v51 = vadd.f32 %v2925_v44, %v2861_v52 }
 0xec4   : > { %2944 = vst.msk [vmem:[%s5457_s23 + $0x78] sm:$0x1f] %vm2943_vm0, %v2926_v51 }
 0xec5 PF: > { %s13_s12 = sadd.s32 1, %s3568_s12  }
 0xec6   : > { %p10_p4 = scmp.ge.s32.totalorder %s13_s12, 4  }
 0xec8   :  { %12 = sbr.rel (!%p10_p4) target bundleno = 1 (0x1), region = 76 }

</bundles_post_ra>
